<compile_context>
chip_gen: v7x
topology: tpu7x:2x2x1
jax: 0.10.0
libtpu: 0.0.40
codegen_flags: <defaults>
</compile_context>

<pallas_src>
import numpy as np
import jax
import jax.numpy as jnp
from jax import lax
from jax.experimental import pallas as pl
from jax.experimental.pallas import tpu as pltpu

# ---- model dims (small but structurally identical to NetEstimator) ----------
INPUT_DIM = 9            # width of "other_features"
DELTA_P_DIM = 12
OUTPUT_DIM = 3
HIDDEN_DIM = 32          # module default is 256; small hidden for the test
FEAT_TOTAL = INPUT_DIM + DELTA_P_DIM   # x_seq feature dim = 21
SUBLANE = 8


# ---- shared math helpers (used by the pure-JAX reference) -------------------
def _lstm_cell(x_t, h, c, wih, whh, b):
    """PyTorch LSTMCell semantics, gate order (i, f, g, o)."""
    gates = (jnp.dot(x_t, wih, preferred_element_type=jnp.float32)
             + jnp.dot(h, whh, preferred_element_type=jnp.float32) + b)
    H = h.shape[-1]
    i = jax.nn.sigmoid(gates[:, 0 * H:1 * H])
    f = jax.nn.sigmoid(gates[:, 1 * H:2 * H])
    g = jnp.tanh(gates[:, 2 * H:3 * H])
    o = jax.nn.sigmoid(gates[:, 3 * H:4 * H])
    c_new = f * c + i * g
    h_new = o * jnp.tanh(c_new)
    return h_new, c_new


def _mlp_head(inp, w1, b1, gamma, beta, w2, b2):
    """Linear -> LayerNorm(eps=1e-5) -> LeakyReLU(0.01) -> Linear -> Tanh."""
    z = jnp.dot(inp, w1, preferred_element_type=jnp.float32) + b1
    mu = jnp.mean(z, axis=-1, keepdims=True)
    var = jnp.mean((z - mu) ** 2, axis=-1, keepdims=True)
    zn = (z - mu) * jax.lax.rsqrt(var + 1e-5)
    zn = zn * gamma + beta
    zn = jnp.where(zn >= 0, zn, 0.01 * zn)
    out = jnp.dot(zn, w2, preferred_element_type=jnp.float32) + b2
    return jnp.tanh(out)


# ---- the Pallas kernel (single invocation, skewed in-kernel time loop) -------
def net_estimator_kernel(
    # inputs
    x_ref, u_ref, h0_ref,
    w_in0, b0, w_hh0, w_l1, b1,
    w_h1x, b_h1, w_rec, seg_mean, gamma, beta, w2f, b2f,
    rep12, sel_comb,
    # output
    out_ref,
    # scratch
    gin0_s, u144_s,
):
    TB = x_ref.shape[0]            # T * B_padded
    Bp = h0_ref.shape[0]           # padded batch (multiple of 8 sublanes)
    T = TB // Bp
    H8 = w_in0.shape[1]            # 8 * HIDDEN (fused gate width)
    H2 = w_h1x.shape[0]            # 2 * HIDDEN (fused hidden width)
    W2 = w2f.shape[1]              # 9 + 144 = 153
    f32 = jnp.float32

    # --- hoisted batched matmuls over all T*Bp rows ---------------------------
    gin0_s[...] = (jnp.dot(x_ref[...], w_in0[...], preferred_element_type=f32)
                   + b0[...])                                        # [TB, 8H]
    u144_s[...] = jnp.dot(u_ref[...], rep12[...],
                          preferred_element_type=f32)                # [TB, 144]

    # --- loop-invariant bias / affine rows, broadcast once --------------------
    b1_b = jnp.broadcast_to(b1[...], (Bp, H8))
    bh1_b = jnp.broadcast_to(b_h1[...], (Bp, H2))
    gam_b = jnp.broadcast_to(gamma[...], (Bp, H2))
    bet_b = jnp.broadcast_to(beta[...], (Bp, H2))
    b2f_b = jnp.broadcast_to(b2f[...], (Bp, W2))

    def lstm_step(row, h1, h2, c1, c2):
        """Fused (features ++ delta_p) 2-layer LSTM step; also returns lin_t."""
        pre0 = (gin0_s[pl.ds(row, Bp), :]
                + jnp.dot(h1, w_hh0[...], preferred_element_type=f32))
        i0 = jax.nn.sigmoid(pre0[:, 0 * H2:1 * H2])
        f0 = jax.nn.sigmoid(pre0[:, 1 * H2:2 * H2])
        g0 = jnp.tanh(pre0[:, 2 * H2:3 * H2])
        o0 = jax.nn.sigmoid(pre0[:, 3 * H2:4 * H2])
        c1n = f0 * c1 + i0 * g0
        h1n = o0 * jnp.tanh(c1n)
        # fused layer-1 input+hidden matmul: [h1_new || h2_old] @ [w_in1 ; w_hh1]
        pre1 = (jnp.dot(jnp.concatenate([h1n, h2], axis=-1), w_l1[...],
                        preferred_element_type=f32) + b1_b)
        i1 = jax.nn.sigmoid(pre1[:, 0 * H2:1 * H2])
        f1 = jax.nn.sigmoid(pre1[:, 1 * H2:2 * H2])
        g1 = jnp.tanh(pre1[:, 2 * H2:3 * H2])
        o1 = jax.nn.sigmoid(pre1[:, 3 * H2:4 * H2])
        c2n = f1 * c2 + i1 * g1
        h2n = o1 * jnp.tanh(c2n)
        # h_c-independent half of both head first-linears, inline (no extra pass)
        lin = jnp.dot(h2n, w_h1x[...], preferred_element_type=f32) + bh1_b
        return h1n, h2n, c1n, c2n, lin

    def rec_step(lin, u_rep, h_c):
        """One h_current recurrence step (both MLP heads fused)."""
        # one [Bp,3]@[3,2H+9] matmul: h_c part of first linears || replicated h_c
        r = jnp.dot(h_c, w_rec[...], preferred_element_type=f32)    # [Bp, 2H+9]
        z = lin + r[:, :H2]
        # segmented LayerNorm stats for BOTH 32-lane heads via constant matmul
        mu = jnp.dot(z, seg_mean[...], preferred_element_type=f32)
        ex2 = jnp.dot(z * z, seg_mean[...], preferred_element_type=f32)
        zn = (z - mu) * lax.rsqrt(ex2 - mu * mu + 1e-5) * gam_b + bet_b
        zn = jnp.where(zn >= 0, zn, 0.01 * zn)                       # LeakyReLU
        # fused (ad_w2 | g_w2) second linear + tanh over 153 lanes
        act = jnp.tanh(jnp.dot(zn, w2f[...], preferred_element_type=f32) + b2f_b)
        mult = jnp.concatenate([r[:, H2:], u_rep], axis=-1)          # [h_rep||u_rep]
        # (ad @ h_c) + sum-of-(g @ u) via one stacked [153,3] selector matmul
        return jnp.dot(act * mult, sel_comb[...], preferred_element_type=f32)

    # --- prologue: LSTM step 0 (zero initial state) ---------------------------
    zeros2 = jnp.zeros((Bp, H2), f32)
    h1, h2, c1, c2, lin0 = lstm_step(0, zeros2, zeros2, zeros2, zeros2)
    h_c0 = h0_ref[...]                                               # h_prev.clone()

    # --- skewed merged loop: LSTM step t  +  recurrence step t-1 --------------
    def body(t, carry):
        h1, h2, c1, c2, lin_prev, h_c = carry
        row = pl.multiple_of(t * Bp, Bp)
        row_prev = pl.multiple_of((t - 1) * Bp, Bp)
        # LSTM chain, step t (independent of the h_c chain -> latency overlap)
        h1n, h2n, c1n, c2n, lin_t = lstm_step(row, h1, h2, c1, c2)
        # h_current chain, step t-1
        h_next = rec_step(lin_prev, u144_s[pl.ds(row_prev, Bp), :], h_c)
        out_ref[pl.ds(row_prev, Bp), :] = h_next
        return (h1n, h2n, c1n, c2n, lin_t, h_next)

    carry = lax.fori_loop(1, T, body, (h1, h2, c1, c2, lin0, h_c0), unroll=True)
    _, _, _, _, lin_last, h_c_last = carry

    # --- epilogue: recurrence step T-1 ----------------------------------------
    row_last = pl.multiple_of((T - 1) * Bp, Bp)
    h_final = rec_step(lin_last, u144_s[pl.ds(row_last, Bp), :], h_c_last)
    out_ref[pl.ds(row_last, Bp), :] = h_final


# ---- weight packing (wrapper-side, free constant work) ----------------------
def _pack_params(p):
    H = HIDDEN_DIM

    def fuse_lstm_w(w_f, w_d):
        """Block-diag fuse of two (in, 4H) LSTM weights into (in_f+in_d, 8H)
        with interleaved gate layout [i_f i_d | f_f f_d | g_f g_d | o_f o_d]."""
        in_f, in_d = w_f.shape[0], w_d.shape[0]
        out = jnp.zeros((in_f + in_d, 8 * H), jnp.float32)
        for q in range(4):
            out = out.at[:in_f, (2 * q) * H:(2 * q + 1) * H].set(w_f[:, q * H:(q + 1) * H])
            out = out.at[in_f:, (2 * q + 1) * H:(2 * q + 2) * H].set(w_d[:, q * H:(q + 1) * H])
        return out

    def fuse_lstm_b(b_f, b_d):
        parts = []
        for q in range(4):
            parts += [b_f[:, q * H:(q + 1) * H], b_d[:, q * H:(q + 1) * H]]
        return jnp.concatenate(parts, axis=-1)

    w_in0 = fuse_lstm_w(p["f_wih0"], p["d_wih0"])         # [21, 8H]
    w_hh0 = fuse_lstm_w(p["f_whh0"], p["d_whh0"])         # [2H, 8H]
    b0 = fuse_lstm_b(p["f_b0"], p["d_b0"])                # [1, 8H]
    w_in1 = fuse_lstm_w(p["f_wih1"], p["d_wih1"])         # [2H, 8H]
    w_hh1 = fuse_lstm_w(p["f_whh1"], p["d_whh1"])         # [2H, 8H]
    b1 = fuse_lstm_b(p["f_b1"], p["d_b1"])                # [1, 8H]
    w_l1 = jnp.concatenate([w_in1, w_hh1], axis=0)        # [4H, 8H] stacked layer-1

    # head first linears: LSTM-output part (block-diag) and h_c part
    w_h1x = jnp.zeros((2 * H, 2 * H), jnp.float32)
    w_h1x = w_h1x.at[:H, :H].set(p["ad_w1"][:H, :])
    w_h1x = w_h1x.at[H:, H:].set(p["g_w1"][:H, :])        # [2H, 2H]
    w_h1h = jnp.concatenate([p["ad_w1"][H:, :], p["g_w1"][H:, :]], axis=-1)  # [3, 2H]
    b_h1 = jnp.concatenate([p["ad_b1"], p["g_b1"]], axis=-1)                 # [1, 2H]
    gamma = jnp.concatenate([p["ad_g"], p["g_g"]], axis=-1)                  # [1, 2H]
    beta = jnp.concatenate([p["ad_be"], p["g_be"]], axis=-1)                 # [1, 2H]

    # fused second linears (block-diag): [2H, 9+144] + concatenated bias
    w2f = jnp.zeros((2 * H, 9 + 144), jnp.float32)
    w2f = w2f.at[:H, :9].set(p["ad_w2"])
    w2f = w2f.at[H:, 9:].set(p["g_w2"])
    b2f = jnp.concatenate([p["ad_b2"], p["g_b2"]], axis=-1)                  # [1, 153]

    # constant replication / selector / segment matrices
    tile3 = np.zeros((OUTPUT_DIM, 9), np.float32)         # h_c @ tile3 replicates h_c 3x
    for i in range(3):
        for j in range(3):
            tile3[j, 3 * i + j] = 1.0
    w_rec = jnp.concatenate([w_h1h, jnp.asarray(tile3)], axis=-1)            # [3, 2H+9]

    seg_mean = np.zeros((2 * H, 2 * H), np.float32)       # per-head mean via MXU
    seg_mean[:H, :H] = 1.0 / H
    seg_mean[H:, H:] = 1.0 / H

    rep12 = np.zeros((DELTA_P_DIM, 12 * DELTA_P_DIM), np.float32)  # u -> u_rep (12x)
    for i in range(12):
        for j in range(12):
            rep12[j, 12 * i + j] = 1.0

    sel3 = np.zeros((9, OUTPUT_DIM), np.float32)          # (ad*h_rep) @ sel3 = ad @ h
    for i in range(3):
        sel3[3 * i:3 * i + 3, i] = 1.0
    sel12 = np.zeros((144, OUTPUT_DIM), np.float32)       # (g*u_rep) @ sel12 = sum_gu
    for i in range(12):
        sel12[12 * i:12 * (i + 1), i % 3] = 1.0
    sel_comb = np.concatenate([sel3, sel12], axis=0)      # [153, 3]

    return (w_in0, b0, w_hh0, w_l1, b1,
            w_h1x, b_h1, w_rec, jnp.asarray(seg_mean), gamma, beta, w2f, b2f,
            jnp.asarray(rep12), jnp.asarray(sel_comb))


# ---- wrapper ----------------------------------------------------------------
def net_estimator_forward(x_seq, u_seq, h_prev, params):
    """x_seq [B,T,21], u_seq [B,T,12], h_prev [B,3] -> h_pred [B,T,3]."""
    B, T, F = x_seq.shape
    H = HIDDEN_DIM
    Bp = ((B + SUBLANE - 1) // SUBLANE) * SUBLANE   # pad batch to sublane multiple

    # time-major + batch padding (pad rows are sliced away at the end)
    x_tm = jnp.transpose(x_seq, (1, 0, 2)).astype(jnp.float32)   # [T, B, 21]
    u_tm = jnp.transpose(u_seq, (1, 0, 2)).astype(jnp.float32)   # [T, B, 12]
    h0 = h_prev.astype(jnp.float32)
    if Bp != B:
        pad = Bp - B
        x_tm = jnp.pad(x_tm, ((0, 0), (0, pad), (0, 0)))
        u_tm = jnp.pad(u_tm, ((0, 0), (0, pad), (0, 0)))
        h0 = jnp.pad(h0, ((0, pad), (0, 0)))

    x2d = x_tm.reshape(T * Bp, F)
    u2d = u_tm.reshape(T * Bp, DELTA_P_DIM)   # no wrapper-side 12x replication

    packed = _pack_params(params)
    n_in = 3 + len(packed)
    TB = T * Bp

    out2d = pl.pallas_call(
        net_estimator_kernel,
        out_shape=jax.ShapeDtypeStruct((TB, OUTPUT_DIM), jnp.float32),
        in_specs=[pl.BlockSpec(memory_space=pltpu.MemorySpace.VMEM)] * n_in,
        out_specs=pl.BlockSpec(memory_space=pltpu.MemorySpace.VMEM),
        scratch_shapes=[
            pltpu.VMEM((TB, 8 * H), jnp.float32),              # layer-0 input gates
            pltpu.VMEM((TB, 12 * DELTA_P_DIM), jnp.float32),   # u replicated 12x
        ],
        compiler_params=pltpu.CompilerParams(vmem_limit_bytes=32 * 1024 * 1024),
    )(x2d, u2d, h0, *packed)

    out = out2d.reshape(T, Bp, OUTPUT_DIM)[:, :B, :]
    return jnp.transpose(out, (1, 0, 2))


# ---- deterministic parameter init -------------------------------------------
def make_params(key):
    H = HIDDEN_DIM
    keys = iter(jax.random.split(key, 64))

    def w(shape, scale=0.1):
        return scale * jax.random.normal(next(keys), shape, jnp.float32)

    p = {}
    # LSTM "features" (input 9) and "delta_p" (input 12), 2 layers each.
    for pre, in_dim in (("f", INPUT_DIM), ("d", DELTA_P_DIM)):
        p[f"{pre}_wih0"] = w((in_dim, 4 * H))
        p[f"{pre}_whh0"] = w((H, 4 * H))
        p[f"{pre}_b0"] = w((1, 4 * H), 0.05)       # = b_ih + b_hh pre-summed
        p[f"{pre}_wih1"] = w((H, 4 * H))
        p[f"{pre}_whh1"] = w((H, 4 * H))
        p[f"{pre}_b1"] = w((1, 4 * H), 0.05)
    # ad_net: Linear(H+3,H) -> LayerNorm(H) -> LeakyReLU -> Linear(H,9) -> Tanh
    p["ad_w1"] = w((H + OUTPUT_DIM, H))
    p["ad_b1"] = w((1, H), 0.05)
    p["ad_g"] = jnp.ones((1, H), jnp.float32)
    p["ad_be"] = jnp.zeros((1, H), jnp.float32)
    p["ad_w2"] = w((H, 9))
    p["ad_b2"] = w((1, 9), 0.05)
    # g_net: Linear(H+3,H) -> LayerNorm(H) -> LeakyReLU -> Linear(H,144) -> Tanh
    p["g_w1"] = w((H + OUTPUT_DIM, H))
    p["g_b1"] = w((1, H), 0.05)
    p["g_g"] = jnp.ones((1, H), jnp.float32)
    p["g_be"] = jnp.zeros((1, H), jnp.float32)
    p["g_w2"] = w((H, 144))
    p["g_b2"] = w((1, 144), 0.05)
    return p


# ---- pure-JAX reference (mirrors the PyTorch forward) ------------------------
def reference_forward(x_seq, u_seq, h_prev, p):
    B, T, _ = x_seq.shape
    other = x_seq[:, :, :INPUT_DIM]
    dp = x_seq[:, :, INPUT_DIM:]
    H = HIDDEN_DIM

    def run_lstm2(seq, pre):
        h1 = jnp.zeros((B, H), jnp.float32)
        c1 = jnp.zeros((B, H), jnp.float32)
        h2 = jnp.zeros((B, H), jnp.float32)
        c2 = jnp.zeros((B, H), jnp.float32)
        outs = []
        for t in range(T):
            h1, c1 = _lstm_cell(seq[:, t, :], h1, c1,
                                p[pre + "_wih0"], p[pre + "_whh0"], p[pre + "_b0"])
            h2, c2 = _lstm_cell(h1, h2, c2,
                                p[pre + "_wih1"], p[pre + "_whh1"], p[pre + "_b1"])
            outs.append(h2)
        return jnp.stack(outs, axis=1)

    feat = run_lstm2(other, "f")
    dpo = run_lstm2(dp, "d")

    h_c = h_prev
    preds = []
    for t in range(T):
        ad_flat = _mlp_head(jnp.concatenate([feat[:, t], h_c], axis=-1),
                            p["ad_w1"], p["ad_b1"], p["ad_g"], p["ad_be"],
                            p["ad_w2"], p["ad_b2"])
        g_flat = _mlp_head(jnp.concatenate([dpo[:, t], h_c], axis=-1),
                           p["g_w1"], p["g_b1"], p["g_g"], p["g_be"],
                           p["g_w2"], p["g_b2"])
        ad = ad_flat.reshape(B, 3, 3)
        g = g_flat.reshape(B, 12, 12)
        gu = jnp.einsum("bij,bj->bi", g, u_seq[:, t])
        sum_gu = gu.reshape(B, 4, 3).sum(axis=1)
        h_c = jnp.einsum("bij,bj->bi", ad, h_c) + sum_gu
        preds.append(h_c)
    return jnp.stack(preds, axis=1)


if __name__ == "__main__":
    B, T = 2, 8
    key = jax.random.PRNGKey(0)
    k_x, k_u, k_h, k_p = jax.random.split(key, 4)
    x_seq = jax.random.normal(k_x, (B, T, FEAT_TOTAL), jnp.float32)
    u_seq = jax.random.normal(k_u, (B, T, DELTA_P_DIM), jnp.float32)
    h_prev = jax.random.normal(k_h, (B, OUTPUT_DIM), jnp.float32)
    params = make_params(k_p)

    out = net_estimator_forward(x_seq, u_seq, h_prev, params)
    out = jax.block_until_ready(out)

    ref = reference_forward(x_seq, u_seq, h_prev, params)
    assert out.shape == (B, T, OUTPUT_DIM), out.shape
    assert bool(jnp.all(jnp.isfinite(out)))
    assert jnp.allclose(out, ref, atol=1e-3, rtol=1e-3), \
        float(jnp.max(jnp.abs(out - ref)))
    print("KERNEL_OK")
</pallas_src>

<mosaic_0001>
module attributes {stable_mosaic.version = 11 : i64} {
  func.func @net_estimator_kernel(%arg0: memref<64x21xf32, #tpu.memory_space<vmem>>, %arg1: memref<64x12xf32, #tpu.memory_space<vmem>>, %arg2: memref<8x3xf32, #tpu.memory_space<vmem>>, %arg3: memref<21x256xf32, #tpu.memory_space<vmem>>, %arg4: memref<1x256xf32, #tpu.memory_space<vmem>>, %arg5: memref<64x256xf32, #tpu.memory_space<vmem>>, %arg6: memref<128x256xf32, #tpu.memory_space<vmem>>, %arg7: memref<1x256xf32, #tpu.memory_space<vmem>>, %arg8: memref<64x64xf32, #tpu.memory_space<vmem>>, %arg9: memref<1x64xf32, #tpu.memory_space<vmem>>, %arg10: memref<3x73xf32, #tpu.memory_space<vmem>>, %arg11: memref<64x64xf32, #tpu.memory_space<vmem>>, %arg12: memref<1x64xf32, #tpu.memory_space<vmem>>, %arg13: memref<1x64xf32, #tpu.memory_space<vmem>>, %arg14: memref<64x153xf32, #tpu.memory_space<vmem>>, %arg15: memref<1x153xf32, #tpu.memory_space<vmem>>, %arg16: memref<12x144xf32, #tpu.memory_space<vmem>>, %arg17: memref<153x3xf32, #tpu.memory_space<vmem>>, %arg18: memref<64x3xf32, #tpu.memory_space<vmem>>, %arg19: memref<64x256xf32, #tpu.memory_space<vmem>>, %arg20: memref<64x144xf32, #tpu.memory_space<vmem>>) attributes {dimension_semantics = [], scalar_prefetch = 0 : i64, scratch_operands = 2 : i64, tpu.core_type = #tpu.core_type<tc>} {
    %c0 = arith.constant 0 : index
    %c0_0 = arith.constant 0 : index
    %0 = vector.load %arg0[%c0, %c0_0] : memref<64x21xf32, #tpu.memory_space<vmem>>, vector<64x21xf32>
    %c0_1 = arith.constant 0 : index
    %c0_2 = arith.constant 0 : index
    %1 = vector.load %arg3[%c0_1, %c0_2] : memref<21x256xf32, #tpu.memory_space<vmem>>, vector<21x256xf32>
    %cst = arith.constant dense<0.000000e+00> : vector<64x256xf32>
    %2 = tpu.matmul %0, %1, %cst {dimension_numbers = #tpu.dot_dimension_numbers<[1], [0], [0], [1], [0, 0, 1, 1], [], []>} : vector<64x21xf32>, vector<21x256xf32>, vector<64x256xf32> -> vector<64x256xf32>
    %c0_3 = arith.constant 0 : index
    %c0_4 = arith.constant 0 : index
    %3 = vector.load %arg4[%c0_3, %c0_4] : memref<1x256xf32, #tpu.memory_space<vmem>>, vector<1x256xf32>
    %4 = vector.broadcast %3 : vector<1x256xf32> to vector<64x256xf32>
    %5 = arith.addf %2, %4 : vector<64x256xf32>
    %c0_5 = arith.constant 0 : index
    %c0_6 = arith.constant 0 : index
    %6 = vector.load %arg19[%c0_5, %c0_6] : memref<64x256xf32, #tpu.memory_space<vmem>>, vector<64x256xf32>
    tpu.vector_store %arg19[%c0_5, %c0_6], %5 {strides = array<i32>} : memref<64x256xf32, #tpu.memory_space<vmem>>, vector<64x256xf32>,
    %c0_7 = arith.constant 0 : index
    %c0_8 = arith.constant 0 : index
    %7 = vector.load %arg1[%c0_7, %c0_8] : memref<64x12xf32, #tpu.memory_space<vmem>>, vector<64x12xf32>
    %c0_9 = arith.constant 0 : index
    %c0_10 = arith.constant 0 : index
    %8 = vector.load %arg16[%c0_9, %c0_10] : memref<12x144xf32, #tpu.memory_space<vmem>>, vector<12x144xf32>
    %cst_11 = arith.constant dense<0.000000e+00> : vector<64x144xf32>
    %9 = tpu.matmul %7, %8, %cst_11 {dimension_numbers = #tpu.dot_dimension_numbers<[1], [0], [0], [1], [0, 0, 1, 1], [], []>} : vector<64x12xf32>, vector<12x144xf32>, vector<64x144xf32> -> vector<64x144xf32>
    %c0_12 = arith.constant 0 : index
    %c0_13 = arith.constant 0 : index
    %10 = vector.load %arg20[%c0_12, %c0_13] : memref<64x144xf32, #tpu.memory_space<vmem>>, vector<64x144xf32>
    tpu.vector_store %arg20[%c0_12, %c0_13], %9 {strides = array<i32>} : memref<64x144xf32, #tpu.memory_space<vmem>>, vector<64x144xf32>,
    %c0_14 = arith.constant 0 : index
    %c0_15 = arith.constant 0 : index
    %11 = vector.load %arg7[%c0_14, %c0_15] : memref<1x256xf32, #tpu.memory_space<vmem>>, vector<1x256xf32>
    %12 = vector.shape_cast %11 : vector<1x256xf32> to vector<1x256xf32>
    %13 = vector.broadcast %12 : vector<1x256xf32> to vector<8x256xf32>
    %c0_16 = arith.constant 0 : index
    %c0_17 = arith.constant 0 : index
    %14 = vector.load %arg9[%c0_16, %c0_17] : memref<1x64xf32, #tpu.memory_space<vmem>>, vector<1x64xf32>
    %15 = vector.shape_cast %14 : vector<1x64xf32> to vector<1x64xf32>
    %16 = vector.broadcast %15 : vector<1x64xf32> to vector<8x64xf32>
    %c0_18 = arith.constant 0 : index
    %c0_19 = arith.constant 0 : index
    %17 = vector.load %arg12[%c0_18, %c0_19] : memref<1x64xf32, #tpu.memory_space<vmem>>, vector<1x64xf32>
    %18 = vector.shape_cast %17 : vector<1x64xf32> to vector<1x64xf32>
    %19 = vector.broadcast %18 : vector<1x64xf32> to vector<8x64xf32>
    %c0_20 = arith.constant 0 : index
    %c0_21 = arith.constant 0 : index
    %20 = vector.load %arg13[%c0_20, %c0_21] : memref<1x64xf32, #tpu.memory_space<vmem>>, vector<1x64xf32>
    %21 = vector.shape_cast %20 : vector<1x64xf32> to vector<1x64xf32>
    %22 = vector.broadcast %21 : vector<1x64xf32> to vector<8x64xf32>
    %c0_22 = arith.constant 0 : index
    %c0_23 = arith.constant 0 : index
    %23 = vector.load %arg15[%c0_22, %c0_23] : memref<1x153xf32, #tpu.memory_space<vmem>>, vector<1x153xf32>
    %24 = vector.shape_cast %23 : vector<1x153xf32> to vector<1x153xf32>
    %25 = vector.broadcast %24 : vector<1x153xf32> to vector<8x153xf32>
    %cst_24 = arith.constant 0.000000e+00 : f32
    %26 = vector.broadcast %cst_24 : f32 to vector<8x64xf32>
    %c0_25 = arith.constant 0 : index
    %c0_26 = arith.constant 0 : index
    %27 = vector.load %arg19[%c0_25, %c0_26] : memref<64x256xf32, #tpu.memory_space<vmem>>, vector<8x256xf32>
    %c0_27 = arith.constant 0 : index
    %c0_28 = arith.constant 0 : index
    %28 = vector.load %arg5[%c0_27, %c0_28] : memref<64x256xf32, #tpu.memory_space<vmem>>, vector<64x256xf32>
    %cst_29 = arith.constant dense<0.000000e+00> : vector<8x256xf32>
    %29 = tpu.matmul %26, %28, %cst_29 {dimension_numbers = #tpu.dot_dimension_numbers<[1], [0], [0], [1], [0, 0, 1, 1], [], []>} : vector<8x64xf32>, vector<64x256xf32>, vector<8x256xf32> -> vector<8x256xf32>
    %30 = arith.addf %27, %29 : vector<8x256xf32>
    %31 = vector.extract_strided_slice %30 {offsets = [0, 0], sizes = [8, 64], strides = [1, 1]} : vector<8x256xf32> to vector<8x64xf32>
    %32 = arith.negf %31 : vector<8x64xf32>
    %33 = math.exp %32 : vector<8x64xf32>
    %cst_30 = arith.constant 1.000000e+00 : f32
    %34 = vector.broadcast %cst_30 : f32 to vector<8x64xf32>
    %35 = arith.addf %34, %33 : vector<8x64xf32>
    %36 = arith.divf %34, %35 : vector<8x64xf32>
    %37 = vector.extract_strided_slice %30 {offsets = [0, 64], sizes = [8, 64], strides = [1, 1]} : vector<8x256xf32> to vector<8x64xf32>
    %38 = arith.negf %37 : vector<8x64xf32>
    %39 = math.exp %38 : vector<8x64xf32>
    %cst_31 = arith.constant 1.000000e+00 : f32
    %40 = vector.broadcast %cst_31 : f32 to vector<8x64xf32>
    %41 = arith.addf %40, %39 : vector<8x64xf32>
    %42 = arith.divf %40, %41 : vector<8x64xf32>
    %43 = vector.extract_strided_slice %30 {offsets = [0, 128], sizes = [8, 64], strides = [1, 1]} : vector<8x256xf32> to vector<8x64xf32>
    %44 = math.tanh %43 : vector<8x64xf32>
    %45 = vector.extract_strided_slice %30 {offsets = [0, 192], sizes = [8, 64], strides = [1, 1]} : vector<8x256xf32> to vector<8x64xf32>
    %46 = arith.negf %45 : vector<8x64xf32>
    %47 = math.exp %46 : vector<8x64xf32>
    %cst_32 = arith.constant 1.000000e+00 : f32
    %48 = vector.broadcast %cst_32 : f32 to vector<8x64xf32>
    %49 = arith.addf %48, %47 : vector<8x64xf32>
    %50 = arith.divf %48, %49 : vector<8x64xf32>
    %51 = arith.mulf %42, %26 : vector<8x64xf32>
    %52 = arith.mulf %36, %44 : vector<8x64xf32>
    %53 = arith.addf %51, %52 : vector<8x64xf32>
    %54 = math.tanh %53 : vector<8x64xf32>
    %55 = arith.mulf %50, %54 : vector<8x64xf32>
    %56 = tpu.concatenate %55, %26 in 1 : vector<8x64xf32>, vector<8x64xf32> -> vector<8x128xf32>
    %c0_33 = arith.constant 0 : index
    %c0_34 = arith.constant 0 : index
    %57 = vector.load %arg6[%c0_33, %c0_34] : memref<128x256xf32, #tpu.memory_space<vmem>>, vector<128x256xf32>
    %cst_35 = arith.constant dense<0.000000e+00> : vector<8x256xf32>
    %58 = tpu.matmul %56, %57, %cst_35 {dimension_numbers = #tpu.dot_dimension_numbers<[1], [0], [0], [1], [0, 0, 1, 1], [], []>} : vector<8x128xf32>, vector<128x256xf32>, vector<8x256xf32> -> vector<8x256xf32>
    %59 = arith.addf %58, %13 : vector<8x256xf32>
    %60 = vector.extract_strided_slice %59 {offsets = [0, 0], sizes = [8, 64], strides = [1, 1]} : vector<8x256xf32> to vector<8x64xf32>
    %61 = arith.negf %60 : vector<8x64xf32>
    %62 = math.exp %61 : vector<8x64xf32>
    %cst_36 = arith.constant 1.000000e+00 : f32
    %63 = vector.broadcast %cst_36 : f32 to vector<8x64xf32>
    %64 = arith.addf %63, %62 : vector<8x64xf32>
    %65 = arith.divf %63, %64 : vector<8x64xf32>
    %66 = vector.extract_strided_slice %59 {offsets = [0, 64], sizes = [8, 64], strides = [1, 1]} : vector<8x256xf32> to vector<8x64xf32>
    %67 = arith.negf %66 : vector<8x64xf32>
    %68 = math.exp %67 : vector<8x64xf32>
    %cst_37 = arith.constant 1.000000e+00 : f32
    %69 = vector.broadcast %cst_37 : f32 to vector<8x64xf32>
    %70 = arith.addf %69, %68 : vector<8x64xf32>
    %71 = arith.divf %69, %70 : vector<8x64xf32>
    %72 = vector.extract_strided_slice %59 {offsets = [0, 128], sizes = [8, 64], strides = [1, 1]} : vector<8x256xf32> to vector<8x64xf32>
    %73 = math.tanh %72 : vector<8x64xf32>
    %74 = vector.extract_strided_slice %59 {offsets = [0, 192], sizes = [8, 64], strides = [1, 1]} : vector<8x256xf32> to vector<8x64xf32>
    %75 = arith.negf %74 : vector<8x64xf32>
    %76 = math.exp %75 : vector<8x64xf32>
    %cst_38 = arith.constant 1.000000e+00 : f32
    %77 = vector.broadcast %cst_38 : f32 to vector<8x64xf32>
    %78 = arith.addf %77, %76 : vector<8x64xf32>
    %79 = arith.divf %77, %78 : vector<8x64xf32>
    %80 = arith.mulf %71, %26 : vector<8x64xf32>
    %81 = arith.mulf %65, %73 : vector<8x64xf32>
    %82 = arith.addf %80, %81 : vector<8x64xf32>
    %83 = math.tanh %82 : vector<8x64xf32>
    %84 = arith.mulf %79, %83 : vector<8x64xf32>
    %c0_39 = arith.constant 0 : index
    %c0_40 = arith.constant 0 : index
    %85 = vector.load %arg8[%c0_39, %c0_40] : memref<64x64xf32, #tpu.memory_space<vmem>>, vector<64x64xf32>
    %cst_41 = arith.constant dense<0.000000e+00> : vector<8x64xf32>
    %86 = tpu.matmul %84, %85, %cst_41 {dimension_numbers = #tpu.dot_dimension_numbers<[1], [0], [0], [1], [0, 0, 1, 1], [], []>} : vector<8x64xf32>, vector<64x64xf32>, vector<8x64xf32> -> vector<8x64xf32>
    %87 = arith.addf %86, %16 : vector<8x64xf32>
    %c0_42 = arith.constant 0 : index
    %c0_43 = arith.constant 0 : index
    %88 = vector.load %arg2[%c0_42, %c0_43] : memref<8x3xf32, #tpu.memory_space<vmem>>, vector<8x3xf32>
    %c1_i32 = arith.constant 1 : i32
    %c8_i32 = arith.constant 8 : i32
    %89 = arith.muli %c1_i32, %c8_i32 : i32
    %90 = tpu.assume_multiple %89, 8 : i32
    %c1_i32_44 = arith.constant 1 : i32
    %91 = arith.subi %c1_i32, %c1_i32_44 : i32
    %c8_i32_45 = arith.constant 8 : i32
    %92 = arith.muli %91, %c8_i32_45 : i32
    %93 = tpu.assume_multiple %92, 8 : i32
    %94 = arith.index_cast %90 : i32 to index
    %c0_46 = arith.constant 0 : index
    %95 = vector.load %arg19[%94, %c0_46] : memref<64x256xf32, #tpu.memory_space<vmem>>, vector<8x256xf32>
    %c0_47 = arith.constant 0 : index
    %c0_48 = arith.constant 0 : index
    %96 = vector.load %arg5[%c0_47, %c0_48] : memref<64x256xf32, #tpu.memory_space<vmem>>, vector<64x256xf32>
    %cst_49 = arith.constant dense<0.000000e+00> : vector<8x256xf32>
    %97 = tpu.matmul %55, %96, %cst_49 {dimension_numbers = #tpu.dot_dimension_numbers<[1], [0], [0], [1], [0, 0, 1, 1], [], []>} : vector<8x64xf32>, vector<64x256xf32>, vector<8x256xf32> -> vector<8x256xf32>
    %98 = arith.addf %95, %97 : vector<8x256xf32>
    %99 = vector.extract_strided_slice %98 {offsets = [0, 0], sizes = [8, 64], strides = [1, 1]} : vector<8x256xf32> to vector<8x64xf32>
    %100 = arith.negf %99 : vector<8x64xf32>
    %101 = math.exp %100 : vector<8x64xf32>
    %cst_50 = arith.constant 1.000000e+00 : f32
    %102 = vector.broadcast %cst_50 : f32 to vector<8x64xf32>
    %103 = arith.addf %102, %101 : vector<8x64xf32>
    %104 = arith.divf %102, %103 : vector<8x64xf32>
    %105 = vector.extract_strided_slice %98 {offsets = [0, 64], sizes = [8, 64], strides = [1, 1]} : vector<8x256xf32> to vector<8x64xf32>
    %106 = arith.negf %105 : vector<8x64xf32>
    %107 = math.exp %106 : vector<8x64xf32>
    %cst_51 = arith.constant 1.000000e+00 : f32
    %108 = vector.broadcast %cst_51 : f32 to vector<8x64xf32>
    %109 = arith.addf %108, %107 : vector<8x64xf32>
    %110 = arith.divf %108, %109 : vector<8x64xf32>
    %111 = vector.extract_strided_slice %98 {offsets = [0, 128], sizes = [8, 64], strides = [1, 1]} : vector<8x256xf32> to vector<8x64xf32>
    %112 = math.tanh %111 : vector<8x64xf32>
    %113 = vector.extract_strided_slice %98 {offsets = [0, 192], sizes = [8, 64], strides = [1, 1]} : vector<8x256xf32> to vector<8x64xf32>
    %114 = arith.negf %113 : vector<8x64xf32>
    %115 = math.exp %114 : vector<8x64xf32>
    %cst_52 = arith.constant 1.000000e+00 : f32
    %116 = vector.broadcast %cst_52 : f32 to vector<8x64xf32>
    %117 = arith.addf %116, %115 : vector<8x64xf32>
    %118 = arith.divf %116, %117 : vector<8x64xf32>
    %119 = arith.mulf %110, %53 : vector<8x64xf32>
    %120 = arith.mulf %104, %112 : vector<8x64xf32>
    %121 = arith.addf %119, %120 : vector<8x64xf32>
    %122 = math.tanh %121 : vector<8x64xf32>
    %123 = arith.mulf %118, %122 : vector<8x64xf32>
    %124 = tpu.concatenate %123, %84 in 1 : vector<8x64xf32>, vector<8x64xf32> -> vector<8x128xf32>
    %c0_53 = arith.constant 0 : index
    %c0_54 = arith.constant 0 : index
    %125 = vector.load %arg6[%c0_53, %c0_54] : memref<128x256xf32, #tpu.memory_space<vmem>>, vector<128x256xf32>
    %cst_55 = arith.constant dense<0.000000e+00> : vector<8x256xf32>
    %126 = tpu.matmul %124, %125, %cst_55 {dimension_numbers = #tpu.dot_dimension_numbers<[1], [0], [0], [1], [0, 0, 1, 1], [], []>} : vector<8x128xf32>, vector<128x256xf32>, vector<8x256xf32> -> vector<8x256xf32>
    %127 = arith.addf %126, %13 : vector<8x256xf32>
    %128 = vector.extract_strided_slice %127 {offsets = [0, 0], sizes = [8, 64], strides = [1, 1]} : vector<8x256xf32> to vector<8x64xf32>
    %129 = arith.negf %128 : vector<8x64xf32>
    %130 = math.exp %129 : vector<8x64xf32>
    %cst_56 = arith.constant 1.000000e+00 : f32
    %131 = vector.broadcast %cst_56 : f32 to vector<8x64xf32>
    %132 = arith.addf %131, %130 : vector<8x64xf32>
    %133 = arith.divf %131, %132 : vector<8x64xf32>
    %134 = vector.extract_strided_slice %127 {offsets = [0, 64], sizes = [8, 64], strides = [1, 1]} : vector<8x256xf32> to vector<8x64xf32>
    %135 = arith.negf %134 : vector<8x64xf32>
    %136 = math.exp %135 : vector<8x64xf32>
    %cst_57 = arith.constant 1.000000e+00 : f32
    %137 = vector.broadcast %cst_57 : f32 to vector<8x64xf32>
    %138 = arith.addf %137, %136 : vector<8x64xf32>
    %139 = arith.divf %137, %138 : vector<8x64xf32>
    %140 = vector.extract_strided_slice %127 {offsets = [0, 128], sizes = [8, 64], strides = [1, 1]} : vector<8x256xf32> to vector<8x64xf32>
    %141 = math.tanh %140 : vector<8x64xf32>
    %142 = vector.extract_strided_slice %127 {offsets = [0, 192], sizes = [8, 64], strides = [1, 1]} : vector<8x256xf32> to vector<8x64xf32>
    %143 = arith.negf %142 : vector<8x64xf32>
    %144 = math.exp %143 : vector<8x64xf32>
    %cst_58 = arith.constant 1.000000e+00 : f32
    %145 = vector.broadcast %cst_58 : f32 to vector<8x64xf32>
    %146 = arith.addf %145, %144 : vector<8x64xf32>
    %147 = arith.divf %145, %146 : vector<8x64xf32>
    %148 = arith.mulf %139, %82 : vector<8x64xf32>
    %149 = arith.mulf %133, %141 : vector<8x64xf32>
    %150 = arith.addf %148, %149 : vector<8x64xf32>
    %151 = math.tanh %150 : vector<8x64xf32>
    %152 = arith.mulf %147, %151 : vector<8x64xf32>
    %c0_59 = arith.constant 0 : index
    %c0_60 = arith.constant 0 : index
    %153 = vector.load %arg8[%c0_59, %c0_60] : memref<64x64xf32, #tpu.memory_space<vmem>>, vector<64x64xf32>
    %cst_61 = arith.constant dense<0.000000e+00> : vector<8x64xf32>
    %154 = tpu.matmul %152, %153, %cst_61 {dimension_numbers = #tpu.dot_dimension_numbers<[1], [0], [0], [1], [0, 0, 1, 1], [], []>} : vector<8x64xf32>, vector<64x64xf32>, vector<8x64xf32> -> vector<8x64xf32>
    %155 = arith.addf %154, %16 : vector<8x64xf32>
    %156 = arith.index_cast %93 : i32 to index
    %c0_62 = arith.constant 0 : index
    %157 = vector.load %arg20[%156, %c0_62] : memref<64x144xf32, #tpu.memory_space<vmem>>, vector<8x144xf32>
    %c0_63 = arith.constant 0 : index
    %c0_64 = arith.constant 0 : index
    %158 = vector.load %arg10[%c0_63, %c0_64] : memref<3x73xf32, #tpu.memory_space<vmem>>, vector<3x73xf32>
    %cst_65 = arith.constant dense<0.000000e+00> : vector<8x73xf32>
    %159 = tpu.matmul %88, %158, %cst_65 {dimension_numbers = #tpu.dot_dimension_numbers<[1], [0], [0], [1], [0, 0, 1, 1], [], []>} : vector<8x3xf32>, vector<3x73xf32>, vector<8x73xf32> -> vector<8x73xf32>
    %160 = vector.extract_strided_slice %159 {offsets = [0, 0], sizes = [8, 64], strides = [1, 1]} : vector<8x73xf32> to vector<8x64xf32>
    %161 = arith.addf %87, %160 : vector<8x64xf32>
    %c0_66 = arith.constant 0 : index
    %c0_67 = arith.constant 0 : index
    %162 = vector.load %arg11[%c0_66, %c0_67] : memref<64x64xf32, #tpu.memory_space<vmem>>, vector<64x64xf32>
    %cst_68 = arith.constant dense<0.000000e+00> : vector<8x64xf32>
    %163 = tpu.matmul %161, %162, %cst_68 {dimension_numbers = #tpu.dot_dimension_numbers<[1], [0], [0], [1], [0, 0, 1, 1], [], []>} : vector<8x64xf32>, vector<64x64xf32>, vector<8x64xf32> -> vector<8x64xf32>
    %164 = arith.mulf %161, %161 : vector<8x64xf32>
    %c0_69 = arith.constant 0 : index
    %c0_70 = arith.constant 0 : index
    %165 = vector.load %arg11[%c0_69, %c0_70] : memref<64x64xf32, #tpu.memory_space<vmem>>, vector<64x64xf32>
    %cst_71 = arith.constant dense<0.000000e+00> : vector<8x64xf32>
    %166 = tpu.matmul %164, %165, %cst_71 {dimension_numbers = #tpu.dot_dimension_numbers<[1], [0], [0], [1], [0, 0, 1, 1], [], []>} : vector<8x64xf32>, vector<64x64xf32>, vector<8x64xf32> -> vector<8x64xf32>
    %167 = arith.subf %161, %163 : vector<8x64xf32>
    %168 = arith.mulf %163, %163 : vector<8x64xf32>
    %169 = arith.subf %166, %168 : vector<8x64xf32>
    %cst_72 = arith.constant 9.99999974E-6 : f32
    %170 = vector.broadcast %cst_72 : f32 to vector<8x64xf32>
    %171 = arith.addf %169, %170 : vector<8x64xf32>
    %172 = math.rsqrt %171 : vector<8x64xf32>
    %173 = arith.mulf %167, %172 : vector<8x64xf32>
    %174 = arith.mulf %173, %19 : vector<8x64xf32>
    %175 = arith.addf %174, %22 : vector<8x64xf32>
    %cst_73 = arith.constant 0.000000e+00 : f32
    %176 = vector.broadcast %cst_73 : f32 to vector<8x64xf32>
    %177 = arith.cmpf oge, %175, %176 : vector<8x64xf32>
    %cst_74 = arith.constant 0.00999999977 : f32
    %178 = vector.broadcast %cst_74 : f32 to vector<8x64xf32>
    %179 = arith.mulf %178, %175 : vector<8x64xf32>
    %180 = arith.select %177, %175, %179 : vector<8x64xi1>, vector<8x64xf32>
    %c0_75 = arith.constant 0 : index
    %c0_76 = arith.constant 0 : index
    %181 = vector.load %arg14[%c0_75, %c0_76] : memref<64x153xf32, #tpu.memory_space<vmem>>, vector<64x153xf32>
    %cst_77 = arith.constant dense<0.000000e+00> : vector<8x153xf32>
    %182 = tpu.matmul %180, %181, %cst_77 {dimension_numbers = #tpu.dot_dimension_numbers<[1], [0], [0], [1], [0, 0, 1, 1], [], []>} : vector<8x64xf32>, vector<64x153xf32>, vector<8x153xf32> -> vector<8x153xf32>
    %183 = arith.addf %182, %25 : vector<8x153xf32>
    %184 = math.tanh %183 : vector<8x153xf32>
    %185 = vector.extract_strided_slice %159 {offsets = [0, 64], sizes = [8, 9], strides = [1, 1]} : vector<8x73xf32> to vector<8x9xf32>
    %186 = tpu.concatenate %185, %157 in 1 : vector<8x9xf32>, vector<8x144xf32> -> vector<8x153xf32>
    %187 = arith.mulf %184, %186 : vector<8x153xf32>
    %c0_78 = arith.constant 0 : index
    %c0_79 = arith.constant 0 : index
    %188 = vector.load %arg17[%c0_78, %c0_79] : memref<153x3xf32, #tpu.memory_space<vmem>>, vector<153x3xf32>
    %cst_80 = arith.constant dense<0.000000e+00> : vector<8x3xf32>
    %189 = tpu.matmul %187, %188, %cst_80 {dimension_numbers = #tpu.dot_dimension_numbers<[1], [0], [0], [1], [0, 0, 1, 1], [], []>} : vector<8x153xf32>, vector<153x3xf32>, vector<8x3xf32> -> vector<8x3xf32>
    %190 = arith.index_cast %93 : i32 to index
    %c0_81 = arith.constant 0 : index
    %191 = vector.load %arg18[%190, %c0_81] : memref<64x3xf32, #tpu.memory_space<vmem>>, vector<8x3xf32>
    tpu.vector_store %arg18[%190, %c0_81], %189 {strides = array<i32>} : memref<64x3xf32, #tpu.memory_space<vmem>>, vector<8x3xf32>,
    %c2_i32 = arith.constant 2 : i32
    %c8_i32_82 = arith.constant 8 : i32
    %192 = arith.muli %c2_i32, %c8_i32_82 : i32
    %193 = tpu.assume_multiple %192, 8 : i32
    %c1_i32_83 = arith.constant 1 : i32
    %194 = arith.subi %c2_i32, %c1_i32_83 : i32
    %c8_i32_84 = arith.constant 8 : i32
    %195 = arith.muli %194, %c8_i32_84 : i32
    %196 = tpu.assume_multiple %195, 8 : i32
    %197 = arith.index_cast %193 : i32 to index
    %c0_85 = arith.constant 0 : index
    %198 = vector.load %arg19[%197, %c0_85] : memref<64x256xf32, #tpu.memory_space<vmem>>, vector<8x256xf32>
    %c0_86 = arith.constant 0 : index
    %c0_87 = arith.constant 0 : index
    %199 = vector.load %arg5[%c0_86, %c0_87] : memref<64x256xf32, #tpu.memory_space<vmem>>, vector<64x256xf32>
    %cst_88 = arith.constant dense<0.000000e+00> : vector<8x256xf32>
    %200 = tpu.matmul %123, %199, %cst_88 {dimension_numbers = #tpu.dot_dimension_numbers<[1], [0], [0], [1], [0, 0, 1, 1], [], []>} : vector<8x64xf32>, vector<64x256xf32>, vector<8x256xf32> -> vector<8x256xf32>
    %201 = arith.addf %198, %200 : vector<8x256xf32>
    %202 = vector.extract_strided_slice %201 {offsets = [0, 0], sizes = [8, 64], strides = [1, 1]} : vector<8x256xf32> to vector<8x64xf32>
    %203 = arith.negf %202 : vector<8x64xf32>
    %204 = math.exp %203 : vector<8x64xf32>
    %cst_89 = arith.constant 1.000000e+00 : f32
    %205 = vector.broadcast %cst_89 : f32 to vector<8x64xf32>
    %206 = arith.addf %205, %204 : vector<8x64xf32>
    %207 = arith.divf %205, %206 : vector<8x64xf32>
    %208 = vector.extract_strided_slice %201 {offsets = [0, 64], sizes = [8, 64], strides = [1, 1]} : vector<8x256xf32> to vector<8x64xf32>
    %209 = arith.negf %208 : vector<8x64xf32>
    %210 = math.exp %209 : vector<8x64xf32>
    %cst_90 = arith.constant 1.000000e+00 : f32
    %211 = vector.broadcast %cst_90 : f32 to vector<8x64xf32>
    %212 = arith.addf %211, %210 : vector<8x64xf32>
    %213 = arith.divf %211, %212 : vector<8x64xf32>
    %214 = vector.extract_strided_slice %201 {offsets = [0, 128], sizes = [8, 64], strides = [1, 1]} : vector<8x256xf32> to vector<8x64xf32>
    %215 = math.tanh %214 : vector<8x64xf32>
    %216 = vector.extract_strided_slice %201 {offsets = [0, 192], sizes = [8, 64], strides = [1, 1]} : vector<8x256xf32> to vector<8x64xf32>
    %217 = arith.negf %216 : vector<8x64xf32>
    %218 = math.exp %217 : vector<8x64xf32>
    %cst_91 = arith.constant 1.000000e+00 : f32
    %219 = vector.broadcast %cst_91 : f32 to vector<8x64xf32>
    %220 = arith.addf %219, %218 : vector<8x64xf32>
    %221 = arith.divf %219, %220 : vector<8x64xf32>
    %222 = arith.mulf %213, %121 : vector<8x64xf32>
    %223 = arith.mulf %207, %215 : vector<8x64xf32>
    %224 = arith.addf %222, %223 : vector<8x64xf32>
    %225 = math.tanh %224 : vector<8x64xf32>
    %226 = arith.mulf %221, %225 : vector<8x64xf32>
    %227 = tpu.concatenate %226, %152 in 1 : vector<8x64xf32>, vector<8x64xf32> -> vector<8x128xf32>
    %c0_92 = arith.constant 0 : index
    %c0_93 = arith.constant 0 : index
    %228 = vector.load %arg6[%c0_92, %c0_93] : memref<128x256xf32, #tpu.memory_space<vmem>>, vector<128x256xf32>
    %cst_94 = arith.constant dense<0.000000e+00> : vector<8x256xf32>
    %229 = tpu.matmul %227, %228, %cst_94 {dimension_numbers = #tpu.dot_dimension_numbers<[1], [0], [0], [1], [0, 0, 1, 1], [], []>} : vector<8x128xf32>, vector<128x256xf32>, vector<8x256xf32> -> vector<8x256xf32>
    %230 = arith.addf %229, %13 : vector<8x256xf32>
    %231 = vector.extract_strided_slice %230 {offsets = [0, 0], sizes = [8, 64], strides = [1, 1]} : vector<8x256xf32> to vector<8x64xf32>
    %232 = arith.negf %231 : vector<8x64xf32>
    %233 = math.exp %232 : vector<8x64xf32>
    %cst_95 = arith.constant 1.000000e+00 : f32
    %234 = vector.broadcast %cst_95 : f32 to vector<8x64xf32>
    %235 = arith.addf %234, %233 : vector<8x64xf32>
    %236 = arith.divf %234, %235 : vector<8x64xf32>
    %237 = vector.extract_strided_slice %230 {offsets = [0, 64], sizes = [8, 64], strides = [1, 1]} : vector<8x256xf32> to vector<8x64xf32>
    %238 = arith.negf %237 : vector<8x64xf32>
    %239 = math.exp %238 : vector<8x64xf32>
    %cst_96 = arith.constant 1.000000e+00 : f32
    %240 = vector.broadcast %cst_96 : f32 to vector<8x64xf32>
    %241 = arith.addf %240, %239 : vector<8x64xf32>
    %242 = arith.divf %240, %241 : vector<8x64xf32>
    %243 = vector.extract_strided_slice %230 {offsets = [0, 128], sizes = [8, 64], strides = [1, 1]} : vector<8x256xf32> to vector<8x64xf32>
    %244 = math.tanh %243 : vector<8x64xf32>
    %245 = vector.extract_strided_slice %230 {offsets = [0, 192], sizes = [8, 64], strides = [1, 1]} : vector<8x256xf32> to vector<8x64xf32>
    %246 = arith.negf %245 : vector<8x64xf32>
    %247 = math.exp %246 : vector<8x64xf32>
    %cst_97 = arith.constant 1.000000e+00 : f32
    %248 = vector.broadcast %cst_97 : f32 to vector<8x64xf32>
    %249 = arith.addf %248, %247 : vector<8x64xf32>
    %250 = arith.divf %248, %249 : vector<8x64xf32>
    %251 = arith.mulf %242, %150 : vector<8x64xf32>
    %252 = arith.mulf %236, %244 : vector<8x64xf32>
    %253 = arith.addf %251, %252 : vector<8x64xf32>
    %254 = math.tanh %253 : vector<8x64xf32>
    %255 = arith.mulf %250, %254 : vector<8x64xf32>
    %c0_98 = arith.constant 0 : index
    %c0_99 = arith.constant 0 : index
    %256 = vector.load %arg8[%c0_98, %c0_99] : memref<64x64xf32, #tpu.memory_space<vmem>>, vector<64x64xf32>
    %cst_100 = arith.constant dense<0.000000e+00> : vector<8x64xf32>
    %257 = tpu.matmul %255, %256, %cst_100 {dimension_numbers = #tpu.dot_dimension_numbers<[1], [0], [0], [1], [0, 0, 1, 1], [], []>} : vector<8x64xf32>, vector<64x64xf32>, vector<8x64xf32> -> vector<8x64xf32>
    %258 = arith.addf %257, %16 : vector<8x64xf32>
    %259 = arith.index_cast %196 : i32 to index
    %c0_101 = arith.constant 0 : index
    %260 = vector.load %arg20[%259, %c0_101] : memref<64x144xf32, #tpu.memory_space<vmem>>, vector<8x144xf32>
    %c0_102 = arith.constant 0 : index
    %c0_103 = arith.constant 0 : index
    %261 = vector.load %arg10[%c0_102, %c0_103] : memref<3x73xf32, #tpu.memory_space<vmem>>, vector<3x73xf32>
    %cst_104 = arith.constant dense<0.000000e+00> : vector<8x73xf32>
    %262 = tpu.matmul %189, %261, %cst_104 {dimension_numbers = #tpu.dot_dimension_numbers<[1], [0], [0], [1], [0, 0, 1, 1], [], []>} : vector<8x3xf32>, vector<3x73xf32>, vector<8x73xf32> -> vector<8x73xf32>
    %263 = vector.extract_strided_slice %262 {offsets = [0, 0], sizes = [8, 64], strides = [1, 1]} : vector<8x73xf32> to vector<8x64xf32>
    %264 = arith.addf %155, %263 : vector<8x64xf32>
    %c0_105 = arith.constant 0 : index
    %c0_106 = arith.constant 0 : index
    %265 = vector.load %arg11[%c0_105, %c0_106] : memref<64x64xf32, #tpu.memory_space<vmem>>, vector<64x64xf32>
    %cst_107 = arith.constant dense<0.000000e+00> : vector<8x64xf32>
    %266 = tpu.matmul %264, %265, %cst_107 {dimension_numbers = #tpu.dot_dimension_numbers<[1], [0], [0], [1], [0, 0, 1, 1], [], []>} : vector<8x64xf32>, vector<64x64xf32>, vector<8x64xf32> -> vector<8x64xf32>
    %267 = arith.mulf %264, %264 : vector<8x64xf32>
    %c0_108 = arith.constant 0 : index
    %c0_109 = arith.constant 0 : index
    %268 = vector.load %arg11[%c0_108, %c0_109] : memref<64x64xf32, #tpu.memory_space<vmem>>, vector<64x64xf32>
    %cst_110 = arith.constant dense<0.000000e+00> : vector<8x64xf32>
    %269 = tpu.matmul %267, %268, %cst_110 {dimension_numbers = #tpu.dot_dimension_numbers<[1], [0], [0], [1], [0, 0, 1, 1], [], []>} : vector<8x64xf32>, vector<64x64xf32>, vector<8x64xf32> -> vector<8x64xf32>
    %270 = arith.subf %264, %266 : vector<8x64xf32>
    %271 = arith.mulf %266, %266 : vector<8x64xf32>
    %272 = arith.subf %269, %271 : vector<8x64xf32>
    %cst_111 = arith.constant 9.99999974E-6 : f32
    %273 = vector.broadcast %cst_111 : f32 to vector<8x64xf32>
    %274 = arith.addf %272, %273 : vector<8x64xf32>
    %275 = math.rsqrt %274 : vector<8x64xf32>
    %276 = arith.mulf %270, %275 : vector<8x64xf32>
    %277 = arith.mulf %276, %19 : vector<8x64xf32>
    %278 = arith.addf %277, %22 : vector<8x64xf32>
    %cst_112 = arith.constant 0.000000e+00 : f32
    %279 = vector.broadcast %cst_112 : f32 to vector<8x64xf32>
    %280 = arith.cmpf oge, %278, %279 : vector<8x64xf32>
    %cst_113 = arith.constant 0.00999999977 : f32
    %281 = vector.broadcast %cst_113 : f32 to vector<8x64xf32>
    %282 = arith.mulf %281, %278 : vector<8x64xf32>
    %283 = arith.select %280, %278, %282 : vector<8x64xi1>, vector<8x64xf32>
    %c0_114 = arith.constant 0 : index
    %c0_115 = arith.constant 0 : index
    %284 = vector.load %arg14[%c0_114, %c0_115] : memref<64x153xf32, #tpu.memory_space<vmem>>, vector<64x153xf32>
    %cst_116 = arith.constant dense<0.000000e+00> : vector<8x153xf32>
    %285 = tpu.matmul %283, %284, %cst_116 {dimension_numbers = #tpu.dot_dimension_numbers<[1], [0], [0], [1], [0, 0, 1, 1], [], []>} : vector<8x64xf32>, vector<64x153xf32>, vector<8x153xf32> -> vector<8x153xf32>
    %286 = arith.addf %285, %25 : vector<8x153xf32>
    %287 = math.tanh %286 : vector<8x153xf32>
    %288 = vector.extract_strided_slice %262 {offsets = [0, 64], sizes = [8, 9], strides = [1, 1]} : vector<8x73xf32> to vector<8x9xf32>
    %289 = tpu.concatenate %288, %260 in 1 : vector<8x9xf32>, vector<8x144xf32> -> vector<8x153xf32>
    %290 = arith.mulf %287, %289 : vector<8x153xf32>
    %c0_117 = arith.constant 0 : index
    %c0_118 = arith.constant 0 : index
    %291 = vector.load %arg17[%c0_117, %c0_118] : memref<153x3xf32, #tpu.memory_space<vmem>>, vector<153x3xf32>
    %cst_119 = arith.constant dense<0.000000e+00> : vector<8x3xf32>
    %292 = tpu.matmul %290, %291, %cst_119 {dimension_numbers = #tpu.dot_dimension_numbers<[1], [0], [0], [1], [0, 0, 1, 1], [], []>} : vector<8x153xf32>, vector<153x3xf32>, vector<8x3xf32> -> vector<8x3xf32>
    %293 = arith.index_cast %196 : i32 to index
    %c0_120 = arith.constant 0 : index
    %294 = vector.load %arg18[%293, %c0_120] : memref<64x3xf32, #tpu.memory_space<vmem>>, vector<8x3xf32>
    tpu.vector_store %arg18[%293, %c0_120], %292 {strides = array<i32>} : memref<64x3xf32, #tpu.memory_space<vmem>>, vector<8x3xf32>,
    %c3_i32 = arith.constant 3 : i32
    %c8_i32_121 = arith.constant 8 : i32
    %295 = arith.muli %c3_i32, %c8_i32_121 : i32
    %296 = tpu.assume_multiple %295, 8 : i32
    %c1_i32_122 = arith.constant 1 : i32
    %297 = arith.subi %c3_i32, %c1_i32_122 : i32
    %c8_i32_123 = arith.constant 8 : i32
    %298 = arith.muli %297, %c8_i32_123 : i32
    %299 = tpu.assume_multiple %298, 8 : i32
    %300 = arith.index_cast %296 : i32 to index
    %c0_124 = arith.constant 0 : index
    %301 = vector.load %arg19[%300, %c0_124] : memref<64x256xf32, #tpu.memory_space<vmem>>, vector<8x256xf32>
    %c0_125 = arith.constant 0 : index
    %c0_126 = arith.constant 0 : index
    %302 = vector.load %arg5[%c0_125, %c0_126] : memref<64x256xf32, #tpu.memory_space<vmem>>, vector<64x256xf32>
    %cst_127 = arith.constant dense<0.000000e+00> : vector<8x256xf32>
    %303 = tpu.matmul %226, %302, %cst_127 {dimension_numbers = #tpu.dot_dimension_numbers<[1], [0], [0], [1], [0, 0, 1, 1], [], []>} : vector<8x64xf32>, vector<64x256xf32>, vector<8x256xf32> -> vector<8x256xf32>
    %304 = arith.addf %301, %303 : vector<8x256xf32>
    %305 = vector.extract_strided_slice %304 {offsets = [0, 0], sizes = [8, 64], strides = [1, 1]} : vector<8x256xf32> to vector<8x64xf32>
    %306 = arith.negf %305 : vector<8x64xf32>
    %307 = math.exp %306 : vector<8x64xf32>
    %cst_128 = arith.constant 1.000000e+00 : f32
    %308 = vector.broadcast %cst_128 : f32 to vector<8x64xf32>
    %309 = arith.addf %308, %307 : vector<8x64xf32>
    %310 = arith.divf %308, %309 : vector<8x64xf32>
    %311 = vector.extract_strided_slice %304 {offsets = [0, 64], sizes = [8, 64], strides = [1, 1]} : vector<8x256xf32> to vector<8x64xf32>
    %312 = arith.negf %311 : vector<8x64xf32>
    %313 = math.exp %312 : vector<8x64xf32>
    %cst_129 = arith.constant 1.000000e+00 : f32
    %314 = vector.broadcast %cst_129 : f32 to vector<8x64xf32>
    %315 = arith.addf %314, %313 : vector<8x64xf32>
    %316 = arith.divf %314, %315 : vector<8x64xf32>
    %317 = vector.extract_strided_slice %304 {offsets = [0, 128], sizes = [8, 64], strides = [1, 1]} : vector<8x256xf32> to vector<8x64xf32>
    %318 = math.tanh %317 : vector<8x64xf32>
    %319 = vector.extract_strided_slice %304 {offsets = [0, 192], sizes = [8, 64], strides = [1, 1]} : vector<8x256xf32> to vector<8x64xf32>
    %320 = arith.negf %319 : vector<8x64xf32>
    %321 = math.exp %320 : vector<8x64xf32>
    %cst_130 = arith.constant 1.000000e+00 : f32
    %322 = vector.broadcast %cst_130 : f32 to vector<8x64xf32>
    %323 = arith.addf %322, %321 : vector<8x64xf32>
    %324 = arith.divf %322, %323 : vector<8x64xf32>
    %325 = arith.mulf %316, %224 : vector<8x64xf32>
    %326 = arith.mulf %310, %318 : vector<8x64xf32>
    %327 = arith.addf %325, %326 : vector<8x64xf32>
    %328 = math.tanh %327 : vector<8x64xf32>
    %329 = arith.mulf %324, %328 : vector<8x64xf32>
    %330 = tpu.concatenate %329, %255 in 1 : vector<8x64xf32>, vector<8x64xf32> -> vector<8x128xf32>
    %c0_131 = arith.constant 0 : index
    %c0_132 = arith.constant 0 : index
    %331 = vector.load %arg6[%c0_131, %c0_132] : memref<128x256xf32, #tpu.memory_space<vmem>>, vector<128x256xf32>
    %cst_133 = arith.constant dense<0.000000e+00> : vector<8x256xf32>
    %332 = tpu.matmul %330, %331, %cst_133 {dimension_numbers = #tpu.dot_dimension_numbers<[1], [0], [0], [1], [0, 0, 1, 1], [], []>} : vector<8x128xf32>, vector<128x256xf32>, vector<8x256xf32> -> vector<8x256xf32>
    %333 = arith.addf %332, %13 : vector<8x256xf32>
    %334 = vector.extract_strided_slice %333 {offsets = [0, 0], sizes = [8, 64], strides = [1, 1]} : vector<8x256xf32> to vector<8x64xf32>
    %335 = arith.negf %334 : vector<8x64xf32>
    %336 = math.exp %335 : vector<8x64xf32>
    %cst_134 = arith.constant 1.000000e+00 : f32
    %337 = vector.broadcast %cst_134 : f32 to vector<8x64xf32>
    %338 = arith.addf %337, %336 : vector<8x64xf32>
    %339 = arith.divf %337, %338 : vector<8x64xf32>
    %340 = vector.extract_strided_slice %333 {offsets = [0, 64], sizes = [8, 64], strides = [1, 1]} : vector<8x256xf32> to vector<8x64xf32>
    %341 = arith.negf %340 : vector<8x64xf32>
    %342 = math.exp %341 : vector<8x64xf32>
    %cst_135 = arith.constant 1.000000e+00 : f32
    %343 = vector.broadcast %cst_135 : f32 to vector<8x64xf32>
    %344 = arith.addf %343, %342 : vector<8x64xf32>
    %345 = arith.divf %343, %344 : vector<8x64xf32>
    %346 = vector.extract_strided_slice %333 {offsets = [0, 128], sizes = [8, 64], strides = [1, 1]} : vector<8x256xf32> to vector<8x64xf32>
    %347 = math.tanh %346 : vector<8x64xf32>
    %348 = vector.extract_strided_slice %333 {offsets = [0, 192], sizes = [8, 64], strides = [1, 1]} : vector<8x256xf32> to vector<8x64xf32>
    %349 = arith.negf %348 : vector<8x64xf32>
    %350 = math.exp %349 : vector<8x64xf32>
    %cst_136 = arith.constant 1.000000e+00 : f32
    %351 = vector.broadcast %cst_136 : f32 to vector<8x64xf32>
    %352 = arith.addf %351, %350 : vector<8x64xf32>
    %353 = arith.divf %351, %352 : vector<8x64xf32>
    %354 = arith.mulf %345, %253 : vector<8x64xf32>
    %355 = arith.mulf %339, %347 : vector<8x64xf32>
    %356 = arith.addf %354, %355 : vector<8x64xf32>
    %357 = math.tanh %356 : vector<8x64xf32>
    %358 = arith.mulf %353, %357 : vector<8x64xf32>
    %c0_137 = arith.constant 0 : index
    %c0_138 = arith.constant 0 : index
    %359 = vector.load %arg8[%c0_137, %c0_138] : memref<64x64xf32, #tpu.memory_space<vmem>>, vector<64x64xf32>
    %cst_139 = arith.constant dense<0.000000e+00> : vector<8x64xf32>
    %360 = tpu.matmul %358, %359, %cst_139 {dimension_numbers = #tpu.dot_dimension_numbers<[1], [0], [0], [1], [0, 0, 1, 1], [], []>} : vector<8x64xf32>, vector<64x64xf32>, vector<8x64xf32> -> vector<8x64xf32>
    %361 = arith.addf %360, %16 : vector<8x64xf32>
    %362 = arith.index_cast %299 : i32 to index
    %c0_140 = arith.constant 0 : index
    %363 = vector.load %arg20[%362, %c0_140] : memref<64x144xf32, #tpu.memory_space<vmem>>, vector<8x144xf32>
    %c0_141 = arith.constant 0 : index
    %c0_142 = arith.constant 0 : index
    %364 = vector.load %arg10[%c0_141, %c0_142] : memref<3x73xf32, #tpu.memory_space<vmem>>, vector<3x73xf32>
    %cst_143 = arith.constant dense<0.000000e+00> : vector<8x73xf32>
    %365 = tpu.matmul %292, %364, %cst_143 {dimension_numbers = #tpu.dot_dimension_numbers<[1], [0], [0], [1], [0, 0, 1, 1], [], []>} : vector<8x3xf32>, vector<3x73xf32>, vector<8x73xf32> -> vector<8x73xf32>
    %366 = vector.extract_strided_slice %365 {offsets = [0, 0], sizes = [8, 64], strides = [1, 1]} : vector<8x73xf32> to vector<8x64xf32>
    %367 = arith.addf %258, %366 : vector<8x64xf32>
    %c0_144 = arith.constant 0 : index
    %c0_145 = arith.constant 0 : index
    %368 = vector.load %arg11[%c0_144, %c0_145] : memref<64x64xf32, #tpu.memory_space<vmem>>, vector<64x64xf32>
    %cst_146 = arith.constant dense<0.000000e+00> : vector<8x64xf32>
    %369 = tpu.matmul %367, %368, %cst_146 {dimension_numbers = #tpu.dot_dimension_numbers<[1], [0], [0], [1], [0, 0, 1, 1], [], []>} : vector<8x64xf32>, vector<64x64xf32>, vector<8x64xf32> -> vector<8x64xf32>
    %370 = arith.mulf %367, %367 : vector<8x64xf32>
    %c0_147 = arith.constant 0 : index
    %c0_148 = arith.constant 0 : index
    %371 = vector.load %arg11[%c0_147, %c0_148] : memref<64x64xf32, #tpu.memory_space<vmem>>, vector<64x64xf32>
    %cst_149 = arith.constant dense<0.000000e+00> : vector<8x64xf32>
    %372 = tpu.matmul %370, %371, %cst_149 {dimension_numbers = #tpu.dot_dimension_numbers<[1], [0], [0], [1], [0, 0, 1, 1], [], []>} : vector<8x64xf32>, vector<64x64xf32>, vector<8x64xf32> -> vector<8x64xf32>
    %373 = arith.subf %367, %369 : vector<8x64xf32>
    %374 = arith.mulf %369, %369 : vector<8x64xf32>
    %375 = arith.subf %372, %374 : vector<8x64xf32>
    %cst_150 = arith.constant 9.99999974E-6 : f32
    %376 = vector.broadcast %cst_150 : f32 to vector<8x64xf32>
    %377 = arith.addf %375, %376 : vector<8x64xf32>
    %378 = math.rsqrt %377 : vector<8x64xf32>
    %379 = arith.mulf %373, %378 : vector<8x64xf32>
    %380 = arith.mulf %379, %19 : vector<8x64xf32>
    %381 = arith.addf %380, %22 : vector<8x64xf32>
    %cst_151 = arith.constant 0.000000e+00 : f32
    %382 = vector.broadcast %cst_151 : f32 to vector<8x64xf32>
    %383 = arith.cmpf oge, %381, %382 : vector<8x64xf32>
    %cst_152 = arith.constant 0.00999999977 : f32
    %384 = vector.broadcast %cst_152 : f32 to vector<8x64xf32>
    %385 = arith.mulf %384, %381 : vector<8x64xf32>
    %386 = arith.select %383, %381, %385 : vector<8x64xi1>, vector<8x64xf32>
    %c0_153 = arith.constant 0 : index
    %c0_154 = arith.constant 0 : index
    %387 = vector.load %arg14[%c0_153, %c0_154] : memref<64x153xf32, #tpu.memory_space<vmem>>, vector<64x153xf32>
    %cst_155 = arith.constant dense<0.000000e+00> : vector<8x153xf32>
    %388 = tpu.matmul %386, %387, %cst_155 {dimension_numbers = #tpu.dot_dimension_numbers<[1], [0], [0], [1], [0, 0, 1, 1], [], []>} : vector<8x64xf32>, vector<64x153xf32>, vector<8x153xf32> -> vector<8x153xf32>
    %389 = arith.addf %388, %25 : vector<8x153xf32>
    %390 = math.tanh %389 : vector<8x153xf32>
    %391 = vector.extract_strided_slice %365 {offsets = [0, 64], sizes = [8, 9], strides = [1, 1]} : vector<8x73xf32> to vector<8x9xf32>
    %392 = tpu.concatenate %391, %363 in 1 : vector<8x9xf32>, vector<8x144xf32> -> vector<8x153xf32>
    %393 = arith.mulf %390, %392 : vector<8x153xf32>
    %c0_156 = arith.constant 0 : index
    %c0_157 = arith.constant 0 : index
    %394 = vector.load %arg17[%c0_156, %c0_157] : memref<153x3xf32, #tpu.memory_space<vmem>>, vector<153x3xf32>
    %cst_158 = arith.constant dense<0.000000e+00> : vector<8x3xf32>
    %395 = tpu.matmul %393, %394, %cst_158 {dimension_numbers = #tpu.dot_dimension_numbers<[1], [0], [0], [1], [0, 0, 1, 1], [], []>} : vector<8x153xf32>, vector<153x3xf32>, vector<8x3xf32> -> vector<8x3xf32>
    %396 = arith.index_cast %299 : i32 to index
    %c0_159 = arith.constant 0 : index
    %397 = vector.load %arg18[%396, %c0_159] : memref<64x3xf32, #tpu.memory_space<vmem>>, vector<8x3xf32>
    tpu.vector_store %arg18[%396, %c0_159], %395 {strides = array<i32>} : memref<64x3xf32, #tpu.memory_space<vmem>>, vector<8x3xf32>,
    %c4_i32 = arith.constant 4 : i32
    %c8_i32_160 = arith.constant 8 : i32
    %398 = arith.muli %c4_i32, %c8_i32_160 : i32
    %399 = tpu.assume_multiple %398, 8 : i32
    %c1_i32_161 = arith.constant 1 : i32
    %400 = arith.subi %c4_i32, %c1_i32_161 : i32
    %c8_i32_162 = arith.constant 8 : i32
    %401 = arith.muli %400, %c8_i32_162 : i32
    %402 = tpu.assume_multiple %401, 8 : i32
    %403 = arith.index_cast %399 : i32 to index
    %c0_163 = arith.constant 0 : index
    %404 = vector.load %arg19[%403, %c0_163] : memref<64x256xf32, #tpu.memory_space<vmem>>, vector<8x256xf32>
    %c0_164 = arith.constant 0 : index
    %c0_165 = arith.constant 0 : index
    %405 = vector.load %arg5[%c0_164, %c0_165] : memref<64x256xf32, #tpu.memory_space<vmem>>, vector<64x256xf32>
    %cst_166 = arith.constant dense<0.000000e+00> : vector<8x256xf32>
    %406 = tpu.matmul %329, %405, %cst_166 {dimension_numbers = #tpu.dot_dimension_numbers<[1], [0], [0], [1], [0, 0, 1, 1], [], []>} : vector<8x64xf32>, vector<64x256xf32>, vector<8x256xf32> -> vector<8x256xf32>
    %407 = arith.addf %404, %406 : vector<8x256xf32>
    %408 = vector.extract_strided_slice %407 {offsets = [0, 0], sizes = [8, 64], strides = [1, 1]} : vector<8x256xf32> to vector<8x64xf32>
    %409 = arith.negf %408 : vector<8x64xf32>
    %410 = math.exp %409 : vector<8x64xf32>
    %cst_167 = arith.constant 1.000000e+00 : f32
    %411 = vector.broadcast %cst_167 : f32 to vector<8x64xf32>
    %412 = arith.addf %411, %410 : vector<8x64xf32>
    %413 = arith.divf %411, %412 : vector<8x64xf32>
    %414 = vector.extract_strided_slice %407 {offsets = [0, 64], sizes = [8, 64], strides = [1, 1]} : vector<8x256xf32> to vector<8x64xf32>
    %415 = arith.negf %414 : vector<8x64xf32>
    %416 = math.exp %415 : vector<8x64xf32>
    %cst_168 = arith.constant 1.000000e+00 : f32
    %417 = vector.broadcast %cst_168 : f32 to vector<8x64xf32>
    %418 = arith.addf %417, %416 : vector<8x64xf32>
    %419 = arith.divf %417, %418 : vector<8x64xf32>
    %420 = vector.extract_strided_slice %407 {offsets = [0, 128], sizes = [8, 64], strides = [1, 1]} : vector<8x256xf32> to vector<8x64xf32>
    %421 = math.tanh %420 : vector<8x64xf32>
    %422 = vector.extract_strided_slice %407 {offsets = [0, 192], sizes = [8, 64], strides = [1, 1]} : vector<8x256xf32> to vector<8x64xf32>
    %423 = arith.negf %422 : vector<8x64xf32>
    %424 = math.exp %423 : vector<8x64xf32>
    %cst_169 = arith.constant 1.000000e+00 : f32
    %425 = vector.broadcast %cst_169 : f32 to vector<8x64xf32>
    %426 = arith.addf %425, %424 : vector<8x64xf32>
    %427 = arith.divf %425, %426 : vector<8x64xf32>
    %428 = arith.mulf %419, %327 : vector<8x64xf32>
    %429 = arith.mulf %413, %421 : vector<8x64xf32>
    %430 = arith.addf %428, %429 : vector<8x64xf32>
    %431 = math.tanh %430 : vector<8x64xf32>
    %432 = arith.mulf %427, %431 : vector<8x64xf32>
    %433 = tpu.concatenate %432, %358 in 1 : vector<8x64xf32>, vector<8x64xf32> -> vector<8x128xf32>
    %c0_170 = arith.constant 0 : index
    %c0_171 = arith.constant 0 : index
    %434 = vector.load %arg6[%c0_170, %c0_171] : memref<128x256xf32, #tpu.memory_space<vmem>>, vector<128x256xf32>
    %cst_172 = arith.constant dense<0.000000e+00> : vector<8x256xf32>
    %435 = tpu.matmul %433, %434, %cst_172 {dimension_numbers = #tpu.dot_dimension_numbers<[1], [0], [0], [1], [0, 0, 1, 1], [], []>} : vector<8x128xf32>, vector<128x256xf32>, vector<8x256xf32> -> vector<8x256xf32>
    %436 = arith.addf %435, %13 : vector<8x256xf32>
    %437 = vector.extract_strided_slice %436 {offsets = [0, 0], sizes = [8, 64], strides = [1, 1]} : vector<8x256xf32> to vector<8x64xf32>
    %438 = arith.negf %437 : vector<8x64xf32>
    %439 = math.exp %438 : vector<8x64xf32>
    %cst_173 = arith.constant 1.000000e+00 : f32
    %440 = vector.broadcast %cst_173 : f32 to vector<8x64xf32>
    %441 = arith.addf %440, %439 : vector<8x64xf32>
    %442 = arith.divf %440, %441 : vector<8x64xf32>
    %443 = vector.extract_strided_slice %436 {offsets = [0, 64], sizes = [8, 64], strides = [1, 1]} : vector<8x256xf32> to vector<8x64xf32>
    %444 = arith.negf %443 : vector<8x64xf32>
    %445 = math.exp %444 : vector<8x64xf32>
    %cst_174 = arith.constant 1.000000e+00 : f32
    %446 = vector.broadcast %cst_174 : f32 to vector<8x64xf32>
    %447 = arith.addf %446, %445 : vector<8x64xf32>
    %448 = arith.divf %446, %447 : vector<8x64xf32>
    %449 = vector.extract_strided_slice %436 {offsets = [0, 128], sizes = [8, 64], strides = [1, 1]} : vector<8x256xf32> to vector<8x64xf32>
    %450 = math.tanh %449 : vector<8x64xf32>
    %451 = vector.extract_strided_slice %436 {offsets = [0, 192], sizes = [8, 64], strides = [1, 1]} : vector<8x256xf32> to vector<8x64xf32>
    %452 = arith.negf %451 : vector<8x64xf32>
    %453 = math.exp %452 : vector<8x64xf32>
    %cst_175 = arith.constant 1.000000e+00 : f32
    %454 = vector.broadcast %cst_175 : f32 to vector<8x64xf32>
    %455 = arith.addf %454, %453 : vector<8x64xf32>
    %456 = arith.divf %454, %455 : vector<8x64xf32>
    %457 = arith.mulf %448, %356 : vector<8x64xf32>
    %458 = arith.mulf %442, %450 : vector<8x64xf32>
    %459 = arith.addf %457, %458 : vector<8x64xf32>
    %460 = math.tanh %459 : vector<8x64xf32>
    %461 = arith.mulf %456, %460 : vector<8x64xf32>
    %c0_176 = arith.constant 0 : index
    %c0_177 = arith.constant 0 : index
    %462 = vector.load %arg8[%c0_176, %c0_177] : memref<64x64xf32, #tpu.memory_space<vmem>>, vector<64x64xf32>
    %cst_178 = arith.constant dense<0.000000e+00> : vector<8x64xf32>
    %463 = tpu.matmul %461, %462, %cst_178 {dimension_numbers = #tpu.dot_dimension_numbers<[1], [0], [0], [1], [0, 0, 1, 1], [], []>} : vector<8x64xf32>, vector<64x64xf32>, vector<8x64xf32> -> vector<8x64xf32>
    %464 = arith.addf %463, %16 : vector<8x64xf32>
    %465 = arith.index_cast %402 : i32 to index
    %c0_179 = arith.constant 0 : index
    %466 = vector.load %arg20[%465, %c0_179] : memref<64x144xf32, #tpu.memory_space<vmem>>, vector<8x144xf32>
    %c0_180 = arith.constant 0 : index
    %c0_181 = arith.constant 0 : index
    %467 = vector.load %arg10[%c0_180, %c0_181] : memref<3x73xf32, #tpu.memory_space<vmem>>, vector<3x73xf32>
    %cst_182 = arith.constant dense<0.000000e+00> : vector<8x73xf32>
    %468 = tpu.matmul %395, %467, %cst_182 {dimension_numbers = #tpu.dot_dimension_numbers<[1], [0], [0], [1], [0, 0, 1, 1], [], []>} : vector<8x3xf32>, vector<3x73xf32>, vector<8x73xf32> -> vector<8x73xf32>
    %469 = vector.extract_strided_slice %468 {offsets = [0, 0], sizes = [8, 64], strides = [1, 1]} : vector<8x73xf32> to vector<8x64xf32>
    %470 = arith.addf %361, %469 : vector<8x64xf32>
    %c0_183 = arith.constant 0 : index
    %c0_184 = arith.constant 0 : index
    %471 = vector.load %arg11[%c0_183, %c0_184] : memref<64x64xf32, #tpu.memory_space<vmem>>, vector<64x64xf32>
    %cst_185 = arith.constant dense<0.000000e+00> : vector<8x64xf32>
    %472 = tpu.matmul %470, %471, %cst_185 {dimension_numbers = #tpu.dot_dimension_numbers<[1], [0], [0], [1], [0, 0, 1, 1], [], []>} : vector<8x64xf32>, vector<64x64xf32>, vector<8x64xf32> -> vector<8x64xf32>
    %473 = arith.mulf %470, %470 : vector<8x64xf32>
    %c0_186 = arith.constant 0 : index
    %c0_187 = arith.constant 0 : index
    %474 = vector.load %arg11[%c0_186, %c0_187] : memref<64x64xf32, #tpu.memory_space<vmem>>, vector<64x64xf32>
    %cst_188 = arith.constant dense<0.000000e+00> : vector<8x64xf32>
    %475 = tpu.matmul %473, %474, %cst_188 {dimension_numbers = #tpu.dot_dimension_numbers<[1], [0], [0], [1], [0, 0, 1, 1], [], []>} : vector<8x64xf32>, vector<64x64xf32>, vector<8x64xf32> -> vector<8x64xf32>
    %476 = arith.subf %470, %472 : vector<8x64xf32>
    %477 = arith.mulf %472, %472 : vector<8x64xf32>
    %478 = arith.subf %475, %477 : vector<8x64xf32>
    %cst_189 = arith.constant 9.99999974E-6 : f32
    %479 = vector.broadcast %cst_189 : f32 to vector<8x64xf32>
    %480 = arith.addf %478, %479 : vector<8x64xf32>
    %481 = math.rsqrt %480 : vector<8x64xf32>
    %482 = arith.mulf %476, %481 : vector<8x64xf32>
    %483 = arith.mulf %482, %19 : vector<8x64xf32>
    %484 = arith.addf %483, %22 : vector<8x64xf32>
    %cst_190 = arith.constant 0.000000e+00 : f32
    %485 = vector.broadcast %cst_190 : f32 to vector<8x64xf32>
    %486 = arith.cmpf oge, %484, %485 : vector<8x64xf32>
    %cst_191 = arith.constant 0.00999999977 : f32
    %487 = vector.broadcast %cst_191 : f32 to vector<8x64xf32>
    %488 = arith.mulf %487, %484 : vector<8x64xf32>
    %489 = arith.select %486, %484, %488 : vector<8x64xi1>, vector<8x64xf32>
    %c0_192 = arith.constant 0 : index
    %c0_193 = arith.constant 0 : index
    %490 = vector.load %arg14[%c0_192, %c0_193] : memref<64x153xf32, #tpu.memory_space<vmem>>, vector<64x153xf32>
    %cst_194 = arith.constant dense<0.000000e+00> : vector<8x153xf32>
    %491 = tpu.matmul %489, %490, %cst_194 {dimension_numbers = #tpu.dot_dimension_numbers<[1], [0], [0], [1], [0, 0, 1, 1], [], []>} : vector<8x64xf32>, vector<64x153xf32>, vector<8x153xf32> -> vector<8x153xf32>
    %492 = arith.addf %491, %25 : vector<8x153xf32>
    %493 = math.tanh %492 : vector<8x153xf32>
    %494 = vector.extract_strided_slice %468 {offsets = [0, 64], sizes = [8, 9], strides = [1, 1]} : vector<8x73xf32> to vector<8x9xf32>
    %495 = tpu.concatenate %494, %466 in 1 : vector<8x9xf32>, vector<8x144xf32> -> vector<8x153xf32>
    %496 = arith.mulf %493, %495 : vector<8x153xf32>
    %c0_195 = arith.constant 0 : index
    %c0_196 = arith.constant 0 : index
    %497 = vector.load %arg17[%c0_195, %c0_196] : memref<153x3xf32, #tpu.memory_space<vmem>>, vector<153x3xf32>
    %cst_197 = arith.constant dense<0.000000e+00> : vector<8x3xf32>
    %498 = tpu.matmul %496, %497, %cst_197 {dimension_numbers = #tpu.dot_dimension_numbers<[1], [0], [0], [1], [0, 0, 1, 1], [], []>} : vector<8x153xf32>, vector<153x3xf32>, vector<8x3xf32> -> vector<8x3xf32>
    %499 = arith.index_cast %402 : i32 to index
    %c0_198 = arith.constant 0 : index
    %500 = vector.load %arg18[%499, %c0_198] : memref<64x3xf32, #tpu.memory_space<vmem>>, vector<8x3xf32>
    tpu.vector_store %arg18[%499, %c0_198], %498 {strides = array<i32>} : memref<64x3xf32, #tpu.memory_space<vmem>>, vector<8x3xf32>,
    %c5_i32 = arith.constant 5 : i32
    %c8_i32_199 = arith.constant 8 : i32
    %501 = arith.muli %c5_i32, %c8_i32_199 : i32
    %502 = tpu.assume_multiple %501, 8 : i32
    %c1_i32_200 = arith.constant 1 : i32
    %503 = arith.subi %c5_i32, %c1_i32_200 : i32
    %c8_i32_201 = arith.constant 8 : i32
    %504 = arith.muli %503, %c8_i32_201 : i32
    %505 = tpu.assume_multiple %504, 8 : i32
    %506 = arith.index_cast %502 : i32 to index
    %c0_202 = arith.constant 0 : index
    %507 = vector.load %arg19[%506, %c0_202] : memref<64x256xf32, #tpu.memory_space<vmem>>, vector<8x256xf32>
    %c0_203 = arith.constant 0 : index
    %c0_204 = arith.constant 0 : index
    %508 = vector.load %arg5[%c0_203, %c0_204] : memref<64x256xf32, #tpu.memory_space<vmem>>, vector<64x256xf32>
    %cst_205 = arith.constant dense<0.000000e+00> : vector<8x256xf32>
    %509 = tpu.matmul %432, %508, %cst_205 {dimension_numbers = #tpu.dot_dimension_numbers<[1], [0], [0], [1], [0, 0, 1, 1], [], []>} : vector<8x64xf32>, vector<64x256xf32>, vector<8x256xf32> -> vector<8x256xf32>
    %510 = arith.addf %507, %509 : vector<8x256xf32>
    %511 = vector.extract_strided_slice %510 {offsets = [0, 0], sizes = [8, 64], strides = [1, 1]} : vector<8x256xf32> to vector<8x64xf32>
    %512 = arith.negf %511 : vector<8x64xf32>
    %513 = math.exp %512 : vector<8x64xf32>
    %cst_206 = arith.constant 1.000000e+00 : f32
    %514 = vector.broadcast %cst_206 : f32 to vector<8x64xf32>
    %515 = arith.addf %514, %513 : vector<8x64xf32>
    %516 = arith.divf %514, %515 : vector<8x64xf32>
    %517 = vector.extract_strided_slice %510 {offsets = [0, 64], sizes = [8, 64], strides = [1, 1]} : vector<8x256xf32> to vector<8x64xf32>
    %518 = arith.negf %517 : vector<8x64xf32>
    %519 = math.exp %518 : vector<8x64xf32>
    %cst_207 = arith.constant 1.000000e+00 : f32
    %520 = vector.broadcast %cst_207 : f32 to vector<8x64xf32>
    %521 = arith.addf %520, %519 : vector<8x64xf32>
    %522 = arith.divf %520, %521 : vector<8x64xf32>
    %523 = vector.extract_strided_slice %510 {offsets = [0, 128], sizes = [8, 64], strides = [1, 1]} : vector<8x256xf32> to vector<8x64xf32>
    %524 = math.tanh %523 : vector<8x64xf32>
    %525 = vector.extract_strided_slice %510 {offsets = [0, 192], sizes = [8, 64], strides = [1, 1]} : vector<8x256xf32> to vector<8x64xf32>
    %526 = arith.negf %525 : vector<8x64xf32>
    %527 = math.exp %526 : vector<8x64xf32>
    %cst_208 = arith.constant 1.000000e+00 : f32
    %528 = vector.broadcast %cst_208 : f32 to vector<8x64xf32>
    %529 = arith.addf %528, %527 : vector<8x64xf32>
    %530 = arith.divf %528, %529 : vector<8x64xf32>
    %531 = arith.mulf %522, %430 : vector<8x64xf32>
    %532 = arith.mulf %516, %524 : vector<8x64xf32>
    %533 = arith.addf %531, %532 : vector<8x64xf32>
    %534 = math.tanh %533 : vector<8x64xf32>
    %535 = arith.mulf %530, %534 : vector<8x64xf32>
    %536 = tpu.concatenate %535, %461 in 1 : vector<8x64xf32>, vector<8x64xf32> -> vector<8x128xf32>
    %c0_209 = arith.constant 0 : index
    %c0_210 = arith.constant 0 : index
    %537 = vector.load %arg6[%c0_209, %c0_210] : memref<128x256xf32, #tpu.memory_space<vmem>>, vector<128x256xf32>
    %cst_211 = arith.constant dense<0.000000e+00> : vector<8x256xf32>
    %538 = tpu.matmul %536, %537, %cst_211 {dimension_numbers = #tpu.dot_dimension_numbers<[1], [0], [0], [1], [0, 0, 1, 1], [], []>} : vector<8x128xf32>, vector<128x256xf32>, vector<8x256xf32> -> vector<8x256xf32>
    %539 = arith.addf %538, %13 : vector<8x256xf32>
    %540 = vector.extract_strided_slice %539 {offsets = [0, 0], sizes = [8, 64], strides = [1, 1]} : vector<8x256xf32> to vector<8x64xf32>
    %541 = arith.negf %540 : vector<8x64xf32>
    %542 = math.exp %541 : vector<8x64xf32>
    %cst_212 = arith.constant 1.000000e+00 : f32
    %543 = vector.broadcast %cst_212 : f32 to vector<8x64xf32>
    %544 = arith.addf %543, %542 : vector<8x64xf32>
    %545 = arith.divf %543, %544 : vector<8x64xf32>
    %546 = vector.extract_strided_slice %539 {offsets = [0, 64], sizes = [8, 64], strides = [1, 1]} : vector<8x256xf32> to vector<8x64xf32>
    %547 = arith.negf %546 : vector<8x64xf32>
    %548 = math.exp %547 : vector<8x64xf32>
    %cst_213 = arith.constant 1.000000e+00 : f32
    %549 = vector.broadcast %cst_213 : f32 to vector<8x64xf32>
    %550 = arith.addf %549, %548 : vector<8x64xf32>
    %551 = arith.divf %549, %550 : vector<8x64xf32>
    %552 = vector.extract_strided_slice %539 {offsets = [0, 128], sizes = [8, 64], strides = [1, 1]} : vector<8x256xf32> to vector<8x64xf32>
    %553 = math.tanh %552 : vector<8x64xf32>
    %554 = vector.extract_strided_slice %539 {offsets = [0, 192], sizes = [8, 64], strides = [1, 1]} : vector<8x256xf32> to vector<8x64xf32>
    %555 = arith.negf %554 : vector<8x64xf32>
    %556 = math.exp %555 : vector<8x64xf32>
    %cst_214 = arith.constant 1.000000e+00 : f32
    %557 = vector.broadcast %cst_214 : f32 to vector<8x64xf32>
    %558 = arith.addf %557, %556 : vector<8x64xf32>
    %559 = arith.divf %557, %558 : vector<8x64xf32>
    %560 = arith.mulf %551, %459 : vector<8x64xf32>
    %561 = arith.mulf %545, %553 : vector<8x64xf32>
    %562 = arith.addf %560, %561 : vector<8x64xf32>
    %563 = math.tanh %562 : vector<8x64xf32>
    %564 = arith.mulf %559, %563 : vector<8x64xf32>
    %c0_215 = arith.constant 0 : index
    %c0_216 = arith.constant 0 : index
    %565 = vector.load %arg8[%c0_215, %c0_216] : memref<64x64xf32, #tpu.memory_space<vmem>>, vector<64x64xf32>
    %cst_217 = arith.constant dense<0.000000e+00> : vector<8x64xf32>
    %566 = tpu.matmul %564, %565, %cst_217 {dimension_numbers = #tpu.dot_dimension_numbers<[1], [0], [0], [1], [0, 0, 1, 1], [], []>} : vector<8x64xf32>, vector<64x64xf32>, vector<8x64xf32> -> vector<8x64xf32>
    %567 = arith.addf %566, %16 : vector<8x64xf32>
    %568 = arith.index_cast %505 : i32 to index
    %c0_218 = arith.constant 0 : index
    %569 = vector.load %arg20[%568, %c0_218] : memref<64x144xf32, #tpu.memory_space<vmem>>, vector<8x144xf32>
    %c0_219 = arith.constant 0 : index
    %c0_220 = arith.constant 0 : index
    %570 = vector.load %arg10[%c0_219, %c0_220] : memref<3x73xf32, #tpu.memory_space<vmem>>, vector<3x73xf32>
    %cst_221 = arith.constant dense<0.000000e+00> : vector<8x73xf32>
    %571 = tpu.matmul %498, %570, %cst_221 {dimension_numbers = #tpu.dot_dimension_numbers<[1], [0], [0], [1], [0, 0, 1, 1], [], []>} : vector<8x3xf32>, vector<3x73xf32>, vector<8x73xf32> -> vector<8x73xf32>
    %572 = vector.extract_strided_slice %571 {offsets = [0, 0], sizes = [8, 64], strides = [1, 1]} : vector<8x73xf32> to vector<8x64xf32>
    %573 = arith.addf %464, %572 : vector<8x64xf32>
    %c0_222 = arith.constant 0 : index
    %c0_223 = arith.constant 0 : index
    %574 = vector.load %arg11[%c0_222, %c0_223] : memref<64x64xf32, #tpu.memory_space<vmem>>, vector<64x64xf32>
    %cst_224 = arith.constant dense<0.000000e+00> : vector<8x64xf32>
    %575 = tpu.matmul %573, %574, %cst_224 {dimension_numbers = #tpu.dot_dimension_numbers<[1], [0], [0], [1], [0, 0, 1, 1], [], []>} : vector<8x64xf32>, vector<64x64xf32>, vector<8x64xf32> -> vector<8x64xf32>
    %576 = arith.mulf %573, %573 : vector<8x64xf32>
    %c0_225 = arith.constant 0 : index
    %c0_226 = arith.constant 0 : index
    %577 = vector.load %arg11[%c0_225, %c0_226] : memref<64x64xf32, #tpu.memory_space<vmem>>, vector<64x64xf32>
    %cst_227 = arith.constant dense<0.000000e+00> : vector<8x64xf32>
    %578 = tpu.matmul %576, %577, %cst_227 {dimension_numbers = #tpu.dot_dimension_numbers<[1], [0], [0], [1], [0, 0, 1, 1], [], []>} : vector<8x64xf32>, vector<64x64xf32>, vector<8x64xf32> -> vector<8x64xf32>
    %579 = arith.subf %573, %575 : vector<8x64xf32>
    %580 = arith.mulf %575, %575 : vector<8x64xf32>
    %581 = arith.subf %578, %580 : vector<8x64xf32>
    %cst_228 = arith.constant 9.99999974E-6 : f32
    %582 = vector.broadcast %cst_228 : f32 to vector<8x64xf32>
    %583 = arith.addf %581, %582 : vector<8x64xf32>
    %584 = math.rsqrt %583 : vector<8x64xf32>
    %585 = arith.mulf %579, %584 : vector<8x64xf32>
    %586 = arith.mulf %585, %19 : vector<8x64xf32>
    %587 = arith.addf %586, %22 : vector<8x64xf32>
    %cst_229 = arith.constant 0.000000e+00 : f32
    %588 = vector.broadcast %cst_229 : f32 to vector<8x64xf32>
    %589 = arith.cmpf oge, %587, %588 : vector<8x64xf32>
    %cst_230 = arith.constant 0.00999999977 : f32
    %590 = vector.broadcast %cst_230 : f32 to vector<8x64xf32>
    %591 = arith.mulf %590, %587 : vector<8x64xf32>
    %592 = arith.select %589, %587, %591 : vector<8x64xi1>, vector<8x64xf32>
    %c0_231 = arith.constant 0 : index
    %c0_232 = arith.constant 0 : index
    %593 = vector.load %arg14[%c0_231, %c0_232] : memref<64x153xf32, #tpu.memory_space<vmem>>, vector<64x153xf32>
    %cst_233 = arith.constant dense<0.000000e+00> : vector<8x153xf32>
    %594 = tpu.matmul %592, %593, %cst_233 {dimension_numbers = #tpu.dot_dimension_numbers<[1], [0], [0], [1], [0, 0, 1, 1], [], []>} : vector<8x64xf32>, vector<64x153xf32>, vector<8x153xf32> -> vector<8x153xf32>
    %595 = arith.addf %594, %25 : vector<8x153xf32>
    %596 = math.tanh %595 : vector<8x153xf32>
    %597 = vector.extract_strided_slice %571 {offsets = [0, 64], sizes = [8, 9], strides = [1, 1]} : vector<8x73xf32> to vector<8x9xf32>
    %598 = tpu.concatenate %597, %569 in 1 : vector<8x9xf32>, vector<8x144xf32> -> vector<8x153xf32>
    %599 = arith.mulf %596, %598 : vector<8x153xf32>
    %c0_234 = arith.constant 0 : index
    %c0_235 = arith.constant 0 : index
    %600 = vector.load %arg17[%c0_234, %c0_235] : memref<153x3xf32, #tpu.memory_space<vmem>>, vector<153x3xf32>
    %cst_236 = arith.constant dense<0.000000e+00> : vector<8x3xf32>
    %601 = tpu.matmul %599, %600, %cst_236 {dimension_numbers = #tpu.dot_dimension_numbers<[1], [0], [0], [1], [0, 0, 1, 1], [], []>} : vector<8x153xf32>, vector<153x3xf32>, vector<8x3xf32> -> vector<8x3xf32>
    %602 = arith.index_cast %505 : i32 to index
    %c0_237 = arith.constant 0 : index
    %603 = vector.load %arg18[%602, %c0_237] : memref<64x3xf32, #tpu.memory_space<vmem>>, vector<8x3xf32>
    tpu.vector_store %arg18[%602, %c0_237], %601 {strides = array<i32>} : memref<64x3xf32, #tpu.memory_space<vmem>>, vector<8x3xf32>,
    %c6_i32 = arith.constant 6 : i32
    %c8_i32_238 = arith.constant 8 : i32
    %604 = arith.muli %c6_i32, %c8_i32_238 : i32
    %605 = tpu.assume_multiple %604, 8 : i32
    %c1_i32_239 = arith.constant 1 : i32
    %606 = arith.subi %c6_i32, %c1_i32_239 : i32
    %c8_i32_240 = arith.constant 8 : i32
    %607 = arith.muli %606, %c8_i32_240 : i32
    %608 = tpu.assume_multiple %607, 8 : i32
    %609 = arith.index_cast %605 : i32 to index
    %c0_241 = arith.constant 0 : index
    %610 = vector.load %arg19[%609, %c0_241] : memref<64x256xf32, #tpu.memory_space<vmem>>, vector<8x256xf32>
    %c0_242 = arith.constant 0 : index
    %c0_243 = arith.constant 0 : index
    %611 = vector.load %arg5[%c0_242, %c0_243] : memref<64x256xf32, #tpu.memory_space<vmem>>, vector<64x256xf32>
    %cst_244 = arith.constant dense<0.000000e+00> : vector<8x256xf32>
    %612 = tpu.matmul %535, %611, %cst_244 {dimension_numbers = #tpu.dot_dimension_numbers<[1], [0], [0], [1], [0, 0, 1, 1], [], []>} : vector<8x64xf32>, vector<64x256xf32>, vector<8x256xf32> -> vector<8x256xf32>
    %613 = arith.addf %610, %612 : vector<8x256xf32>
    %614 = vector.extract_strided_slice %613 {offsets = [0, 0], sizes = [8, 64], strides = [1, 1]} : vector<8x256xf32> to vector<8x64xf32>
    %615 = arith.negf %614 : vector<8x64xf32>
    %616 = math.exp %615 : vector<8x64xf32>
    %cst_245 = arith.constant 1.000000e+00 : f32
    %617 = vector.broadcast %cst_245 : f32 to vector<8x64xf32>
    %618 = arith.addf %617, %616 : vector<8x64xf32>
    %619 = arith.divf %617, %618 : vector<8x64xf32>
    %620 = vector.extract_strided_slice %613 {offsets = [0, 64], sizes = [8, 64], strides = [1, 1]} : vector<8x256xf32> to vector<8x64xf32>
    %621 = arith.negf %620 : vector<8x64xf32>
    %622 = math.exp %621 : vector<8x64xf32>
    %cst_246 = arith.constant 1.000000e+00 : f32
    %623 = vector.broadcast %cst_246 : f32 to vector<8x64xf32>
    %624 = arith.addf %623, %622 : vector<8x64xf32>
    %625 = arith.divf %623, %624 : vector<8x64xf32>
    %626 = vector.extract_strided_slice %613 {offsets = [0, 128], sizes = [8, 64], strides = [1, 1]} : vector<8x256xf32> to vector<8x64xf32>
    %627 = math.tanh %626 : vector<8x64xf32>
    %628 = vector.extract_strided_slice %613 {offsets = [0, 192], sizes = [8, 64], strides = [1, 1]} : vector<8x256xf32> to vector<8x64xf32>
    %629 = arith.negf %628 : vector<8x64xf32>
    %630 = math.exp %629 : vector<8x64xf32>
    %cst_247 = arith.constant 1.000000e+00 : f32
    %631 = vector.broadcast %cst_247 : f32 to vector<8x64xf32>
    %632 = arith.addf %631, %630 : vector<8x64xf32>
    %633 = arith.divf %631, %632 : vector<8x64xf32>
    %634 = arith.mulf %625, %533 : vector<8x64xf32>
    %635 = arith.mulf %619, %627 : vector<8x64xf32>
    %636 = arith.addf %634, %635 : vector<8x64xf32>
    %637 = math.tanh %636 : vector<8x64xf32>
    %638 = arith.mulf %633, %637 : vector<8x64xf32>
    %639 = tpu.concatenate %638, %564 in 1 : vector<8x64xf32>, vector<8x64xf32> -> vector<8x128xf32>
    %c0_248 = arith.constant 0 : index
    %c0_249 = arith.constant 0 : index
    %640 = vector.load %arg6[%c0_248, %c0_249] : memref<128x256xf32, #tpu.memory_space<vmem>>, vector<128x256xf32>
    %cst_250 = arith.constant dense<0.000000e+00> : vector<8x256xf32>
    %641 = tpu.matmul %639, %640, %cst_250 {dimension_numbers = #tpu.dot_dimension_numbers<[1], [0], [0], [1], [0, 0, 1, 1], [], []>} : vector<8x128xf32>, vector<128x256xf32>, vector<8x256xf32> -> vector<8x256xf32>
    %642 = arith.addf %641, %13 : vector<8x256xf32>
    %643 = vector.extract_strided_slice %642 {offsets = [0, 0], sizes = [8, 64], strides = [1, 1]} : vector<8x256xf32> to vector<8x64xf32>
    %644 = arith.negf %643 : vector<8x64xf32>
    %645 = math.exp %644 : vector<8x64xf32>
    %cst_251 = arith.constant 1.000000e+00 : f32
    %646 = vector.broadcast %cst_251 : f32 to vector<8x64xf32>
    %647 = arith.addf %646, %645 : vector<8x64xf32>
    %648 = arith.divf %646, %647 : vector<8x64xf32>
    %649 = vector.extract_strided_slice %642 {offsets = [0, 64], sizes = [8, 64], strides = [1, 1]} : vector<8x256xf32> to vector<8x64xf32>
    %650 = arith.negf %649 : vector<8x64xf32>
    %651 = math.exp %650 : vector<8x64xf32>
    %cst_252 = arith.constant 1.000000e+00 : f32
    %652 = vector.broadcast %cst_252 : f32 to vector<8x64xf32>
    %653 = arith.addf %652, %651 : vector<8x64xf32>
    %654 = arith.divf %652, %653 : vector<8x64xf32>
    %655 = vector.extract_strided_slice %642 {offsets = [0, 128], sizes = [8, 64], strides = [1, 1]} : vector<8x256xf32> to vector<8x64xf32>
    %656 = math.tanh %655 : vector<8x64xf32>
    %657 = vector.extract_strided_slice %642 {offsets = [0, 192], sizes = [8, 64], strides = [1, 1]} : vector<8x256xf32> to vector<8x64xf32>
    %658 = arith.negf %657 : vector<8x64xf32>
    %659 = math.exp %658 : vector<8x64xf32>
    %cst_253 = arith.constant 1.000000e+00 : f32
    %660 = vector.broadcast %cst_253 : f32 to vector<8x64xf32>
    %661 = arith.addf %660, %659 : vector<8x64xf32>
    %662 = arith.divf %660, %661 : vector<8x64xf32>
    %663 = arith.mulf %654, %562 : vector<8x64xf32>
    %664 = arith.mulf %648, %656 : vector<8x64xf32>
    %665 = arith.addf %663, %664 : vector<8x64xf32>
    %666 = math.tanh %665 : vector<8x64xf32>
    %667 = arith.mulf %662, %666 : vector<8x64xf32>
    %c0_254 = arith.constant 0 : index
    %c0_255 = arith.constant 0 : index
    %668 = vector.load %arg8[%c0_254, %c0_255] : memref<64x64xf32, #tpu.memory_space<vmem>>, vector<64x64xf32>
    %cst_256 = arith.constant dense<0.000000e+00> : vector<8x64xf32>
    %669 = tpu.matmul %667, %668, %cst_256 {dimension_numbers = #tpu.dot_dimension_numbers<[1], [0], [0], [1], [0, 0, 1, 1], [], []>} : vector<8x64xf32>, vector<64x64xf32>, vector<8x64xf32> -> vector<8x64xf32>
    %670 = arith.addf %669, %16 : vector<8x64xf32>
    %671 = arith.index_cast %608 : i32 to index
    %c0_257 = arith.constant 0 : index
    %672 = vector.load %arg20[%671, %c0_257] : memref<64x144xf32, #tpu.memory_space<vmem>>, vector<8x144xf32>
    %c0_258 = arith.constant 0 : index
    %c0_259 = arith.constant 0 : index
    %673 = vector.load %arg10[%c0_258, %c0_259] : memref<3x73xf32, #tpu.memory_space<vmem>>, vector<3x73xf32>
    %cst_260 = arith.constant dense<0.000000e+00> : vector<8x73xf32>
    %674 = tpu.matmul %601, %673, %cst_260 {dimension_numbers = #tpu.dot_dimension_numbers<[1], [0], [0], [1], [0, 0, 1, 1], [], []>} : vector<8x3xf32>, vector<3x73xf32>, vector<8x73xf32> -> vector<8x73xf32>
    %675 = vector.extract_strided_slice %674 {offsets = [0, 0], sizes = [8, 64], strides = [1, 1]} : vector<8x73xf32> to vector<8x64xf32>
    %676 = arith.addf %567, %675 : vector<8x64xf32>
    %c0_261 = arith.constant 0 : index
    %c0_262 = arith.constant 0 : index
    %677 = vector.load %arg11[%c0_261, %c0_262] : memref<64x64xf32, #tpu.memory_space<vmem>>, vector<64x64xf32>
    %cst_263 = arith.constant dense<0.000000e+00> : vector<8x64xf32>
    %678 = tpu.matmul %676, %677, %cst_263 {dimension_numbers = #tpu.dot_dimension_numbers<[1], [0], [0], [1], [0, 0, 1, 1], [], []>} : vector<8x64xf32>, vector<64x64xf32>, vector<8x64xf32> -> vector<8x64xf32>
    %679 = arith.mulf %676, %676 : vector<8x64xf32>
    %c0_264 = arith.constant 0 : index
    %c0_265 = arith.constant 0 : index
    %680 = vector.load %arg11[%c0_264, %c0_265] : memref<64x64xf32, #tpu.memory_space<vmem>>, vector<64x64xf32>
    %cst_266 = arith.constant dense<0.000000e+00> : vector<8x64xf32>
    %681 = tpu.matmul %679, %680, %cst_266 {dimension_numbers = #tpu.dot_dimension_numbers<[1], [0], [0], [1], [0, 0, 1, 1], [], []>} : vector<8x64xf32>, vector<64x64xf32>, vector<8x64xf32> -> vector<8x64xf32>
    %682 = arith.subf %676, %678 : vector<8x64xf32>
    %683 = arith.mulf %678, %678 : vector<8x64xf32>
    %684 = arith.subf %681, %683 : vector<8x64xf32>
    %cst_267 = arith.constant 9.99999974E-6 : f32
    %685 = vector.broadcast %cst_267 : f32 to vector<8x64xf32>
    %686 = arith.addf %684, %685 : vector<8x64xf32>
    %687 = math.rsqrt %686 : vector<8x64xf32>
    %688 = arith.mulf %682, %687 : vector<8x64xf32>
    %689 = arith.mulf %688, %19 : vector<8x64xf32>
    %690 = arith.addf %689, %22 : vector<8x64xf32>
    %cst_268 = arith.constant 0.000000e+00 : f32
    %691 = vector.broadcast %cst_268 : f32 to vector<8x64xf32>
    %692 = arith.cmpf oge, %690, %691 : vector<8x64xf32>
    %cst_269 = arith.constant 0.00999999977 : f32
    %693 = vector.broadcast %cst_269 : f32 to vector<8x64xf32>
    %694 = arith.mulf %693, %690 : vector<8x64xf32>
    %695 = arith.select %692, %690, %694 : vector<8x64xi1>, vector<8x64xf32>
    %c0_270 = arith.constant 0 : index
    %c0_271 = arith.constant 0 : index
    %696 = vector.load %arg14[%c0_270, %c0_271] : memref<64x153xf32, #tpu.memory_space<vmem>>, vector<64x153xf32>
    %cst_272 = arith.constant dense<0.000000e+00> : vector<8x153xf32>
    %697 = tpu.matmul %695, %696, %cst_272 {dimension_numbers = #tpu.dot_dimension_numbers<[1], [0], [0], [1], [0, 0, 1, 1], [], []>} : vector<8x64xf32>, vector<64x153xf32>, vector<8x153xf32> -> vector<8x153xf32>
    %698 = arith.addf %697, %25 : vector<8x153xf32>
    %699 = math.tanh %698 : vector<8x153xf32>
    %700 = vector.extract_strided_slice %674 {offsets = [0, 64], sizes = [8, 9], strides = [1, 1]} : vector<8x73xf32> to vector<8x9xf32>
    %701 = tpu.concatenate %700, %672 in 1 : vector<8x9xf32>, vector<8x144xf32> -> vector<8x153xf32>
    %702 = arith.mulf %699, %701 : vector<8x153xf32>
    %c0_273 = arith.constant 0 : index
    %c0_274 = arith.constant 0 : index
    %703 = vector.load %arg17[%c0_273, %c0_274] : memref<153x3xf32, #tpu.memory_space<vmem>>, vector<153x3xf32>
    %cst_275 = arith.constant dense<0.000000e+00> : vector<8x3xf32>
    %704 = tpu.matmul %702, %703, %cst_275 {dimension_numbers = #tpu.dot_dimension_numbers<[1], [0], [0], [1], [0, 0, 1, 1], [], []>} : vector<8x153xf32>, vector<153x3xf32>, vector<8x3xf32> -> vector<8x3xf32>
    %705 = arith.index_cast %608 : i32 to index
    %c0_276 = arith.constant 0 : index
    %706 = vector.load %arg18[%705, %c0_276] : memref<64x3xf32, #tpu.memory_space<vmem>>, vector<8x3xf32>
    tpu.vector_store %arg18[%705, %c0_276], %704 {strides = array<i32>} : memref<64x3xf32, #tpu.memory_space<vmem>>, vector<8x3xf32>,
    %c7_i32 = arith.constant 7 : i32
    %c8_i32_277 = arith.constant 8 : i32
    %707 = arith.muli %c7_i32, %c8_i32_277 : i32
    %708 = tpu.assume_multiple %707, 8 : i32
    %c1_i32_278 = arith.constant 1 : i32
    %709 = arith.subi %c7_i32, %c1_i32_278 : i32
    %c8_i32_279 = arith.constant 8 : i32
    %710 = arith.muli %709, %c8_i32_279 : i32
    %711 = tpu.assume_multiple %710, 8 : i32
    %712 = arith.index_cast %708 : i32 to index
    %c0_280 = arith.constant 0 : index
    %713 = vector.load %arg19[%712, %c0_280] : memref<64x256xf32, #tpu.memory_space<vmem>>, vector<8x256xf32>
    %c0_281 = arith.constant 0 : index
    %c0_282 = arith.constant 0 : index
    %714 = vector.load %arg5[%c0_281, %c0_282] : memref<64x256xf32, #tpu.memory_space<vmem>>, vector<64x256xf32>
    %cst_283 = arith.constant dense<0.000000e+00> : vector<8x256xf32>
    %715 = tpu.matmul %638, %714, %cst_283 {dimension_numbers = #tpu.dot_dimension_numbers<[1], [0], [0], [1], [0, 0, 1, 1], [], []>} : vector<8x64xf32>, vector<64x256xf32>, vector<8x256xf32> -> vector<8x256xf32>
    %716 = arith.addf %713, %715 : vector<8x256xf32>
    %717 = vector.extract_strided_slice %716 {offsets = [0, 0], sizes = [8, 64], strides = [1, 1]} : vector<8x256xf32> to vector<8x64xf32>
    %718 = arith.negf %717 : vector<8x64xf32>
    %719 = math.exp %718 : vector<8x64xf32>
    %cst_284 = arith.constant 1.000000e+00 : f32
    %720 = vector.broadcast %cst_284 : f32 to vector<8x64xf32>
    %721 = arith.addf %720, %719 : vector<8x64xf32>
    %722 = arith.divf %720, %721 : vector<8x64xf32>
    %723 = vector.extract_strided_slice %716 {offsets = [0, 64], sizes = [8, 64], strides = [1, 1]} : vector<8x256xf32> to vector<8x64xf32>
    %724 = arith.negf %723 : vector<8x64xf32>
    %725 = math.exp %724 : vector<8x64xf32>
    %cst_285 = arith.constant 1.000000e+00 : f32
    %726 = vector.broadcast %cst_285 : f32 to vector<8x64xf32>
    %727 = arith.addf %726, %725 : vector<8x64xf32>
    %728 = arith.divf %726, %727 : vector<8x64xf32>
    %729 = vector.extract_strided_slice %716 {offsets = [0, 128], sizes = [8, 64], strides = [1, 1]} : vector<8x256xf32> to vector<8x64xf32>
    %730 = math.tanh %729 : vector<8x64xf32>
    %731 = vector.extract_strided_slice %716 {offsets = [0, 192], sizes = [8, 64], strides = [1, 1]} : vector<8x256xf32> to vector<8x64xf32>
    %732 = arith.negf %731 : vector<8x64xf32>
    %733 = math.exp %732 : vector<8x64xf32>
    %cst_286 = arith.constant 1.000000e+00 : f32
    %734 = vector.broadcast %cst_286 : f32 to vector<8x64xf32>
    %735 = arith.addf %734, %733 : vector<8x64xf32>
    %736 = arith.divf %734, %735 : vector<8x64xf32>
    %737 = arith.mulf %728, %636 : vector<8x64xf32>
    %738 = arith.mulf %722, %730 : vector<8x64xf32>
    %739 = arith.addf %737, %738 : vector<8x64xf32>
    %740 = math.tanh %739 : vector<8x64xf32>
    %741 = arith.mulf %736, %740 : vector<8x64xf32>
    %742 = tpu.concatenate %741, %667 in 1 : vector<8x64xf32>, vector<8x64xf32> -> vector<8x128xf32>
    %c0_287 = arith.constant 0 : index
    %c0_288 = arith.constant 0 : index
    %743 = vector.load %arg6[%c0_287, %c0_288] : memref<128x256xf32, #tpu.memory_space<vmem>>, vector<128x256xf32>
    %cst_289 = arith.constant dense<0.000000e+00> : vector<8x256xf32>
    %744 = tpu.matmul %742, %743, %cst_289 {dimension_numbers = #tpu.dot_dimension_numbers<[1], [0], [0], [1], [0, 0, 1, 1], [], []>} : vector<8x128xf32>, vector<128x256xf32>, vector<8x256xf32> -> vector<8x256xf32>
    %745 = arith.addf %744, %13 : vector<8x256xf32>
    %746 = vector.extract_strided_slice %745 {offsets = [0, 0], sizes = [8, 64], strides = [1, 1]} : vector<8x256xf32> to vector<8x64xf32>
    %747 = arith.negf %746 : vector<8x64xf32>
    %748 = math.exp %747 : vector<8x64xf32>
    %cst_290 = arith.constant 1.000000e+00 : f32
    %749 = vector.broadcast %cst_290 : f32 to vector<8x64xf32>
    %750 = arith.addf %749, %748 : vector<8x64xf32>
    %751 = arith.divf %749, %750 : vector<8x64xf32>
    %752 = vector.extract_strided_slice %745 {offsets = [0, 64], sizes = [8, 64], strides = [1, 1]} : vector<8x256xf32> to vector<8x64xf32>
    %753 = arith.negf %752 : vector<8x64xf32>
    %754 = math.exp %753 : vector<8x64xf32>
    %cst_291 = arith.constant 1.000000e+00 : f32
    %755 = vector.broadcast %cst_291 : f32 to vector<8x64xf32>
    %756 = arith.addf %755, %754 : vector<8x64xf32>
    %757 = arith.divf %755, %756 : vector<8x64xf32>
    %758 = vector.extract_strided_slice %745 {offsets = [0, 128], sizes = [8, 64], strides = [1, 1]} : vector<8x256xf32> to vector<8x64xf32>
    %759 = math.tanh %758 : vector<8x64xf32>
    %760 = vector.extract_strided_slice %745 {offsets = [0, 192], sizes = [8, 64], strides = [1, 1]} : vector<8x256xf32> to vector<8x64xf32>
    %761 = arith.negf %760 : vector<8x64xf32>
    %762 = math.exp %761 : vector<8x64xf32>
    %cst_292 = arith.constant 1.000000e+00 : f32
    %763 = vector.broadcast %cst_292 : f32 to vector<8x64xf32>
    %764 = arith.addf %763, %762 : vector<8x64xf32>
    %765 = arith.divf %763, %764 : vector<8x64xf32>
    %766 = arith.mulf %757, %665 : vector<8x64xf32>
    %767 = arith.mulf %751, %759 : vector<8x64xf32>
    %768 = arith.addf %766, %767 : vector<8x64xf32>
    %769 = math.tanh %768 : vector<8x64xf32>
    %770 = arith.mulf %765, %769 : vector<8x64xf32>
    %c0_293 = arith.constant 0 : index
    %c0_294 = arith.constant 0 : index
    %771 = vector.load %arg8[%c0_293, %c0_294] : memref<64x64xf32, #tpu.memory_space<vmem>>, vector<64x64xf32>
    %cst_295 = arith.constant dense<0.000000e+00> : vector<8x64xf32>
    %772 = tpu.matmul %770, %771, %cst_295 {dimension_numbers = #tpu.dot_dimension_numbers<[1], [0], [0], [1], [0, 0, 1, 1], [], []>} : vector<8x64xf32>, vector<64x64xf32>, vector<8x64xf32> -> vector<8x64xf32>
    %773 = arith.addf %772, %16 : vector<8x64xf32>
    %774 = arith.index_cast %711 : i32 to index
    %c0_296 = arith.constant 0 : index
    %775 = vector.load %arg20[%774, %c0_296] : memref<64x144xf32, #tpu.memory_space<vmem>>, vector<8x144xf32>
    %c0_297 = arith.constant 0 : index
    %c0_298 = arith.constant 0 : index
    %776 = vector.load %arg10[%c0_297, %c0_298] : memref<3x73xf32, #tpu.memory_space<vmem>>, vector<3x73xf32>
    %cst_299 = arith.constant dense<0.000000e+00> : vector<8x73xf32>
    %777 = tpu.matmul %704, %776, %cst_299 {dimension_numbers = #tpu.dot_dimension_numbers<[1], [0], [0], [1], [0, 0, 1, 1], [], []>} : vector<8x3xf32>, vector<3x73xf32>, vector<8x73xf32> -> vector<8x73xf32>
    %778 = vector.extract_strided_slice %777 {offsets = [0, 0], sizes = [8, 64], strides = [1, 1]} : vector<8x73xf32> to vector<8x64xf32>
    %779 = arith.addf %670, %778 : vector<8x64xf32>
    %c0_300 = arith.constant 0 : index
    %c0_301 = arith.constant 0 : index
    %780 = vector.load %arg11[%c0_300, %c0_301] : memref<64x64xf32, #tpu.memory_space<vmem>>, vector<64x64xf32>
    %cst_302 = arith.constant dense<0.000000e+00> : vector<8x64xf32>
    %781 = tpu.matmul %779, %780, %cst_302 {dimension_numbers = #tpu.dot_dimension_numbers<[1], [0], [0], [1], [0, 0, 1, 1], [], []>} : vector<8x64xf32>, vector<64x64xf32>, vector<8x64xf32> -> vector<8x64xf32>
    %782 = arith.mulf %779, %779 : vector<8x64xf32>
    %c0_303 = arith.constant 0 : index
    %c0_304 = arith.constant 0 : index
    %783 = vector.load %arg11[%c0_303, %c0_304] : memref<64x64xf32, #tpu.memory_space<vmem>>, vector<64x64xf32>
    %cst_305 = arith.constant dense<0.000000e+00> : vector<8x64xf32>
    %784 = tpu.matmul %782, %783, %cst_305 {dimension_numbers = #tpu.dot_dimension_numbers<[1], [0], [0], [1], [0, 0, 1, 1], [], []>} : vector<8x64xf32>, vector<64x64xf32>, vector<8x64xf32> -> vector<8x64xf32>
    %785 = arith.subf %779, %781 : vector<8x64xf32>
    %786 = arith.mulf %781, %781 : vector<8x64xf32>
    %787 = arith.subf %784, %786 : vector<8x64xf32>
    %cst_306 = arith.constant 9.99999974E-6 : f32
    %788 = vector.broadcast %cst_306 : f32 to vector<8x64xf32>
    %789 = arith.addf %787, %788 : vector<8x64xf32>
    %790 = math.rsqrt %789 : vector<8x64xf32>
    %791 = arith.mulf %785, %790 : vector<8x64xf32>
    %792 = arith.mulf %791, %19 : vector<8x64xf32>
    %793 = arith.addf %792, %22 : vector<8x64xf32>
    %cst_307 = arith.constant 0.000000e+00 : f32
    %794 = vector.broadcast %cst_307 : f32 to vector<8x64xf32>
    %795 = arith.cmpf oge, %793, %794 : vector<8x64xf32>
    %cst_308 = arith.constant 0.00999999977 : f32
    %796 = vector.broadcast %cst_308 : f32 to vector<8x64xf32>
    %797 = arith.mulf %796, %793 : vector<8x64xf32>
    %798 = arith.select %795, %793, %797 : vector<8x64xi1>, vector<8x64xf32>
    %c0_309 = arith.constant 0 : index
    %c0_310 = arith.constant 0 : index
    %799 = vector.load %arg14[%c0_309, %c0_310] : memref<64x153xf32, #tpu.memory_space<vmem>>, vector<64x153xf32>
    %cst_311 = arith.constant dense<0.000000e+00> : vector<8x153xf32>
    %800 = tpu.matmul %798, %799, %cst_311 {dimension_numbers = #tpu.dot_dimension_numbers<[1], [0], [0], [1], [0, 0, 1, 1], [], []>} : vector<8x64xf32>, vector<64x153xf32>, vector<8x153xf32> -> vector<8x153xf32>
    %801 = arith.addf %800, %25 : vector<8x153xf32>
    %802 = math.tanh %801 : vector<8x153xf32>
    %803 = vector.extract_strided_slice %777 {offsets = [0, 64], sizes = [8, 9], strides = [1, 1]} : vector<8x73xf32> to vector<8x9xf32>
    %804 = tpu.concatenate %803, %775 in 1 : vector<8x9xf32>, vector<8x144xf32> -> vector<8x153xf32>
    %805 = arith.mulf %802, %804 : vector<8x153xf32>
    %c0_312 = arith.constant 0 : index
    %c0_313 = arith.constant 0 : index
    %806 = vector.load %arg17[%c0_312, %c0_313] : memref<153x3xf32, #tpu.memory_space<vmem>>, vector<153x3xf32>
    %cst_314 = arith.constant dense<0.000000e+00> : vector<8x3xf32>
    %807 = tpu.matmul %805, %806, %cst_314 {dimension_numbers = #tpu.dot_dimension_numbers<[1], [0], [0], [1], [0, 0, 1, 1], [], []>} : vector<8x153xf32>, vector<153x3xf32>, vector<8x3xf32> -> vector<8x3xf32>
    %808 = arith.index_cast %711 : i32 to index
    %c0_315 = arith.constant 0 : index
    %809 = vector.load %arg18[%808, %c0_315] : memref<64x3xf32, #tpu.memory_space<vmem>>, vector<8x3xf32>
    tpu.vector_store %arg18[%808, %c0_315], %807 {strides = array<i32>} : memref<64x3xf32, #tpu.memory_space<vmem>>, vector<8x3xf32>,
    %c7_i32_316 = arith.constant 7 : i32
    %c56_i32 = arith.constant 56 : i32
    %810 = tpu.assume_multiple %c56_i32, 8 : i32
    %811 = arith.index_cast %810 : i32 to index
    %c0_317 = arith.constant 0 : index
    %812 = vector.load %arg20[%811, %c0_317] : memref<64x144xf32, #tpu.memory_space<vmem>>, vector<8x144xf32>
    %c0_318 = arith.constant 0 : index
    %c0_319 = arith.constant 0 : index
    %813 = vector.load %arg10[%c0_318, %c0_319] : memref<3x73xf32, #tpu.memory_space<vmem>>, vector<3x73xf32>
    %cst_320 = arith.constant dense<0.000000e+00> : vector<8x73xf32>
    %814 = tpu.matmul %807, %813, %cst_320 {dimension_numbers = #tpu.dot_dimension_numbers<[1], [0], [0], [1], [0, 0, 1, 1], [], []>} : vector<8x3xf32>, vector<3x73xf32>, vector<8x73xf32> -> vector<8x73xf32>
    %815 = vector.extract_strided_slice %814 {offsets = [0, 0], sizes = [8, 64], strides = [1, 1]} : vector<8x73xf32> to vector<8x64xf32>
    %816 = arith.addf %773, %815 : vector<8x64xf32>
    %c0_321 = arith.constant 0 : index
    %c0_322 = arith.constant 0 : index
    %817 = vector.load %arg11[%c0_321, %c0_322] : memref<64x64xf32, #tpu.memory_space<vmem>>, vector<64x64xf32>
    %cst_323 = arith.constant dense<0.000000e+00> : vector<8x64xf32>
    %818 = tpu.matmul %816, %817, %cst_323 {dimension_numbers = #tpu.dot_dimension_numbers<[1], [0], [0], [1], [0, 0, 1, 1], [], []>} : vector<8x64xf32>, vector<64x64xf32>, vector<8x64xf32> -> vector<8x64xf32>
    %819 = arith.mulf %816, %816 : vector<8x64xf32>
    %c0_324 = arith.constant 0 : index
    %c0_325 = arith.constant 0 : index
    %820 = vector.load %arg11[%c0_324, %c0_325] : memref<64x64xf32, #tpu.memory_space<vmem>>, vector<64x64xf32>
    %cst_326 = arith.constant dense<0.000000e+00> : vector<8x64xf32>
    %821 = tpu.matmul %819, %820, %cst_326 {dimension_numbers = #tpu.dot_dimension_numbers<[1], [0], [0], [1], [0, 0, 1, 1], [], []>} : vector<8x64xf32>, vector<64x64xf32>, vector<8x64xf32> -> vector<8x64xf32>
    %822 = arith.subf %816, %818 : vector<8x64xf32>
    %823 = arith.mulf %818, %818 : vector<8x64xf32>
    %824 = arith.subf %821, %823 : vector<8x64xf32>
    %cst_327 = arith.constant 9.99999974E-6 : f32
    %825 = vector.broadcast %cst_327 : f32 to vector<8x64xf32>
    %826 = arith.addf %824, %825 : vector<8x64xf32>
    %827 = math.rsqrt %826 : vector<8x64xf32>
    %828 = arith.mulf %822, %827 : vector<8x64xf32>
    %829 = arith.mulf %828, %19 : vector<8x64xf32>
    %830 = arith.addf %829, %22 : vector<8x64xf32>
    %cst_328 = arith.constant 0.000000e+00 : f32
    %831 = vector.broadcast %cst_328 : f32 to vector<8x64xf32>
    %832 = arith.cmpf oge, %830, %831 : vector<8x64xf32>
    %cst_329 = arith.constant 0.00999999977 : f32
    %833 = vector.broadcast %cst_329 : f32 to vector<8x64xf32>
    %834 = arith.mulf %833, %830 : vector<8x64xf32>
    %835 = arith.select %832, %830, %834 : vector<8x64xi1>, vector<8x64xf32>
    %c0_330 = arith.constant 0 : index
    %c0_331 = arith.constant 0 : index
    %836 = vector.load %arg14[%c0_330, %c0_331] : memref<64x153xf32, #tpu.memory_space<vmem>>, vector<64x153xf32>
    %cst_332 = arith.constant dense<0.000000e+00> : vector<8x153xf32>
    %837 = tpu.matmul %835, %836, %cst_332 {dimension_numbers = #tpu.dot_dimension_numbers<[1], [0], [0], [1], [0, 0, 1, 1], [], []>} : vector<8x64xf32>, vector<64x153xf32>, vector<8x153xf32> -> vector<8x153xf32>
    %838 = arith.addf %837, %25 : vector<8x153xf32>
    %839 = math.tanh %838 : vector<8x153xf32>
    %840 = vector.extract_strided_slice %814 {offsets = [0, 64], sizes = [8, 9], strides = [1, 1]} : vector<8x73xf32> to vector<8x9xf32>
    %841 = tpu.concatenate %840, %812 in 1 : vector<8x9xf32>, vector<8x144xf32> -> vector<8x153xf32>
    %842 = arith.mulf %839, %841 : vector<8x153xf32>
    %c0_333 = arith.constant 0 : index
    %c0_334 = arith.constant 0 : index
    %843 = vector.load %arg17[%c0_333, %c0_334] : memref<153x3xf32, #tpu.memory_space<vmem>>, vector<153x3xf32>
    %cst_335 = arith.constant dense<0.000000e+00> : vector<8x3xf32>
    %844 = tpu.matmul %842, %843, %cst_335 {dimension_numbers = #tpu.dot_dimension_numbers<[1], [0], [0], [1], [0, 0, 1, 1], [], []>} : vector<8x153xf32>, vector<153x3xf32>, vector<8x3xf32> -> vector<8x3xf32>
    %845 = arith.index_cast %810 : i32 to index
    %c0_336 = arith.constant 0 : index
    %846 = vector.load %arg18[%845, %c0_336] : memref<64x3xf32, #tpu.memory_space<vmem>>, vector<8x3xf32>
    tpu.vector_store %arg18[%845, %c0_336], %844 {strides = array<i32>} : memref<64x3xf32, #tpu.memory_space<vmem>>, vector<8x3xf32>,
    return
  }
}

</mosaic_0001>

<bundles_post_ra>
// kernel: tpu_custom_call.1
= control target key start
LH: loop header
LB: loop body
LE: loop exit
PB: predicated region body
PF: predicated region fallthrough
CT: control target
= control target key end

     0   :  { %s12058_s0 = inlined_call_operand.vmem [shape: f32[64,21], index: 0, kind: input, shape index: {}]   ;;  %s12059_s1 = inlined_call_operand.vmem [shape: f32[64,12], index: 1, kind: input, shape index: {}]   ;;  %s12060_s2 = inlined_call_operand.vmem [shape: f32[8,3], index: 2, kind: input, shape index: {}]   ;;  %s12061_s3 = inlined_call_operand.hbm [shape: f32[21,256], index: 3, kind: input, shape index: {}]   ;;  %s12062_s4 = inlined_call_operand.hbm [shape: f32[1,256], index: 4, kind: input, shape index: {}]   ;;  %s12063_s5 = inlined_call_operand.hbm [shape: f32[64,256], index: 5, kind: input, shape index: {}]   ;;  %s12064_s6 = inlined_call_operand.vmem [shape: f32[128,256], index: 6, kind: input, shape index: {}]   ;;  %s12065_s7 = inlined_call_operand.hbm [shape: f32[1,256], index: 7, kind: input, shape index: {}]   ;;  %s12066_s8 = inlined_call_operand.hbm [shape: f32[64,64], index: 8, kind: input, shape index: {}]   ;;  %s12067_s9 = inlined_call_operand.vmem [shape: f32[1,64], index: 9, kind: input, shape index: {}]   ;;  %s12068_s10 = inlined_call_operand.hbm [shape: f32[3,73], index: 10, kind: input, shape index: {}]   ;;  %s12069_s11 = inlined_call_operand.hbm [shape: f32[64,64], index: 11, kind: input, shape index: {}]   ;;  %s12070_s12 = inlined_call_operand.hbm [shape: f32[1,64], index: 12, kind: input, shape index: {}]   ;;  %s12071_s13 = inlined_call_operand.hbm [shape: f32[1,64], index: 13, kind: input, shape index: {}]   ;;  %s12072_s14 = inlined_call_operand.vmem [shape: f32[64,153], index: 14, kind: input, shape index: {}]   ;;  %s12073_s15 = inlined_call_operand.vmem [shape: f32[1,153], index: 15, kind: input, shape index: {}]   ;;  %s12074_s16 = inlined_call_operand.hbm [shape: f32[12,144], index: 16, kind: input, shape index: {}]   ;;  %s12075_s17 = inlined_call_operand.vmem [shape: f32[153,3], index: 17, kind: input, shape index: {}]   ;;  %s12076_s18 = inlined_call_operand.vmem [shape: f32[64,3], index: 18, kind: output, shape index: {}]  }
   0x1   :  { %12101 = sst [smem:[#allocation40_spill]] %s12058_s0 }
   0x2   :  { %12102 = sst [smem:[#allocation41_spill]] %s12059_s1 }
   0x3   :  { %12103 = sst [smem:[#allocation42_spill]] %s12060_s2 }
   0x4   :  { %23 = vsyncpa [#allocation5], 0 }
   0x5   :  { %24 = vsyncpa [#allocation7], 0 }
   0x6   :  { %25 = vsyncpa [#allocation10], 0 }
   0x7   :  { %26 = vsyncpa [#allocation13], 0 }
   0x8   :  { %27 = vsyncpa [#allocation16], 0 }
   0x9   :  { %28 = vsyncpa [#allocation19], 0  ;;  %s9300_s27 = smov [#allocation6]   ;;  %s9301_s29 = smov [#allocation9]  }
   0xa   :  { %s53_s28 = sshll.u32 %s9300_s27, 4  ;;  %s77_s30 = sshll.u32 %s9301_s29, 4  ;;  %s54_s28 = int_to_ptr.vmem [resolvable:$true] %s53_s28  ;;  %s78_s30 = int_to_ptr.vmem [resolvable:$true] %s77_s30 }
   0xb   :  { %s9068_s1 = scalar_lea.hbm %s12062_s4, 32 }
   0xc   :  { %p9069_p0 = scmp.ne.s32.totalorder %s12062_s4, %s9068_s1  ;;  %p9072_p1 = scmp.lt.u32.totalorder %s9068_s1, %s12062_s4 }
   0xe   :  { %p9074_p2 = pnand %p9072_p1, %p9069_p0 }
  0x10   :  { %9077 = shalt.err (!%p9074_p2)
}
  0x11   :  { %s9078_s23 = scalar_lea.vmem %s54_s28, 32  ;;  %p9083_p4 = scmp.lt.s32.totalorder %s54_s28, %s54_s28 }
  0x12   :  { %p9079_p3 = scmp.ne.s32.totalorder %s54_s28, %s9078_s23  ;;  %p9084_p5 = scmp.lt.s32.totalorder %s9078_s23, %s9078_s23 }
  0x14   :  { %p9085_p6 = por %p9084_p5, %p9083_p4 }
  0x16   :  { %p9086_p7 = pnand %p9085_p6, %p9079_p3 }
  0x18   :  { %9089 = shalt.err (!%p9086_p7)
}
  0x19   :  { %56 = dma.hbm_to_vmem [thread:$0]  %s12062_s4, 32, %s54_s28, [#allocation7]  }
  0x1a   :  { %s9090_s29 = scalar_lea.hbm %s12065_s7, 32 }
  0x1b   :  { %p9091_p8 = scmp.ne.s32.totalorder %s12065_s7, %s9090_s29  ;;  %p9094_p9 = scmp.lt.u32.totalorder %s9090_s29, %s12065_s7 }
  0x1d   :  { %p9096_p10 = pnand %p9094_p9, %p9091_p8 }
  0x1f   :  { %9099 = shalt.err (!%p9096_p10)
}
  0x20   :  { %s9100_s21 = scalar_lea.vmem %s78_s30, 32  ;;  %p9105_p12 = scmp.lt.s32.totalorder %s78_s30, %s78_s30 }
  0x21   :  { %p9101_p11 = scmp.ne.s32.totalorder %s78_s30, %s9100_s21  ;;  %p9106_p13 = scmp.lt.s32.totalorder %s9100_s21, %s9100_s21 }
  0x23   :  { %p9107_p0 = por %p9106_p13, %p9105_p12 }
  0x25   :  { %p9108_p1 = pnand %p9107_p0, %p9101_p11 }
  0x27   :  { %9111 = shalt.err (!%p9108_p1)
}
  0x28   :  { %80 = dma.hbm_to_vmem [thread:$0]  %s12065_s7, 32, %s78_s30, [#allocation10]  }
  0x29   :  { %s9302_s22 = smov [#allocation12]   ;;  %s9303_s23 = smov [#allocation15]  }
  0x2a   :  { %s101_s2 = sshll.u32 %s9302_s22, 4  ;;  %s123_s24 = sshll.u32 %s9303_s23, 4  ;;  %s102_s2 = int_to_ptr.vmem [resolvable:$true] %s101_s2  ;;  %s124_s24 = int_to_ptr.vmem [resolvable:$true] %s123_s24 }
  0x2b   :  { %s9112_s27 = scalar_lea.hbm %s12068_s10, 64 }
  0x2c   :  { %p9113_p2 = scmp.ne.s32.totalorder %s12068_s10, %s9112_s27  ;;  %p9116_p3 = scmp.lt.u32.totalorder %s9112_s27, %s12068_s10 }
  0x2e   :  { %p9118_p4 = pnand %p9116_p3, %p9113_p2 }
  0x30   :  { %9121 = shalt.err (!%p9118_p4)
}
  0x31   :  { %s9122_s7 = scalar_lea.vmem %s102_s2, 64  ;;  %p9127_p6 = scmp.lt.s32.totalorder %s102_s2, %s102_s2 }
  0x32   :  { %p9123_p5 = scmp.ne.s32.totalorder %s102_s2, %s9122_s7  ;;  %p9128_p7 = scmp.lt.s32.totalorder %s9122_s7, %s9122_s7 }
  0x34   :  { %p9129_p8 = por %p9128_p7, %p9127_p6 }
  0x36   :  { %p9130_p9 = pnand %p9129_p8, %p9123_p5 }
  0x38   :  { %9133 = shalt.err (!%p9130_p9)
}
  0x39   :  { %104 = dma.hbm_to_vmem [thread:$0]  %s12068_s10, 64, %s102_s2, [#allocation13]  }
  0x3a   :  { %s9134_s28 = scalar_lea.hbm %s12070_s12, 16 }
  0x3b   :  { %p9135_p10 = scmp.ne.s32.totalorder %s12070_s12, %s9134_s28  ;;  %p9138_p11 = scmp.lt.u32.totalorder %s9134_s28, %s12070_s12 }
  0x3d   :  { %p9140_p12 = pnand %p9138_p11, %p9135_p10 }
  0x3f   :  { %9143 = shalt.err (!%p9140_p12)
}
  0x40   :  { %s9144_s27 = scalar_lea.vmem %s124_s24, 16  ;;  %s9148_s29 = scalar_lea.vmem %s124_s24, 32 }
  0x41   :  { %p9145_p13 = scmp.ne.s32.totalorder %s124_s24, %s9144_s27  ;;  %p9149_p0 = scmp.lt.s32.totalorder %s124_s24, %s124_s24 }
  0x42   :  { %p9150_p1 = scmp.lt.s32.totalorder %s9148_s29, %s9144_s27 }
  0x44   :  { %p9151_p2 = por %p9150_p1, %p9149_p0 }
  0x46   :  { %p9152_p3 = pnand %p9151_p2, %p9145_p13 }
  0x48   :  { %9155 = shalt.err (!%p9152_p3)
}
  0x49   :  { %126 = dma.hbm_to_vmem [thread:$0]  %s12070_s12, 16, %s124_s24, [#allocation16]  }
  0x4a   :  { %s9304_s0 = smov [#allocation4]   ;;  %s9156_s30 = scalar_lea.hbm %s12061_s3, 768 }
  0x4b   :  { %s40_s19 = sshll.u32 %s9304_s0, 4  ;;  %p9157_p4 = scmp.ne.s32.totalorder %s12061_s3, %s9156_s30  ;;  %s41_s19 = int_to_ptr.vmem [resolvable:$true] %s40_s19 }
  0x4c   :  { %p9160_p5 = scmp.lt.u32.totalorder %s9156_s30, %s12061_s3 }
  0x4e   :  { %p9162_p6 = pnand %p9160_p5, %p9157_p4 }
  0x50   :  { %9165 = shalt.err (!%p9162_p6)
}
  0x51   :  { %s9166_s22 = scalar_lea.vmem %s41_s19, 768  ;;  %p9171_p8 = scmp.lt.s32.totalorder %s41_s19, %s41_s19 }
  0x52   :  { %p9167_p7 = scmp.ne.s32.totalorder %s41_s19, %s9166_s22  ;;  %p9172_p9 = scmp.lt.s32.totalorder %s9166_s22, %s9166_s22 }
  0x54   :  { %p9173_p10 = por %p9172_p9, %p9171_p8 }
  0x56   :  { %p9174_p11 = pnand %p9173_p10, %p9167_p7 }
  0x58   :  { %9177 = shalt.err (!%p9174_p11)
}
  0x59   :  { %s9305_s12 = smov 256   ;;  %s9306_s24 = smov 16  }
  0x5a   :  { %46 = dma.hbm_to_vmem [thread:$0]  %s12061_s3, 768, %s41_s19, [#allocation5], %s9305_s12, %s9305_s12, %s9306_s24  }
  0x5b   :  { %s9307_s26 = smov [#allocation8]   ;;  %s9308_s29 = smov [#allocation11]  }
  0x5c   :  { %s62_s27 = sshll.u32 %s9307_s26, 4  ;;  %s86_s10 = sshll.u32 %s9308_s29, 4  ;;  %s63_s27 = int_to_ptr.vmem [resolvable:$true] %s62_s27  ;;  %s87_s10 = int_to_ptr.vmem [resolvable:$true] %s86_s10 }
  0x5d   :  { %s9178_s1 = scalar_lea.hbm %s12063_s5, 2048 }
  0x5e   :  { %p9179_p12 = scmp.ne.s32.totalorder %s12063_s5, %s9178_s1  ;;  %p9182_p13 = scmp.lt.u32.totalorder %s9178_s1, %s12063_s5 }
  0x60   :  { %p9184_p0 = pnand %p9182_p13, %p9179_p12 }
  0x62   :  { %9187 = shalt.err (!%p9184_p0)
}
  0x63   :  { %s9188_s3 = scalar_lea.vmem %s63_s27, 2048  ;;  %p9193_p2 = scmp.lt.s32.totalorder %s63_s27, %s63_s27 }
  0x64   :  { %p9189_p1 = scmp.ne.s32.totalorder %s63_s27, %s9188_s3  ;;  %p9194_p3 = scmp.lt.s32.totalorder %s9188_s3, %s9188_s3 }
  0x66   :  { %p9195_p4 = por %p9194_p3, %p9193_p2 }
  0x68   :  { %p9196_p5 = pnand %p9195_p4, %p9189_p1 }
  0x6a   :  { %9199 = shalt.err (!%p9196_p5)
}
  0x6b   :  { %68 = dma.hbm_to_vmem [thread:$0]  %s12063_s5, 2048, %s63_s27, [#allocation7], %s9305_s12, %s9305_s12, %s9306_s24  }
  0x6c   :  { %s9200_s23 = scalar_lea.hbm %s12066_s8, 1024 }
  0x6d   :  { %p9201_p6 = scmp.ne.s32.totalorder %s12066_s8, %s9200_s23  ;;  %p9204_p7 = scmp.lt.u32.totalorder %s9200_s23, %s12066_s8 }
  0x6f   :  { %p9206_p8 = pnand %p9204_p7, %p9201_p6 }
  0x71   :  { %9209 = shalt.err (!%p9206_p8)
}
  0x72   :  { %s9210_s0 = scalar_lea.vmem %s87_s10, 1024  ;;  %p9215_p10 = scmp.lt.s32.totalorder %s87_s10, %s87_s10 }
  0x73   :  { %p9211_p9 = scmp.ne.s32.totalorder %s87_s10, %s9210_s0  ;;  %p9216_p11 = scmp.lt.s32.totalorder %s9210_s0, %s9210_s0 }
  0x75   :  { %p9217_p12 = por %p9216_p11, %p9215_p10 }
  0x77   :  { %p9218_p13 = pnand %p9217_p12, %p9211_p9 }
  0x79   :  { %9221 = shalt.err (!%p9218_p13)
}
  0x7a   :  { %s9309_s5 = smov 128   ;;  %s9310_s27 = smov 8  }
  0x7b   :  { %92 = dma.hbm_to_vmem [thread:$0]  %s12066_s8, 1024, %s87_s10, [#allocation10], %s9309_s5, %s9309_s5, %s9310_s27  }
  0x7c   :  { %s9311_s30 = smov [#allocation14]   ;;  %s9312_s21 = smov [#allocation17]  }
  0x7d   :  { %s110_s20 = sshll.u32 %s9311_s30, 4  ;;  %s133_s3 = sshll.u32 %s9312_s21, 4  ;;  %s111_s20 = int_to_ptr.vmem [resolvable:$true] %s110_s20  ;;  %s134_s3 = int_to_ptr.vmem [resolvable:$true] %s133_s3 }
  0x7e   :  { %s9222_s28 = scalar_lea.hbm %s12069_s11, 1024 }
  0x7f   :  { %p9223_p0 = scmp.ne.s32.totalorder %s12069_s11, %s9222_s28  ;;  %p9226_p1 = scmp.lt.u32.totalorder %s9222_s28, %s12069_s11 }
  0x81   :  { %p9228_p2 = pnand %p9226_p1, %p9223_p0 }
  0x83   :  { %9231 = shalt.err (!%p9228_p2)
}
  0x84   :  { %s9232_s8 = scalar_lea.vmem %s111_s20, 1024  ;;  %p9237_p4 = scmp.lt.s32.totalorder %s111_s20, %s111_s20 }
  0x85   :  { %p9233_p3 = scmp.ne.s32.totalorder %s111_s20, %s9232_s8  ;;  %p9238_p5 = scmp.lt.s32.totalorder %s9232_s8, %s9232_s8 }
  0x87   :  { %p9239_p6 = por %p9238_p5, %p9237_p4 }
  0x89   :  { %p9240_p7 = pnand %p9239_p6, %p9233_p3 }
  0x8b   :  { %9243 = shalt.err (!%p9240_p7)
}
  0x8c   :  { %116 = dma.hbm_to_vmem [thread:$0]  %s12069_s11, 1024, %s111_s20, [#allocation13], %s9309_s5, %s9309_s5, %s9310_s27  }
  0x8d   :  { %s9244_s1 = scalar_lea.hbm %s12071_s13, 16 }
  0x8e   :  { %p9245_p8 = scmp.ne.s32.totalorder %s12071_s13, %s9244_s1  ;;  %p9248_p9 = scmp.lt.u32.totalorder %s9244_s1, %s12071_s13 }
  0x90   :  { %p9250_p10 = pnand %p9248_p9, %p9245_p8 }
  0x92   :  { %9253 = shalt.err (!%p9250_p10)
}
  0x93   :  { %s9254_s4 = scalar_lea.vmem %s134_s3, 16  ;;  %s9258_s28 = scalar_lea.vmem %s134_s3, 32 }
  0x94   :  { %p9255_p11 = scmp.ne.s32.totalorder %s134_s3, %s9254_s4  ;;  %p9259_p12 = scmp.lt.s32.totalorder %s134_s3, %s134_s3 }
  0x95   :  { %p9260_p13 = scmp.lt.s32.totalorder %s9258_s28, %s9254_s4 }
  0x97   :  { %p9261_p0 = por %p9260_p13, %p9259_p12 }
  0x99   :  { %p9262_p1 = pnand %p9261_p0, %p9255_p11 }
  0x9b   :  { %9265 = shalt.err (!%p9262_p1)
}
  0x9c   :  { %136 = dma.hbm_to_vmem [thread:$0]  %s12071_s13, 16, %s134_s3, [#allocation16]  }
  0x9d   :  { %s9313_s27 = smov [#allocation18]   ;;  %s9266_s25 = scalar_lea.hbm %s12074_s16, 512 }
  0x9e   :  { %s146_s20 = sshll.u32 %s9313_s27, 4  ;;  %p9267_p2 = scmp.ne.s32.totalorder %s12074_s16, %s9266_s25  ;;  %s147_s20 = int_to_ptr.vmem [resolvable:$true] %s146_s20 }
  0x9f   :  { %p9270_p3 = scmp.lt.u32.totalorder %s9266_s25, %s12074_s16 }
  0xa1   :  { %p9272_p4 = pnand %p9270_p3, %p9267_p2 }
  0xa3   :  { %9275 = shalt.err (!%p9272_p4)
}
  0xa4   :  { %s9276_s2 = scalar_lea.vmem %s147_s20, 512  ;;  %p9281_p6 = scmp.lt.s32.totalorder %s147_s20, %s147_s20 }
  0xa5   :  { %p9277_p5 = scmp.ne.s32.totalorder %s147_s20, %s9276_s2  ;;  %p9282_p7 = scmp.lt.s32.totalorder %s9276_s2, %s9276_s2 }
  0xa7   :  { %p9283_p8 = por %p9282_p7, %p9281_p6 }
  0xa9   :  { %p9284_p9 = pnand %p9283_p8, %p9277_p5 }
  0xab   :  { %9287 = shalt.err (!%p9284_p9)
}
  0xac   :  { %152 = dma.hbm_to_vmem [thread:$0]  %s12074_s16, 512, %s147_s20, [#allocation19], %s9305_s12, %s9305_s12, %s9306_s24  }
  0xad   :  { %9288 = dma.done.wait [#allocation5], 768  }
  0xae   :  { %9289 = vsyncadd [#allocation5], 4294966528 }
  0xaf   :  { %9290 = dma.done.wait [#allocation7], 2080  }
  0xb0   :  { %9291 = vsyncadd [#allocation7], 4294965216 }
  0xb1   :  { %9292 = dma.done.wait [#allocation10], 1056  }
  0xb2   :  { %9293 = vsyncadd [#allocation10], 4294966240 }
  0xb3   :  { %9294 = dma.done.wait [#allocation13], 1088  }
  0xb4   :  { %9295 = vsyncadd [#allocation13], 4294966208 }
  0xb5   :  { %9296 = dma.done.wait [#allocation16], 32  }
  0xb6   :  { %9297 = vsyncadd [#allocation16], 4294967264 }
  0xb7   :  { %9298 = dma.done.wait [#allocation19], 512  }
  0xb8   :  { %9299 = vsyncadd [#allocation19], 4294966784  ;;  %v12079_v0 = vmov 0.0   ;;  %v194_v1 = vld [vmem:[#allocation4 + $0x8] sm:$0xff]  ;;  %v196_v2 = vld [vmem:[#allocation4 + $0x18] sm:$0xff]  ;;  %vm236_vm0 = vcmask 1044480   ;;  %v201_v37 = vlaneseq }
  0xb9   :  { %307 = vmatprep.mubr.f32.mxu0 %v12079_v0  ;;  %331 = vmatprep.mubr.f32.mxu1 %v12079_v0  ;;  %v193_v3 = vld [vmem:[#allocation4] sm:$0xff]  ;;  %v7706_v4 = vpack.c.bf16 %v196_v2, %v194_v1  ;;  %v195_v5 = vld [vmem:[#allocation4 + $0x10] sm:$0xff]  ;;  %v198_v7 = vld [vmem:[#allocation4 + $0x28] sm:$0x1f]  ;;  %s12104_s24 = sld [smem:[#allocation40_spill]]  ;;  %vm211_vm1 = vcmask 171008  }
  0xba   :  { %v7708_v6 = vpack.c.bf16 %v195_v5, %v193_v3  ;;  %v594_v8 = vld [vmem:[#allocation8 + $0x8] sm:$0xff]  ;;  %v596_v9 = vld [vmem:[#allocation8 + $0x18] sm:$0xff]  ;;  %v593_v10 = vld [vmem:[#allocation8] sm:$0xff]  ;;  %v202_v38 = vshrl.u32 %v201_v37, 7  ;;  %s9315_s4 = smov 64   ;;  %vm409_vm2 = vcmask 1043456  }
  0xbb   :  { %7707 = vmatprep.subr.bf16.mxu0 %v7706_v4  ;;  %v595_v11 = vld [vmem:[#allocation8 + $0x10] sm:$0xff]  ;;  %8764 = vmatprep.subr.bf16.mxu1 %v7706_v4  ;;  %v598_v12 = vld [vmem:[#allocation8 + $0x28] sm:$0xff]  ;;  %v600_v13 = vld [vmem:[#allocation8 + $0x38] sm:$0xff]  ;;  %v9547_v15 = vpack.c.bf16 %v596_v9, %v594_v8  ;;  %vm9316_vm3 = vmmov 1   ;;  %s12105_s21 = sld [smem:[#allocation41_spill]]  ;;  %vm384_vm5 = vcmask 97280  }
  0xbc   :  { %7709 = vmatpush1.bf16.msra.mxu0 %v7708_v6  ;;  %8766 = vmatpush1.bf16.msra.mxu1 %v7708_v6  ;;  %v197_v14 = vld [vmem:[#allocation4 + $0x20] sm:$0x1f]  ;;  %v9553_v17 = vpack.c.bf16 %v595_v11, %v593_v10  ;;  %v9555_v18 = vpack.c.bf16 %v600_v13, %v598_v12  ;;  %v597_v19 = vld [vmem:[#allocation8 + $0x20] sm:$0xff]  ;;  %v604_v22 = vld [vmem:[#allocation8 + $0x58] sm:$0xff]  ;;  %v9604_v39 = vsub.s32 0, %v202_v38  ;;  %v9610_v46 = vsub.s32 1, %v202_v38 }
  0xbd   :  { %6844 = vmatprep.subr.msk.mxu0 %vm236_vm0, %v198_v7  ;;  %8765 = vmatprep.subr.msk.mxu1 %vm236_vm0, %v198_v7  ;;  %v599_v20 = vld [vmem:[#allocation8 + $0x30] sm:$0xff]  ;;  %v602_v21 = vld [vmem:[#allocation8 + $0x48] sm:$0xff]  ;;  %v601_v26 = vld [vmem:[#allocation8 + $0x40] sm:$0xff]  ;;  %vm530_vm6 = vcmask 130048   ;;  %vm609_vm7 = vcmask 523264   ;;  %vm9318_vm8 = vmmov 0  }
  0xbe   :  { %v9566_v24 = vpack.c.bf16 %v599_v20, %v597_v19  ;;  %v9569_v25 = vpack.c.bf16 %v604_v22, %v602_v21  ;;  %v603_v27 = vld [vmem:[#allocation8 + $0x50] sm:$0xff]  ;;  %v606_v28 = vld [vmem:[#allocation8 + $0x68] sm:$0xff]  ;;  %v608_v29 = vld [vmem:[#allocation8 + $0x78] sm:$0xff]  ;;  %vm1207_vm9 = vcmask 1042432   ;;  %s12115_s30 = sld [smem:[#allocation42_spill]]  ;;  %vm1203_vm10 = vcmask 23552  }
  0xbf   :  { %v185_v16 = vld [vmem:[%s12104_s24] sm:$0xff]  ;;  %v186_v23 = vld [vmem:[%s12104_s24 + $0x8] sm:$0xff]  ;;  %v187_v30 = vld [vmem:[%s12104_s24 + $0x10] sm:$0xff]  ;;  %v9577_v31 = vpack.c.bf16 %v603_v27, %v601_v26  ;;  %v9580_v32 = vpack.c.bf16 %v608_v29, %v606_v28  ;;  %vm1581_vm12 = vcmask 1040384   ;;  %vm1550_vm14 = vcmask 72704  }
  0xc0   :  { %6845 = vmatpush1.msk.msra.mxu0 %vm236_vm0, %v197_v14  ;;  %8767 = vmatpush1.msk.msra.mxu1 %vm236_vm0, %v197_v14  ;;  %v605_v33 = vld [vmem:[#allocation8 + $0x60] sm:$0xff]  ;;  %v607_v34 = vld [vmem:[#allocation8 + $0x70] sm:$0xff]  ;;  %v199_v40 = vld [vmem:[#allocation6] sm:$0x3]  ;;  %vm1577_vm15 = vcmask 203776  }
  0xc1   :  { %6846 = vmatmul.mubr.msk.f32.vlgmr.msra.gmra.mrb[0].mxu0 %vm211_vm1, %v185_v16  ;;  %7717 = vmatprep.subr.bf16.mxu0 %v9547_v15  ;;  %v188_v35 = vld [vmem:[%s12104_s24 + $0x18] sm:$0xff]  ;;  %v9588_v36 = vpack.c.bf16 %v607_v34, %v605_v33  ;;  %v9607_v41 = vrot.slane %v199_v40, %v9604_v39  ;;  %v9613_v47 = vrot.slane %v199_v40, %v9610_v46  ;;  %v189_v54 = vld [vmem:[%s12104_s24 + $0x20] sm:$0xff]  ;;  %v383_v56 = vld [vmem:[#allocation18 + $0x18] sm:$0xf] }
  0xc2   :  { %7719 = vmatpush1.bf16.msra.mxu0 %v9553_v17  ;;  %313 = vmatprep.mubr.f32.mxu0 %v12079_v0  ;;  %v381_v55 = vld [vmem:[#allocation18 + $0x8] sm:$0xff]  ;;  %vm7711_vm4 = vmpackc.low %vm409_vm2, %vm9316_vm3  ;;  %v380_v58 = vld [vmem:[#allocation18] sm:$0xff] }
  0xc3   :  { %7721 = vmatprep.subr.bf16.mxu0 %v9555_v18  ;;  %6850 = vmatmul.mubr.msk.f32.vlgmr.msra.gmra.mrb[0].mxu1 %vm211_vm1, %v189_v54  ;;  %v7710_v57 = vpack.c.bf16 %v383_v56, %v381_v55  ;;  %v382_v59 = vld [vmem:[#allocation18 + $0x10] sm:$0xf]  ;;  %v716_v63 = vld [vmem:[%s12064_s6 + $0x18] sm:$0xff]  ;;  %v191_v2 = vld [vmem:[%s12104_s24 + $0x30] sm:$0xff] }
  0xc4   :  { %v7713_v60 = vpack.c.bf16 %v382_v59, %v380_v58  ;;  %337 = vmatprep.mubr.f32.mxu1 %v12079_v0  ;;  %v190_v61 = vld [vmem:[%s12104_s24 + $0x28] sm:$0xff]  ;;  %v192_v3 = vld [vmem:[%s12104_s24 + $0x38] sm:$0xff]  ;;  %v713_v4 = vld [vmem:[%s12064_s6] sm:$0xff] }
  0xc5   :  { %6847 = vmatmul.mubr.msk.f32.gmra.mrb[2].mxu0 %vm211_vm1, %v186_v23  ;;  %7712 = vmatprep.subr.msk.bf16.mxu1 %vm7711_vm4, %v7710_v57  ;;  %v714_v62 = vld [vmem:[%s12064_s6 + $0x8] sm:$0xff]  ;;  %v715_v5 = vld [vmem:[%s12064_s6 + $0x10] sm:$0xff]  ;;  %v720_v7 = vld [vmem:[%s12064_s6 + $0x38] sm:$0xff] }
  0xc6   :  { %7723 = vmatpush1.bf16.msra.mxu0 %v9566_v24  ;;  %319 = vmatprep.mubr.f32.mxu0 %v12079_v0  ;;  %v9639_v1 = vpack.c.bf16 %v716_v63, %v714_v62  ;;  %v718_v6 = vld [vmem:[%s12064_s6 + $0x28] sm:$0xff]  ;;  %v372_v8 = vld [vmem:[%s12105_s21] sm:$0xff]  ;;  %v9668_v9 = vpack.c.bf16 %v715_v5, %v713_v4  ;;  %v719_v12 = vld [vmem:[%s12064_s6 + $0x30] sm:$0xff] }
  0xc7   :  { %7725 = vmatprep.subr.bf16.mxu0 %v9569_v25  ;;  %7715 = vmatpush1.bf16.msk.msra.mxu1 %vm7711_vm4, %v7713_v60  ;;  %v9670_v10 = vpack.c.bf16 %v720_v7, %v718_v6  ;;  %v717_v11 = vld [vmem:[%s12064_s6 + $0x20] sm:$0xff]  ;;  %v722_v13 = vld [vmem:[%s12064_s6 + $0x48] sm:$0xff]  ;;  %v724_v14 = vld [vmem:[%s12064_s6 + $0x58] sm:$0xff] }
  0xc8   :  { %6851 = vmatmul.mubr.msk.f32.gmra.mrb[2].mxu1 %vm211_vm1, %v190_v61  ;;  %7733 = vmatprep.subr.bf16.mxu1 %v9639_v1  ;;  %v373_v16 = vld [vmem:[%s12105_s21 + $0x8] sm:$0xff]  ;;  %v9690_v19 = vpack.c.bf16 %v719_v12, %v717_v11  ;;  %v9693_v20 = vpack.c.bf16 %v724_v14, %v722_v13  ;;  %v721_v21 = vld [vmem:[%s12064_s6 + $0x40] sm:$0xff]  ;;  %v723_v22 = vld [vmem:[%s12064_s6 + $0x50] sm:$0xff] }
  0xc9   :  { %6848 = vmatmul.mubr.msk.f32.gmra.mrb[4].mxu0 %vm211_vm1, %v187_v30  ;;  %343 = vmatprep.mubr.f32.mxu1 %v12079_v0  ;;  %v726_v23 = vld [vmem:[%s12064_s6 + $0x68] sm:$0xff]  ;;  %v728_v26 = vld [vmem:[%s12064_s6 + $0x78] sm:$0xff]  ;;  %v374_v27 = vld [vmem:[%s12105_s21 + $0x10] sm:$0xff]  ;;  %v9713_v28 = vpack.c.bf16 %v723_v22, %v721_v21 }
  0xca   :  { %7727 = vmatpush1.bf16.msra.mxu0 %v9577_v31  ;;  %325 = vmatprep.mubr.f32.mxu0 %v12079_v0  ;;  %v9716_v29 = vpack.c.bf16 %v728_v26, %v726_v23  ;;  %v725_v30 = vld [vmem:[%s12064_s6 + $0x60] sm:$0xff]  ;;  %v727_v33 = vld [vmem:[%s12064_s6 + $0x70] sm:$0xff]  ;;  %v730_v34 = vld [vmem:[%s12064_s6 + $0x88] sm:$0xff] }
  0xcb   :  { %7729 = vmatprep.subr.bf16.mxu0 %v9580_v32  ;;  %v375_v37 = vld [vmem:[%s12105_s21 + $0x18] sm:$0xff]  ;;  %v9736_v38 = vpack.c.bf16 %v727_v33, %v725_v30  ;;  %v735_v54 = vld [vmem:[%s12064_s6 + $0xb0] sm:$0xff]  ;;  %v738_v55 = vld [vmem:[%s12064_s6 + $0xc8] sm:$0xff] }
  0xcc   :  { %6852 = vmatmul.mubr.msk.f32.gmra.mrb[4].mxu1 %vm211_vm1, %v191_v2  ;;  %v740_v56 = vld [vmem:[%s12064_s6 + $0xd8] sm:$0xff]  ;;  %v377_v57 = vld [vmem:[%s12105_s21 + $0x28] sm:$0xff]  ;;  %v737_v60 = vld [vmem:[%s12064_s6 + $0xc0] sm:$0xff] }
  0xcd   :  { %6849 = vmatmul.mubr.msk.f32.gmra.mrb[6].mxu0 %vm211_vm1, %v188_v35  ;;  %349 = vmatprep.mubr.f32.mxu1 %v12079_v0  ;;  %v732_v35 = vld [vmem:[%s12064_s6 + $0x98] sm:$0xff]  ;;  %v9785_v59 = vpack.c.bf16 %v740_v56, %v738_v55  ;;  %v739_v61 = vld [vmem:[%s12064_s6 + $0xd0] sm:$0xff]  ;;  %v742_v62 = vld [vmem:[%s12064_s6 + $0xe8] sm:$0xff] }
  0xce   :  { %7731 = vmatpush1.bf16.msra.mxu0 %v9588_v36  ;;  %677 = vmatprep.mubr.f32.mxu0 %v12079_v0  ;;  %v9739_v40 = vpack.c.bf16 %v732_v35, %v730_v34  ;;  %v744_v63 = vld [vmem:[%s12064_s6 + $0xf8] sm:$0xff]  ;;  %v378_v2 = vld [vmem:[%s12105_s21 + $0x30] sm:$0xff]  ;;  %v741_v5 = vld [vmem:[%s12064_s6 + $0xe0] sm:$0xff] }
  0xcf   :  { %7777 = vmatprep.subr.bf16.mxu0 %v9547_v15  ;;  %v9808_v4 = vpack.c.bf16 %v744_v63, %v742_v62  ;;  %v743_v6 = vld [vmem:[%s12064_s6 + $0xf0] sm:$0xff]  ;;  %v379_v7 = vld [vmem:[%s12105_s21 + $0x38] sm:$0xff]  ;;  %vm10197_vm13 = vmpackc.low %vm1581_vm12, %vm9316_vm3 }
  0xd0   :  { %6853 = vmatmul.mubr.msk.f32.gmra.mrb[6].mxu1 %vm211_vm1, %v192_v3  ;;  %v9805_v3 = vpack.c.bf16 %v739_v61, %v737_v60 }
  0xd1   :  { %678 = vmatmul.mubr.f32.vlgmr.msra.gmra.mrb[0].mxu0 %v12079_v0  ;;  %480 = vmatprep.mubr.f32.mxu1 %v12079_v0 }
  0xd2   :  { %7779 = vmatpush1.bf16.msra.mxu0 %v9553_v17  ;;  %993 = vmatprep.mubr.f32.mxu0 %v12079_v0 }
  0xd3   :  { %7781 = vmatprep.subr.bf16.mxu0 %v9555_v18 }
  0xd4   :  { %6856 = vmatmul.mubr.msk.f32.vlgmr.msra.gmra.mrb[8].mxu1 %vm384_vm5, %v372_v8  ;;  %v9822_v8 = vpack.c.bf16 %v743_v6, %v741_v5 }
  0xd5   :  { %7735 = vmatpush1.bf16.msra.mxu1 %v9668_v9  ;;  %486 = vmatprep.mubr.f32.mxu1 %v12079_v0 }
  0xd6   :  { %7783 = vmatpush1.bf16.msra.mxu0 %v9566_v24  ;;  %7737 = vmatprep.subr.bf16.mxu1 %v9670_v10 }
  0xd7   :  { %7785 = vmatprep.subr.bf16.mxu0 %v9569_v25 }
  0xd8   :  { %6857 = vmatmul.mubr.msk.f32.gmra.mrb[10].mxu1 %vm384_vm5, %v373_v16 }
  0xd9   :  { %7739 = vmatpush1.bf16.msra.mxu1 %v9690_v19  ;;  %492 = vmatprep.mubr.f32.mxu1 %v12079_v0 }
  0xda   :  { %7787 = vmatpush1.bf16.msra.mxu0 %v9577_v31  ;;  %7741 = vmatprep.subr.bf16.mxu1 %v9693_v20 }
  0xdb   :  { %7789 = vmatprep.subr.bf16.mxu0 %v9580_v32 }
  0xdc   :  { %6858 = vmatmul.mubr.msk.f32.gmra.mrb[12].mxu1 %vm384_vm5, %v374_v27 }
  0xdd   :  { %7743 = vmatpush1.bf16.msra.mxu1 %v9713_v28  ;;  %498 = vmatprep.mubr.f32.mxu1 %v12079_v0 }
  0xde   :  { %7791 = vmatpush1.bf16.msra.mxu0 %v9588_v36  ;;  %7745 = vmatprep.subr.bf16.mxu1 %v9716_v29 }
  0xe0   :  { %6859 = vmatmul.mubr.msk.f32.gmra.mrb[14].mxu1 %vm384_vm5, %v375_v37 }
  0xe1   :  { %7747 = vmatpush1.bf16.msra.mxu1 %v9736_v38  ;;  %504 = vmatprep.mubr.f32.mxu1 %v12079_v0 }
  0xe2   :  { %7749 = vmatprep.subr.bf16.mxu1 %v9739_v40 }
 0x196   :  { %v9834_v27 = vpop.f32.mrb[0].mxu1 }
 0x197   :  { %12106 = vst [vmem:[#allocation26_spill] sm:$0xff] %v9834_v27  ;;  %v9836_v30 = vpop.f32.mrb[1].mxu1 }
 0x198   :  { %12107 = vst [vmem:[#allocation27_spill] sm:$0xff] %v9836_v30 }
 0x1a4   :  { %v679_v42 = vpop.f32.mrb[0].mxu0 }
 0x1a5   :  { %v8768_v43 = vadd.f32 %v679_v42, %v9607_v41  ;;  %v681_v44 = vpop.f32.mrb[1].mxu0  ;;  %v729_v42 = vld [vmem:[%s12064_s6 + $0x80] sm:$0xff] }
 0x1a6   :  { %v9616_v48 = vadd.f32 %v681_v44, %v9613_v47  ;;  %v734_v44 = vld [vmem:[%s12064_s6 + $0xa8] sm:$0xff] }
 0x1a7   :  { %v6867_v45 = vmul.f32 -1.442695, %v8768_v43  ;;  %v731_v43 = vld [vmem:[%s12064_s6 + $0x90] sm:$0xff] }
 0x1a8   :  { %v6868_v11 = vmul.f32 -1.442695, %v9616_v48 }
 0x1a9   :  { %8820 = vpow2.f32 %v6867_v45  ;;  %v736_v45 = vld [vmem:[%s12064_s6 + $0xb8] sm:$0xff] }
 0x1aa   :  { %8822 = vtanh.f32 %v9616_v48  ;;  %v9838_v48 = vpop.f32.mrb[2].mxu1 }
 0x1ab   :  { %12108 = vst [vmem:[#allocation28_spill] sm:$0xff] %v9838_v48  ;;  %v9840_v33 = vpop.f32.mrb[3].mxu1 }
 0x1ac   :  { %12109 = vst [vmem:[#allocation29_spill] sm:$0xff] %v9840_v33 }
 0x1b3   :  { %v8821_v49 = vpop.eup %8820 }
 0x1b4   :  { %v689_v50 = vadd.f32 1.0, %v8821_v49  ;;  %v8823_v51 = vpop.eup %8822  ;;  %v376_v49 = vld [vmem:[%s12105_s21 + $0x20] sm:$0xff]  ;;  %s9319_s21 = smov 9  }
 0x1b5   :  { %6860 = vmatmul.mubr.msk.f32.gmra.mrb[16].mxu1 %vm384_vm5, %v376_v49 }
 0x1b6   :  { %8824 = vrcp.f32 %v689_v50  ;;  %v9759_v50 = vpack.c.bf16 %v731_v43, %v729_v42  ;;  %510 = vmatprep.mubr.f32.mxu1 %v12079_v0 }
 0x1b7   :  { %8826 = vpow2.f32 %v6868_v11 }
 0x1b8   :  { %7751 = vmatpush1.bf16.msra.mxu1 %v9759_v50 }
 0x1b9   :  { %6861 = vmatmul.mubr.msk.f32.gmra.mrb[18].mxu1 %vm384_vm5, %v377_v57 }
 0x1ba   :  { %516 = vmatprep.mubr.f32.mxu1 %v12079_v0 }
 0x1bd   :  { %6862 = vmatmul.mubr.msk.f32.gmra.mrb[20].mxu1 %vm384_vm5, %v378_v2 }
 0x1be   :  { %522 = vmatprep.mubr.f32.mxu1 %v12079_v0 }
 0x1c0   :  { %v9619_v52 = vpop.eup %8824 }
 0x1c1   :  { %v700_v53 = vmul.f32 %v9619_v52, %v8823_v51  ;;  %v9762_v51 = vpack.c.bf16 %v736_v45, %v734_v44  ;;  %6863 = vmatmul.mubr.msk.f32.gmra.mrb[22].mxu1 %vm384_vm5, %v379_v7  ;;  %v8827_v12 = vpop.eup %8826  ;;  %v699_v14 = vmul.f32 0.0, %v9619_v52  ;;  %v9842_v52 = vpop.f32.mrb[4].mxu1  ;;  %v546_v7 = vld [vmem:[#allocation9] sm:$0x3] }
 0x1c2   :  { %809 = vmatprep.mubr.f32.mxu1 %v12079_v0  ;;  %v696_v13 = vadd.f32 1.0, %v8827_v12  ;;  %12110 = vst [vmem:[#allocation30_spill] sm:$0xff] %v9842_v52  ;;  %v9844_v34 = vpop.f32.mrb[5].mxu1  ;;  %v9865_v11 = vrot.slane %v546_v7, %v9604_v39 }
 0x1c3   :  { %702 = vrot.lane.b32.xlu0 %v700_v53, %s9315_s4  ;;  %v733_v53 = vld [vmem:[%s12064_s6 + $0xa0] sm:$0xff]  ;;  %7753 = vmatprep.subr.bf16.mxu1 %v9762_v51  ;;  %12111 = vst [vmem:[#allocation31_spill] sm:$0xff] %v9844_v34  ;;  %v9846_v35 = vpop.f32.mrb[6].mxu1 }
 0x1c4   :  { %v9782_v58 = vpack.c.bf16 %v735_v54, %v733_v53  ;;  %8828 = vrcp.f32 %v696_v13  ;;  %12112 = vst [vmem:[#allocation32_spill] sm:$0xff] %v9846_v35  ;;  %v9848_v37 = vpop.f32.mrb[7].mxu1  ;;  %v1463_v35 = vld [vmem:[%s12072_s14 + $0x78] sm:$0xff] }
 0x1c5   :  { %12113 = vst [vmem:[#allocation33_spill] sm:$0xff] %v9848_v37  ;;  %v9850_v42 = vpop.f32.mrb[8].mxu1 }
 0x1c6   :  { %7755 = vmatpush1.bf16.msra.mxu1 %v9782_v58  ;;  %v484_v43 = vpop.f32.mrb[9].mxu1 }
 0x1c7   :  { %7757 = vmatprep.subr.bf16.mxu1 %v9785_v59  ;;  %531 = vst.msk [vmem:[#allocation3 + $0x8] sm:$0xff] %vm530_vm6, %v484_v43  ;;  %v9853_v44 = vpop.f32.mrb[10].mxu1 }
 0x1c8   :  { %v490_v45 = vpop.f32.mrb[11].mxu1 }
 0x1c9   :  { %533 = vst.msk [vmem:[#allocation3 + $0x18] sm:$0xff] %vm530_vm6, %v490_v45  ;;  %v494_v49 = vpop.f32.mrb[12].mxu1  ;;  %v9870_v45 = vrot.slane %v546_v7, %v9610_v46  ;;  %v839_v7 = vld [vmem:[#allocation11 + $0x8] sm:$0xff] }
 0x1ca   :  { %7759 = vmatpush1.bf16.msra.mxu1 %v9805_v3  ;;  %534 = vst [vmem:[#allocation3 + $0x20] sm:$0xff] %v494_v49  ;;  %v496_v53 = vpop.f32.mrb[13].mxu1 }
 0x1cb   :  { %7761 = vmatprep.subr.bf16.mxu1 %v9808_v4  ;;  %535 = vst.msk [vmem:[#allocation3 + $0x28] sm:$0xff] %vm530_vm6, %v496_v53  ;;  %v500_v54 = vpop.f32.mrb[14].mxu1 }
 0x1cc   :  { %536 = vst [vmem:[#allocation3 + $0x30] sm:$0xff] %v500_v54  ;;  %v502_v55 = vpop.f32.mrb[15].mxu1 }
 0x1cd   :  { %537 = vst.msk [vmem:[#allocation3 + $0x38] sm:$0xff] %vm530_vm6, %v502_v55 }
 0x1ce   :  { %7763 = vmatpush1.bf16.msra.mxu1 %v9822_v8  ;;  %v8829_v22 = vpop.eup %8828 }
 0x235   :  { %v703_v16 = vpop.permute.xlu0 %702 }
 0x236   :  { %v9830_v21 = vadd.f32 %v703_v16, %v699_v14 }
 0x238   :  { %8830 = vtanh.f32 %v9830_v21 }
 0x242   :  { %v8831_v23 = vpop.eup %8830 }
 0x243   :  { %v707_v26 = vmul.f32 %v8831_v23, %v8829_v22 }
 0x245   :  { %709 = vrot.lane.b32.xlu0 %v707_v26, %s9315_s4 }
 0x288   :  { %v506_v57 = vpop.f32.mrb[16].mxu1 }
 0x289   :  { %538 = vst [vmem:[#allocation3 + $0x40] sm:$0xff] %v506_v57  ;;  %v508_v60 = vpop.f32.mrb[17].mxu1 }
 0x28a   :  { %539 = vst.msk [vmem:[#allocation3 + $0x48] sm:$0xff] %vm530_vm6, %v508_v60 }
 0x28c   :  { %v512_v61 = vpop.f32.mrb[18].mxu1 }
 0x28d   :  { %540 = vst [vmem:[#allocation3 + $0x50] sm:$0xff] %v512_v61  ;;  %v514_v62 = vpop.f32.mrb[19].mxu1 }
 0x28e   :  { %541 = vst.msk [vmem:[#allocation3 + $0x58] sm:$0xff] %vm530_vm6, %v514_v62 }
 0x290   :  { %v518_v63 = vpop.f32.mrb[20].mxu1 }
 0x291   :  { %542 = vst [vmem:[#allocation3 + $0x60] sm:$0xff] %v518_v63  ;;  %v520_v2 = vpop.f32.mrb[21].mxu1 }
 0x292   :  { %543 = vst.msk [vmem:[#allocation3 + $0x68] sm:$0xff] %vm530_vm6, %v520_v2 }
 0x294   :  { %v524_v5 = vpop.f32.mrb[22].mxu1 }
 0x295   :  { %544 = vst [vmem:[#allocation3 + $0x70] sm:$0xff] %v524_v5  ;;  %v526_v6 = vpop.f32.mrb[23].mxu1 }
 0x296   :  { %545 = vst.msk [vmem:[#allocation3 + $0x78] sm:$0xff] %vm530_vm6, %v526_v6  ;;  %v838_v6 = vld [vmem:[#allocation11] sm:$0xff] }
 0x2b7   :  { %v710_v56 = vpop.permute.xlu0 %709 }
 0x2b8   :  { %6869 = vmatmul.mubr.msk.f32.vlgmr.msra.gmra.mrb[24].mxu1 %vm609_vm7, %v710_v56  ;;  %6873 = vmatmul.mubr.msk.f32.vlgmr.msra.gmra.mrb[2].mxu0 %vm609_vm7, %v710_v56 }
 0x2b9   :  { %7226 = vmatprep.mubr.msk.f32.mxu1 %vm9318_vm8, %v12079_v0  ;;  %7245 = vmatprep.mubr.msk.f32.mxu0 %vm9318_vm8, %v12079_v0 }
 0x38b   :  { %v811_v12 = vpop.f32.mrb[24].mxu1  ;;  %v995_v13 = vpop.f32.mrb[2].mxu0 }
 0x38c   :  { %v812_v14 = vadd.f32 %v811_v12, %v9865_v11  ;;  %v8770_v16 = vadd.f32 %v995_v13, %v9607_v41  ;;  %v813_v22 = vpop.f32.mrb[25].mxu1  ;;  %v997_v23 = vpop.f32.mrb[3].mxu0  ;;  %v840_v12 = vld [vmem:[#allocation11 + $0x10] sm:$0xff]  ;;  %v12081_v13 = vmov 0.0|0.0  }
 0x38d   :  { %v814_v49 = vadd.f32 %v813_v22, %v9870_v45  ;;  %v8771_v53 = vadd.f32 %v997_v23, %v9613_v47  ;;  %7764 = vmatprep.subr.bf16.mxu1 %v12081_v13  ;;  %7824 = vmatprep.subr.bf16.mxu0 %v12081_v13  ;;  %v842_v23 = vld [vmem:[#allocation11 + $0x20] sm:$0xff] }
 0x38e   :  { %v6870_v26 = vmul.f32 -1.442695, %v812_v14  ;;  %v6874_v43 = vmul.f32 -1.442695, %v8770_v16  ;;  %v9877_v14 = vpack.c.bf16 %v839_v7, %v838_v6  ;;  %v841_v16 = vld [vmem:[#allocation11 + $0x18] sm:$0xff] }
 0x38f   :  { %v9885_v22 = vpack.c.bf16 %v841_v16, %v840_v12 }
 0x390   :  { %8832 = vpow2.f32 %v6870_v26  ;;  %7766 = vmatpush3.bf16.msra.mxu1 %v9877_v14  ;;  %7826 = vmatpush3.bf16.msra.mxu0 %v9877_v14  ;;  %v843_v26 = vld [vmem:[#allocation11 + $0x28] sm:$0xff] }
 0x391   :  { %8834 = vpow2.f32 %v6874_v43  ;;  %7767 = vmatprep.subr.bf16.mxu1 %v12081_v13  ;;  %7827 = vmatprep.subr.bf16.mxu0 %v12081_v13  ;;  %v9891_v43 = vpack.c.bf16 %v843_v26, %v842_v23 }
 0x392   :  { %8836 = vtanh.f32 %v814_v49 }
 0x393   :  { %8838 = vtanh.f32 %v8771_v53 }
 0x394   :  { %7769 = vmatpush3.bf16.msra.mxu1 %v9885_v22  ;;  %7829 = vmatpush3.bf16.msra.mxu0 %v9885_v22 }
 0x395   :  { %7770 = vmatprep.subr.bf16.mxu1 %v12081_v13  ;;  %7830 = vmatprep.subr.bf16.mxu0 %v12081_v13 }
 0x398   :  { %7772 = vmatpush3.bf16.msra.mxu1 %v9891_v43  ;;  %7832 = vmatpush3.bf16.msra.mxu0 %v9891_v43 }
 0x399   :  { %7773 = vmatprep.subr.bf16.mxu1 %v12081_v13  ;;  %7833 = vmatprep.subr.bf16.mxu0 %v12081_v13 }
 0x39a   :  { %v8833_v54 = vpop.eup %8832 }
 0x39b   :  { %v8835_v55 = vpop.eup %8834  ;;  %v819_v56 = vadd.f32 1.0, %v8833_v54  ;;  %v844_v54 = vld [vmem:[#allocation11 + $0x30] sm:$0xff] }
 0x39c   :  { %v1005_v57 = vadd.f32 1.0, %v8835_v55  ;;  %v8837_v60 = vpop.eup %8836  ;;  %v845_v55 = vld [vmem:[#allocation11 + $0x38] sm:$0xff] }
 0x39d   :  { %8840 = vrcp.f32 %v819_v56  ;;  %v8839_v61 = vpop.eup %8838  ;;  %v9897_v56 = vpack.c.bf16 %v845_v55, %v844_v54 }
 0x39e   :  { %8842 = vrcp.f32 %v1005_v57  ;;  %v6871_v57 = vmul.f32 -1.442695, %v814_v49 }
 0x39f   :  { %7775 = vmatpush3.bf16.msra.mxu1 %v9897_v56  ;;  %7835 = vmatpush3.bf16.msra.mxu0 %v9897_v56 }
 0x3a0   :  { %7793 = vmatprep.subr.bf16.mxu1 %v9639_v1  ;;  %7248 = vmatprep.subr.mxu0 %v12079_v0  ;;  %8844 = vpow2.f32 %v6871_v57 }
 0x3a7   :  { %v8841_v62 = vpop.eup %8840 }
 0x3a8   :  { %v8843_v63 = vpop.eup %8842  ;;  %v830_v2 = vmul.f32 %v8841_v62, %v8837_v60  ;;  %v6875_v60 = vmul.f32 -1.442695, %v8771_v53  ;;  %v829_v6 = vmul.f32 0.0, %v8841_v62 }
 0x3a9   :  { %v1016_v5 = vmul.f32 %v8843_v63, %v8839_v61  ;;  %v1015_v23 = vmul.f32 %v8843_v63, %v9830_v21 }
 0x3aa   :  { %832 = vrot.lane.b32.xlu1 %v830_v2, %s9315_s4  ;;  %8846 = vpow2.f32 %v6875_v60  ;;  %v8845_v61 = vpop.eup %8844 }
 0x3ab   :  { %v826_v2 = vadd.f32 1.0, %v8845_v61 }
 0x3ad   :  { %8848 = vrcp.f32 %v826_v2 }
 0x3ae   :  { %1018 = vrot.lane.b32.xlu1 %v1016_v5, %s9315_s4 }
 0x3b4   :  { %v8847_v5 = vpop.eup %8846 }
 0x3b5   :  { %v1012_v16 = vadd.f32 1.0, %v8847_v5 }
 0x3b7   :  { %v8849_v49 = vpop.eup %8848 }
 0x41c   :  { %v833_v7 = vpop.permute.xlu1 %832 }
 0x41d   :  { %v835_v12 = vadd.f32 %v833_v7, %v829_v6 }
 0x41f   :  { %8850 = vtanh.f32 %v835_v12 }
 0x420   :  { %v1019_v26 = vpop.permute.xlu1 %1018  ;;  %8852 = vrcp.f32 %v1012_v16 }
 0x421   :  { %v9907_v54 = vadd.f32 %v1019_v26, %v1015_v23 }
 0x423   :  { %8854 = vtanh.f32 %v9907_v54 }
 0x429   :  { %v8851_v53 = vpop.eup %8850 }
 0x42a   :  { %v837_v55 = vmul.f32 %v8851_v53, %v8849_v49  ;;  %v8853_v57 = vpop.eup %8852 }
 0x42c   :  { %847 = vrot.lane.b32.xlu0 %v837_v55, %s9315_s4 }
 0x42d   :  { %v8855_v62 = vpop.eup %8854 }
 0x42e   :  { %v1023_v60 = vmul.f32 %v8855_v62, %v8853_v57 }
 0x430   :  { %1025 = vrot.lane.b32.xlu1 %v1023_v60, %s9315_s4 }
 0x49e   :  { %v848_v61 = vpop.permute.xlu0 %847 }
 0x49f   :  { %7227 = vmatmul.mubr.msk.f32.vlgmr.msra.gmra.mrb[26].mxu1 %vm609_vm7, %v848_v61 }
 0x4a0   :  { %7795 = vmatpush1.bf16.msra.mxu1 %v9668_v9  ;;  %1093 = vmatprep.mubr.f32.mxu1 %v12079_v0 }
 0x4a1   :  { %7797 = vmatprep.subr.bf16.mxu1 %v9670_v10 }
 0x4a2   :  { %v9928_v21 = vpop.permute.xlu1 %1025 }
 0x4a3   :  { %v1028_v63 = vsel %vm609_vm7, %v9928_v21, %v837_v55 }
 0x4a4   :  { %7799 = vmatpush1.bf16.msra.mxu1 %v9690_v19 }
 0x4a5   :  { %7801 = vmatprep.subr.bf16.mxu1 %v9693_v20 }
 0x4a8   :  { %7803 = vmatpush1.bf16.msra.mxu1 %v9713_v28 }
 0x4a9   :  { %7805 = vmatprep.subr.bf16.mxu1 %v9716_v29 }
 0x4ac   :  { %7807 = vmatpush1.bf16.msra.mxu1 %v9736_v38 }
 0x4ad   :  { %7809 = vmatprep.subr.bf16.mxu1 %v9739_v40 }
 0x4b0   :  { %7811 = vmatpush1.bf16.msra.mxu1 %v9759_v50 }
 0x4b1   :  { %7813 = vmatprep.subr.bf16.mxu1 %v9762_v51 }
 0x4b4   :  { %7815 = vmatpush1.bf16.msra.mxu1 %v9782_v58 }
 0x4b5   :  { %7817 = vmatprep.subr.bf16.mxu1 %v9785_v59 }
 0x4b8   :  { %7819 = vmatpush1.bf16.msra.mxu1 %v9805_v3 }
 0x4b9   :  { %7821 = vmatprep.subr.bf16.mxu1 %v9808_v4 }
 0x4bc   :  { %7823 = vmatpush1.bf16.msra.mxu1 %v9822_v8 }
 0x4bd   :  { %7848 = vmatprep.subr.bf16.mxu1 %v12081_v13 }
 0x4bf   :  { %1094 = vmatmul.mubr.f32.vlgmr.msra.gmra.mrb[28].mxu1 %v1028_v63 }
 0x4c0   :  { %7288 = vmatprep.mubr.msk.f32.mxu1 %vm9318_vm8, %v12079_v0 }
 0x572   :  { %v9936_v2 = vpop.f32.mrb[26].mxu1 }
 0x573   :  { %v7228_v5 = vpop.f32.mrb[27].mxu1 }
 0x592   :  { %v1095_v6 = vpop.f32.mrb[28].mxu1 }
 0x593   :  { %v1096_v7 = vadd.f32 %v1095_v6, %v9865_v11  ;;  %v1097_v16 = vpop.f32.mrb[29].mxu1 }
 0x594   :  { %v1098_v26 = vadd.f32 %v1097_v16, %v9870_v45  ;;  %v1283_v16 = vld [vmem:[#allocation14 + $0x8] sm:$0xff] }
 0x595   :  { %v6876_v23 = vmul.f32 -1.442695, %v1096_v7  ;;  %v1282_v7 = vld [vmem:[#allocation14] sm:$0xff] }
 0x596   :  { %v6877_v60 = vmul.f32 -1.442695, %v1098_v26 }
 0x597   :  { %8856 = vpow2.f32 %v6876_v23  ;;  %v9944_v23 = vpack.c.bf16 %v1283_v16, %v1282_v7  ;;  %v1288_v7 = vld [vmem:[#allocation14 + $0x30] sm:$0xff]  ;;  %v1289_v16 = vld [vmem:[#allocation14 + $0x38] sm:$0xff] }
 0x598   :  { %8858 = vtanh.f32 %v1098_v26 }
 0x599   :  { %7850 = vmatpush3.bf16.msra.mxu1 %v9944_v23 }
 0x59a   :  { %7851 = vmatprep.subr.bf16.mxu1 %v12081_v13 }
 0x5a1   :  { %v8857_v49 = vpop.eup %8856 }
 0x5a2   :  { %v1103_v53 = vadd.f32 1.0, %v8857_v49  ;;  %v8859_v55 = vpop.eup %8858  ;;  %v1284_v49 = vld [vmem:[#allocation14 + $0x10] sm:$0xff] }
 0x5a4   :  { %8860 = vrcp.f32 %v1103_v53  ;;  %v1285_v53 = vld [vmem:[#allocation14 + $0x18] sm:$0xff] }
 0x5a5   :  { %8862 = vpow2.f32 %v6877_v60 }
 0x5ae   :  { %v8861_v57 = vpop.eup %8860 }
 0x5af   :  { %v1114_v62 = vmul.f32 %v8861_v57, %v8859_v55  ;;  %v8863_v61 = vpop.eup %8862  ;;  %v1113_v5 = vmul.f32 %v8861_v57, %v835_v12  ;;  %v9948_v55 = vpack.c.bf16 %v1285_v53, %v1284_v49  ;;  %v9979_v49 = vpack.c.bf16 %v1289_v16, %v1288_v7  ;;  %v9987_v53 = vld [vmem:[%s12067_s9] ss:$0 sm:$0xff]  ;;  %v1449_v7 = vld [vmem:[%s12072_s14 + $0x8] sm:$0xff] }
 0x5b0   :  { %v1110_v63 = vadd.f32 1.0, %v8863_v61  ;;  %v12114_v61 = vmov 0.0  }
 0x5b1   :  { %1116 = vrot.lane.b32.xlu0 %v1114_v62, %s9315_s4  ;;  %7853 = vmatpush3.bf16.msra.mxu1 %v9948_v55  ;;  %v1202_v62 = vld [vmem:[#allocation12] sm:$0x7] }
 0x5b2   :  { %8864 = vrcp.f32 %v1110_v63  ;;  %7854 = vmatprep.subr.bf16.mxu1 %v12081_v13  ;;  %v921_v63 = vld [vmem:[%s12115_s30] sm:$0xff] }
 0x5bc   :  { %v8865_v26 = vpop.eup %8864 }
 0x623   :  { %v1117_v6 = vpop.permute.xlu0 %1116 }
 0x624   :  { %v9941_v0 = vadd.f32 %v1117_v6, %v1113_v5  ;;  %v1287_v5 = vld [vmem:[#allocation14 + $0x28] sm:$0xff] }
 0x626   :  { %8866 = vtanh.f32 %v9941_v0 }
 0x630   :  { %v8867_v12 = vpop.eup %8866 }
 0x631   :  { %v9950_v57 = vmul.f32 %v8867_v12, %v8865_v26 }
 0x633   :  { %1123 = vrot.lane.b32.xlu1 %v9950_v57, %s9315_s4 }
 0x637   :  { %1546 = vrot.lane.b32.xlu1 %v9850_v42, %s9319_s21  ;;  %v1286_v42 = vld [vmem:[#allocation14 + $0x20] sm:$0xff] }
 0x638   :  { %v9973_v6 = vpack.c.bf16 %v1287_v5, %v1286_v42 }
 0x63a   :  { %7856 = vmatpush3.bf16.msra.mxu1 %v9973_v6 }
 0x63b   :  { %7857 = vmatprep.subr.bf16.mxu1 %v12081_v13 }
 0x63e   :  { %7859 = vmatpush3.bf16.msra.mxu1 %v9979_v49 }
 0x63f   :  { %7876 = vmatprep.subr.bf16.mxu1 %v12081_v13 }
 0x6a5   :  { %v1124_v60 = vpop.permute.xlu1 %1123 }
 0x6a6   :  { %7246 = vmatmul.mubr.msk.f32.vlgmr.msra.gmra.mrb[8].mxu0 %vm609_vm7, %v1124_v60 }
 0x6a7   :  { %7249 = vmatpush3.msk.msra.mxu0 %vm1207_vm9, %v1202_v62  ;;  %7250 = vmatprep.mubr.msk.f32.mxu0 %vm9318_vm8, %v12114_v61  ;;  %v918_v62 = vadd.f32 %v9987_v53, %v9936_v2  ;;  %v1451_v2 = vld [vmem:[%s12072_s14 + $0x18] sm:$0xff] }
 0x6a8   :  { %7836 = vmatprep.subr.bf16.mxu0 %v12081_v13  ;;  %v10003_v16 = vpack.c.bf16 %v1451_v2, %v1449_v7  ;;  %v1452_v2 = vld [vmem:[%s12072_s14 + $0x20] sm:$0xff] }
 0x6aa   :  { %7251 = vmatmul.mubr.msk.f32.vlgmr.msra.gmra.mrb[10].mxu0 %vm1203_vm10, %v921_v63 }
 0x6ab   :  { %7838 = vmatpush3.bf16.msra.mxu0 %v9944_v23  ;;  %7269 = vmatprep.mubr.msk.f32.mxu0 %vm9318_vm8, %v12114_v61 }
 0x6ac   :  { %7839 = vmatprep.subr.bf16.mxu0 %v12081_v13 }
 0x6af   :  { %7841 = vmatpush3.bf16.msra.mxu0 %v9948_v55 }
 0x6b0   :  { %7842 = vmatprep.subr.bf16.mxu0 %v12081_v13 }
 0x6b3   :  { %7844 = vmatpush3.bf16.msra.mxu0 %v9973_v6 }
 0x6b4   :  { %7845 = vmatprep.subr.bf16.mxu0 %v12081_v13  ;;  %v1457_v13 = vld [vmem:[%s12072_s14 + $0x48] sm:$0xff] }
 0x6b7   :  { %7847 = vmatpush3.bf16.msra.mxu0 %v9979_v49 }
 0x6b8   :  { %7861 = vmatprep.subr.bf16.mxu0 %v10003_v16 }
 0x779   :  { %v9989_v26 = vpop.f32.mrb[8].mxu0 }
 0x77a   :  { %v7247_v12 = vpop.f32.mrb[9].mxu0 }
 0x77b   :  { %v1448_v12 = vld [vmem:[%s12072_s14] sm:$0xff] }
 0x77d   :  { %v1277_v60 = vpop.f32.mrb[10].mxu0 }
 0x77e   :  { %v1281_v63 = vadd.f32 %v1277_v60, %v918_v62  ;;  %1541 = vrot.lane.b32.xlu1 %v1277_v60, %s9315_s4  ;;  %v7252_v42 = vpop.f32.mrb[11].mxu0  ;;  %v1450_v62 = vld [vmem:[%s12072_s14 + $0x10] sm:$0xff] }
 0x77f   :  { %v10011_v60 = vpack.c.bf16 %v1450_v62, %v1448_v12  ;;  %v1453_v42 = vld [vmem:[%s12072_s14 + $0x28] sm:$0xff]  ;;  %v1454_v12 = vld [vmem:[%s12072_s14 + $0x30] sm:$0xff] }
 0x780   :  { %v1363_v5 = vmul.f32 %v1281_v63, %v1281_v63  ;;  %7270 = vmatmul.mubr.msk.f32.vlgmr.msra.gmra.mrb[12].mxu0 %vm609_vm7, %v1281_v63  ;;  %v10029_v62 = vpack.c.bf16 %v1454_v12, %v1452_v2  ;;  %v1458_v2 = vld [vmem:[%s12072_s14 + $0x50] sm:$0xff]  ;;  %v1461_v12 = vld [vmem:[%s12072_s14 + $0x68] sm:$0xff] }
 0x781   :  { %1531 = vmatprep.mubr.f32.mxu0 %v12114_v61  ;;  %7863 = vmatpush1.bf16.msra.mxu0 %v10011_v60  ;;  %v10055_v52 = vpack.c.bf16 %v1463_v35, %v1461_v12 }
 0x782   :  { %7289 = vmatmul.mubr.msk.f32.vlgmr.msra.gmra.mrb[30].mxu1 %vm609_vm7, %v1363_v5  ;;  %v1455_v5 = vld [vmem:[%s12072_s14 + $0x38] sm:$0xff]  ;;  %12117 = vst [vmem:[#allocation35_spill] sm:$0xff] %v10029_v62 }
 0x783   :  { %v10021_v7 = vpack.c.bf16 %v1455_v5, %v1453_v42  ;;  %v1459_v42 = vld [vmem:[%s12072_s14 + $0x58] sm:$0xff]  ;;  %v1456_v5 = vld [vmem:[%s12072_s14 + $0x40] sm:$0xff]  ;;  %12120 = vst [vmem:[#allocation38_spill] sm:$0xff] %v10055_v52 }
 0x784   :  { %v10042_v37 = vpack.c.bf16 %v1459_v42, %v1457_v13  ;;  %v10053_v34 = vpack.c.bf16 %v1458_v2, %v1456_v5  ;;  %v1460_v13 = vld [vmem:[%s12072_s14 + $0x60] sm:$0xff]  ;;  %v1462_v42 = vld [vmem:[%s12072_s14 + $0x70] sm:$0xff] }
 0x785   :  { %12116 = vst [vmem:[#allocation34_spill] sm:$0xff] %v10021_v7  ;;  %7865 = vmatprep.subr.bf16.mxu0 %v10021_v7  ;;  %v10065_v33 = vpack.c.bf16 %v1462_v42, %v1460_v13  ;;  %v10070_v7 = vld [vmem:[#allocation15] ss:$0 sm:$0xff]  ;;  %v10072_v42 = vld [vmem:[#allocation17] ss:$0 sm:$0xff] }
 0x786   :  { %7867 = vmatpush1.bf16.msra.mxu0 %v10029_v62  ;;  %12118 = vst [vmem:[#allocation36_spill] sm:$0xff] %v10042_v37  ;;  %12119 = vst [vmem:[#allocation37_spill] sm:$0xff] %v10053_v34 }
 0x787   :  { %7869 = vmatprep.subr.bf16.mxu0 %v10042_v37  ;;  %12121 = vst [vmem:[#allocation39_spill] sm:$0xff] %v10065_v33 }
 0x78a   :  { %7871 = vmatpush1.bf16.msra.mxu0 %v10053_v34 }
 0x78b   :  { %7873 = vmatprep.subr.bf16.mxu0 %v10055_v52 }
 0x78e   :  { %7875 = vmatpush1.bf16.msra.mxu0 %v10065_v33 }
 0x78f   :  { %7908 = vmatprep.subr.bf16.mxu0 %v9547_v15 }
 0x853   :  { %v1359_v35 = vpop.f32.mrb[12].mxu0 }
 0x854   :  { %v1438_v5 = vmul.f32 %v1359_v35, %v1359_v35  ;;  %v7271_v2 = vpop.f32.mrb[13].mxu0  ;;  %v1437_v62 = vsub.f32 %v1281_v63, %v1359_v35 }
 0x855   :  { %v1433_v12 = vpop.f32.mrb[30].mxu1  ;;  %v1574_v2 = vld [vmem:[%s12075_s17 + $0x88] sm:$0xff] }
 0x856   :  { %v1439_v48 = vsub.f32 %v1433_v12, %v1438_v5  ;;  %v7290_v30 = vpop.f32.mrb[31].mxu1  ;;  %v1573_v5 = vld [vmem:[%s12075_s17 + $0x80] sm:$0xff] }
 0x857   :  { %v10193_v12 = vpack.c.bf16 %v1574_v2, %v1573_v5  ;;  %v1991_v2 = vld [vmem:[#allocation12] sm:$0x7] }
 0x858   :  { %v1440_v27 = vadd.f32 1e-05, %v1439_v48 }
 0x85a   :  { %8868 = vrsqrt.f32 %v1440_v27  ;;  %v1572_v27 = vld [vmem:[%s12075_s17 + $0x78] sm:$0xff] }
 0x864   :  { %v8869_v37 = vpop.eup %8868 }
 0x865   :  { %v1442_v13 = vmul.f32 %v8869_v37, %v1437_v62 }
 0x867   :  { %v1443_v52 = vmul.f32 %v10070_v7, %v1442_v13 }
 0x869   :  { %v1444_v33 = vadd.f32 %v10072_v42, %v1443_v52 }
 0x86b   :  { %vm1445_vm11 = vcmp.ge.f32.partialorder %v1444_v33, 0.0  ;;  %v1446_v15 = vmul.f32 0.01, %v1444_v33 }
 0x86d   :  { %v1447_v34 = vsel %vm1445_vm11, %v1444_v33, %v1446_v15  ;;  %v10205_v15 = vld [vmem:[%s12075_s17 + $0x90] sm:$0xff] }
 0x86e   :  { %6883 = vmatmul.mubr.msk.f32.vlgmr.msra.gmra.mrb[14].mxu0 %vm609_vm7, %v1447_v34 }
 0x86f   :  { %7910 = vmatpush1.bf16.msra.mxu0 %v9553_v17  ;;  %1743 = vmatprep.mubr.f32.mxu0 %v12114_v61  ;;  %v1557_v17 = vld [vmem:[%s12075_s17] sm:$0xff] }
 0x870   :  { %7912 = vmatprep.subr.bf16.mxu0 %v9555_v18  ;;  %v1558_v18 = vld [vmem:[%s12075_s17 + $0x8] sm:$0xff] }
 0x873   :  { %7914 = vmatpush1.bf16.msra.mxu0 %v9566_v24  ;;  %v1559_v24 = vld [vmem:[%s12075_s17 + $0x10] sm:$0xff] }
 0x874   :  { %7916 = vmatprep.subr.bf16.mxu0 %v9569_v25  ;;  %v10114_v25 = vpack.c.bf16 %v1558_v18, %v1557_v17  ;;  %v1576_v17 = vld [vmem:[%s12075_s17 + $0x98] sm:$0x1] }
 0x875   :  { %v7904_v18 = vpack.c.bf16 %v1576_v17, %v10205_v15 }
 0x876   :  { %7878 = vmatpush1.bf16.msra.mxu1 %v10114_v25 }
 0x877   :  { %7918 = vmatpush1.bf16.msra.mxu0 %v9577_v31  ;;  %v1560_v31 = vld [vmem:[%s12075_s17 + $0x18] sm:$0xff] }
 0x878   :  { %7920 = vmatprep.subr.bf16.mxu0 %v9580_v32  ;;  %v10120_v32 = vpack.c.bf16 %v1560_v31, %v1559_v24 }
 0x87b   :  { %7922 = vmatpush1.bf16.msra.mxu0 %v9588_v36  ;;  %v12122_v36 = vmov 0.0|0.0  }
 0x87c   :  { %7924 = vmatprep.subr.bf16.mxu0 %v9639_v1  ;;  %7879 = vmatprep.subr.bf16.mxu1 %v12122_v36  ;;  %v1561_v1 = vld [vmem:[%s12075_s17 + $0x20] sm:$0xff] }
 0x87d   :  { %7881 = vmatpush1.bf16.msra.mxu1 %v10120_v32 }
 0x87e   :  { %6886 = vmatmul.mubr.msk.f32.vlgmr.msra.gmra.mrb[4].mxu0 %vm609_vm7, %v9928_v21  ;;  %7882 = vmatprep.subr.bf16.mxu1 %v12122_v36 }
 0x87f   :  { %7926 = vmatpush1.bf16.msra.mxu0 %v9668_v9  ;;  %1875 = vmatprep.mubr.f32.mxu0 %v12114_v61  ;;  %v1562_v9 = vld [vmem:[%s12075_s17 + $0x28] sm:$0xff] }
 0x880   :  { %7928 = vmatprep.subr.bf16.mxu0 %v9670_v10  ;;  %v10130_v10 = vpack.c.bf16 %v1562_v9, %v1561_v1  ;;  %v1201_v9 = vld [vmem:[#allocation3 + $0x8] sm:$0xff] }
 0x882   :  { %7884 = vmatpush1.bf16.msra.mxu1 %v10130_v10 }
 0x883   :  { %7930 = vmatpush1.bf16.msra.mxu0 %v9690_v19  ;;  %v1563_v19 = vld [vmem:[%s12075_s17 + $0x30] sm:$0xff]  ;;  %7885 = vmatprep.subr.bf16.mxu1 %v12122_v36 }
 0x884   :  { %7932 = vmatprep.subr.bf16.mxu0 %v9693_v20  ;;  %v1564_v20 = vld [vmem:[%s12075_s17 + $0x38] sm:$0xff] }
 0x887   :  { %7934 = vmatpush1.bf16.msra.mxu0 %v9713_v28  ;;  %v10140_v28 = vpack.c.bf16 %v1564_v20, %v1563_v19  ;;  %v579_v20 = vld [vmem:[%s12073_s15] sm:$0x3] }
 0x888   :  { %7936 = vmatprep.subr.bf16.mxu0 %v9716_v29  ;;  %v1565_v29 = vld [vmem:[%s12075_s17 + $0x40] sm:$0xff] }
 0x889   :  { %7887 = vmatpush1.bf16.msra.mxu1 %v10140_v28 }
 0x88a   :  { %7888 = vmatprep.subr.bf16.mxu1 %v12122_v36 }
 0x88b   :  { %7938 = vmatpush1.bf16.msra.mxu0 %v9736_v38  ;;  %v1566_v38 = vld [vmem:[%s12075_s17 + $0x48] sm:$0xff] }
 0x88c   :  { %7940 = vmatprep.subr.bf16.mxu0 %v9739_v40  ;;  %v10150_v40 = vpack.c.bf16 %v1566_v38, %v1565_v29  ;;  %v10220_v29 = vrot.slane %v579_v20, %v9604_v39  ;;  %v10223_v38 = vrot.slane %v579_v20, %v9610_v46 }
 0x88e   :  { %7890 = vmatpush1.bf16.msra.mxu1 %v10150_v40 }
 0x88f   :  { %7942 = vmatpush1.bf16.msra.mxu0 %v9759_v50  ;;  %v1567_v50 = vld [vmem:[%s12075_s17 + $0x50] sm:$0xff]  ;;  %7891 = vmatprep.subr.bf16.mxu1 %v12122_v36 }
 0x890   :  { %7944 = vmatprep.subr.bf16.mxu0 %v9762_v51  ;;  %v1568_v51 = vld [vmem:[%s12075_s17 + $0x58] sm:$0xff] }
 0x893   :  { %7946 = vmatpush1.bf16.msra.mxu0 %v9782_v58  ;;  %v10160_v58 = vpack.c.bf16 %v1568_v51, %v1567_v50 }
 0x894   :  { %7948 = vmatprep.subr.bf16.mxu0 %v9785_v59  ;;  %v1569_v59 = vld [vmem:[%s12075_s17 + $0x60] sm:$0xff] }
 0x895   :  { %7893 = vmatpush1.bf16.msra.mxu1 %v10160_v58 }
 0x896   :  { %7894 = vmatprep.subr.bf16.mxu1 %v12122_v36 }
 0x897   :  { %7950 = vmatpush1.bf16.msra.mxu0 %v9805_v3  ;;  %v1570_v3 = vld [vmem:[%s12075_s17 + $0x68] sm:$0xff] }
 0x898   :  { %7952 = vmatprep.subr.bf16.mxu0 %v9808_v4  ;;  %v10170_v4 = vpack.c.bf16 %v1570_v3, %v1569_v59 }
 0x89a   :  { %7896 = vmatpush1.bf16.msra.mxu1 %v10170_v4 }
 0x89b   :  { %7954 = vmatpush1.bf16.msra.mxu0 %v9822_v8  ;;  %v1571_v8 = vld [vmem:[%s12075_s17 + $0x70] sm:$0xff]  ;;  %7897 = vmatprep.subr.bf16.mxu1 %v12122_v36 }
 0x89c   :  { %7310 = vmatprep.subr.mxu0 %v12114_v61  ;;  %v10180_v30 = vpack.c.bf16 %v1572_v27, %v1571_v8  ;;  %v1547_v8 = vpop.permute.xlu1 %1546 }
 0x89e   :  { %7899 = vmatpush1.bf16.msra.mxu1 %v10180_v30 }
 0x89f   :  { %7900 = vmatprep.subr.bf16.mxu1 %v12122_v36 }
 0x8a0   :  { %v1542_v39 = vpop.permute.xlu1 %1541 }
 0x8a2   :  { %7902 = vmatpush1.bf16.msra.mxu1 %v10193_v12 }
 0x8a3   :  { %7903 = vmatprep.subr.bf16.mxu1 %v12122_v36 }
 0x8a6   :  { %7906 = vmatpush1.bf16.msk.msra.mxu1 %vm10197_vm13, %v7904_v18 }
 0x8a7   :  { %7955 = vmatprep.subr.bf16.mxu1 %v12122_v36 }
 0x941   :  { %v1533_v48 = vpop.f32.mrb[14].mxu0 }
 0x942   :  { %v1535_v33 = vpop.f32.mrb[15].mxu0  ;;  %v1534_v50 = vadd.f32 %v1533_v48, %v10220_v29 }
 0x943   :  { %v1536_v51 = vadd.f32 %v1535_v33, %v10223_v38 }
 0x951   :  { %v1745_v52 = vpop.f32.mrb[4].mxu0 }
 0x952   :  { %v8772_v34 = vadd.f32 %v1745_v52, %v9607_v41  ;;  %v1747_v37 = vpop.f32.mrb[5].mxu0 }
 0x953   :  { %v8773_v63 = vadd.f32 %v1747_v37, %v9613_v47 }
 0x954   :  { %v6887_v21 = vmul.f32 -1.442695, %v8772_v34 }
 0x955   :  { %v6888_v19 = vmul.f32 -1.442695, %v8773_v63 }
 0x956   :  { %8870 = vpow2.f32 %v6887_v21  ;;  %v1554_v21 = vsel %vm1550_vm14, %v1542_v39, %v1547_v8  ;;  %v12130_v39 = vld [vmem:[#allocation39_spill] sm:$0xff] }
 0x957   :  { %8872 = vtanh.f32 %v8773_v63 }
 0x960   :  { %v8871_v62 = vpop.eup %8870 }
 0x961   :  { %v1755_v35 = vadd.f32 1.0, %v8871_v62  ;;  %v8873_v24 = vpop.eup %8872 }
 0x963   :  { %8874 = vrcp.f32 %v1755_v35 }
 0x964   :  { %8876 = vpow2.f32 %v6888_v19 }
 0x965   :  { %8878 = vtanh.f32 %v1534_v50 }
 0x966   :  { %8880 = vtanh.f32 %v1536_v51  ;;  %v1194_v51 = vadd.f32 %v9987_v53, %v9989_v26 }
 0x96d   :  { %v8875_v31 = vpop.eup %8874 }
 0x96e   :  { %v1766_v1 = vmul.f32 %v8875_v31, %v8873_v24  ;;  %v8877_v59 = vpop.eup %8876  ;;  %v1765_v27 = vmul.f32 %v8875_v31, %v9907_v54 }
 0x96f   :  { %v1762_v3 = vadd.f32 1.0, %v8877_v59  ;;  %v8879_v46 = vpop.eup %8878 }
 0x970   :  { %1768 = vrot.lane.b32.xlu0 %v1766_v1, %s9315_s4  ;;  %v8881_v48 = vpop.eup %8880  ;;  %v1555_v62 = vmul.f32 %v8879_v46, %v1554_v21 }
 0x971   :  { %8882 = vrcp.f32 %v1762_v3 }
 0x974   :  { %1548 = vrot.lane.b32.xlu0 %v1201_v9, %s9319_s21 }
 0x97b   :  { %v8883_v54 = vpop.eup %8882 }
 0x9e2   :  { %v1769_v52 = vpop.permute.xlu0 %1768 }
 0x9e3   :  { %v10228_v34 = vadd.f32 %v1769_v52, %v1765_v27  ;;  %v12129_v52 = vld [vmem:[#allocation38_spill] sm:$0xff] }
 0x9e5   :  { %8884 = vtanh.f32 %v10228_v34 }
 0x9e6   :  { %v1549_v37 = vpop.permute.xlu0 %1548 }
 0x9e7   :  { %v1551_v33 = vsel %vm1550_vm14, %v1547_v8, %v1549_v37 }
 0x9e8   :  { %v1556_v63 = vmul.f32 %v8881_v48, %v1551_v33 }
 0x9ea   :  { %6885 = vmatprep.mubr.msk.f32.mxu1 %vm1577_vm15, %v1556_v63 }
 0x9eb   :  { %1650 = vmatmul.mubr.f32.vlgmr.msra.gmra.mrb[32].mxu1 %v1555_v62 }
 0x9ec   :  { %7957 = vmatpush3.bf16.msra.mxu1 %v9877_v14  ;;  %7307 = vmatprep.mubr.msk.f32.mxu1 %vm9318_vm8, %v12114_v61 }
 0x9ed   :  { %7958 = vmatprep.subr.bf16.mxu1 %v12122_v36 }
 0x9ef   :  { %v8885_v35 = vpop.eup %8884 }
 0x9f0   :  { %v1773_v5 = vmul.f32 %v8885_v35, %v8883_v54  ;;  %7960 = vmatpush3.bf16.msra.mxu1 %v9885_v22 }
 0x9f1   :  { %7961 = vmatprep.subr.bf16.mxu1 %v12122_v36 }
 0x9f2   :  { %1775 = vrot.lane.b32.xlu0 %v1773_v5, %s9315_s4 }
 0x9f4   :  { %7963 = vmatpush3.bf16.msra.mxu1 %v9891_v43 }
 0x9f5   :  { %7964 = vmatprep.subr.bf16.mxu1 %v12122_v36 }
 0x9f8   :  { %7966 = vmatpush3.bf16.msra.mxu1 %v9897_v56 }
 0x9f9   :  { %7967 = vmatprep.subr.bf16.mxu1 %v12122_v36 }
 0xa64   :  { %v10245_v14 = vpop.permute.xlu0 %1775 }
 0xa65   :  { %v1778_v17 = vsel %vm609_vm7, %v10245_v14, %v9950_v57 }
 0xa66   :  { %1876 = vmatmul.mubr.f32.vlgmr.msra.gmra.mrb[16].mxu0 %v1778_v17 }
 0xa67   :  { %7311 = vmatpush3.msk.msra.mxu0 %vm1207_vm9, %v1991_v2  ;;  %7312 = vmatprep.mubr.msk.f32.mxu0 %vm9318_vm8, %v12114_v61 }
 0xa68   :  { %7979 = vmatprep.subr.bf16.mxu0 %v12122_v36 }
 0xabe   :  { %v1651_v22 = vpop.f32.mrb[32].mxu1 }
 0xabf   :  { %1655 = vst.msk [vmem:[%s12076_s18] sm:$0xff] %vm1203_vm10, %v1651_v22  ;;  %v1653_v43 = vpop.f32.mrb[33].mxu1  ;;  %7313 = vmatmul.mubr.msk.f32.vlgmr.msra.gmra.mrb[18].mxu0 %vm1203_vm10, %v1651_v22 }
 0xac0   :  { %7981 = vmatpush3.bf16.msra.mxu0 %v9944_v23  ;;  %7350 = vmatprep.mubr.msk.f32.mxu0 %vm9318_vm8, %v12114_v61  ;;  %v2362_v43 = vld [vmem:[%s12075_s17 + $0x98] sm:$0x1] }
 0xac1   :  { %7982 = vmatprep.subr.bf16.mxu0 %v12122_v36 }
 0xac4   :  { %7984 = vmatpush3.bf16.msra.mxu0 %v9948_v55 }
 0xac5   :  { %7985 = vmatprep.subr.bf16.mxu0 %v12122_v36 }
 0xac8   :  { %7987 = vmatpush3.bf16.msra.mxu0 %v9973_v6 }
 0xac9   :  { %7988 = vmatprep.subr.bf16.mxu0 %v12122_v36 }
 0xacc   :  { %7990 = vmatpush3.bf16.msra.mxu0 %v9979_v49 }
 0xacd   :  { %8007 = vmatprep.subr.bf16.mxu0 %v12122_v36 }
 0xb39   :  { %v1877_v56 = vpop.f32.mrb[16].mxu0 }
 0xb3a   :  { %v1878_v57 = vadd.f32 %v1877_v56, %v9865_v11  ;;  %v1879_v18 = vpop.f32.mrb[17].mxu0  ;;  %v8035_v56 = vpack.c.bf16 %v2362_v43, %v10205_v15 }
 0xb3b   :  { %v1880_v31 = vadd.f32 %v1879_v18, %v9870_v45 }
 0xb3c   :  { %v6889_v24 = vmul.f32 -1.442695, %v1878_v57  ;;  %v2447_v57 = vld [vmem:[#allocation8 + $0x8] sm:$0xff] }
 0xb3e   :  { %8886 = vpow2.f32 %v6889_v24 }
 0xb3f   :  { %8888 = vtanh.f32 %v1880_v31 }
 0xb48   :  { %v8887_v1 = vpop.eup %8886 }
 0xb49   :  { %v1885_v9 = vadd.f32 1.0, %v8887_v1  ;;  %v8889_v19 = vpop.eup %8888 }
 0xb4b   :  { %8890 = vrcp.f32 %v1885_v9 }
 0xb55   :  { %v8891_v20 = vpop.eup %8890 }
 0xb56   :  { %v1896_v50 = vmul.f32 %v8891_v20, %v8889_v19 }
 0xb58   :  { %1898 = vrot.lane.b32.xlu1 %v1896_v50, %s9315_s4  ;;  %v2448_v50 = vld [vmem:[#allocation8 + $0x10] sm:$0xff] }
 0xb5c   :  { %2333 = vrot.lane.b32.xlu1 %v9853_v44, %s9319_s21  ;;  %v6890_v44 = vmul.f32 -1.442695, %v1880_v31 }
 0xb5e   :  { %8892 = vpow2.f32 %v6890_v44 }
 0xb68   :  { %v8893_v26 = vpop.eup %8892 }
 0xb92   :  { %v2064_v59 = vpop.f32.mrb[18].mxu0 }
 0xb93   :  { %v10276_v3 = vadd.f32 %v2064_v59, %v1194_v51  ;;  %2328 = vrot.lane.b32.xlu1 %v2064_v59, %s9315_s4  ;;  %v7314_v8 = vpop.f32.mrb[19].mxu0  ;;  %v2451_v59 = vld [vmem:[#allocation8 + $0x28] sm:$0xff] }
 0xb95   :  { %v2150_v27 = vmul.f32 %v10276_v3, %v10276_v3 }
 0xb97   :  { %7351 = vmatmul.mubr.msk.f32.vlgmr.msra.gmra.mrb[20].mxu0 %vm609_vm7, %v2150_v27 }
 0xb98   :  { %8009 = vmatpush1.bf16.msra.mxu0 %v10114_v25  ;;  %v1892_v25 = vadd.f32 1.0, %v8893_v26 }
 0xb99   :  { %8010 = vmatprep.subr.bf16.mxu0 %v12122_v36 }
 0xb9a   :  { %8894 = vrcp.f32 %v1892_v25 }
 0xb9c   :  { %8012 = vmatpush1.bf16.msra.mxu0 %v10120_v32  ;;  %v1895_v32 = vmul.f32 %v8891_v20, %v9941_v0  ;;  %v12125_v0 = vld [vmem:[#allocation34_spill] sm:$0xff]  ;;  %v2446_v20 = vld [vmem:[#allocation8] sm:$0xff] }
 0xb9d   :  { %8013 = vmatprep.subr.bf16.mxu0 %v12122_v36  ;;  %v10350_v25 = vpack.c.bf16 %v2448_v50, %v2446_v20  ;;  %v2860_v20 = vld [vmem:[#allocation14 + $0x30] sm:$0xff]  ;;  %v2861_v50 = vld [vmem:[#allocation14 + $0x38] sm:$0xff] }
 0xba0   :  { %8015 = vmatpush1.bf16.msra.mxu0 %v10130_v10 }
 0xba1   :  { %8016 = vmatprep.subr.bf16.mxu0 %v12122_v36 }
 0xba4   :  { %8018 = vmatpush1.bf16.msra.mxu0 %v10140_v28 }
 0xba5   :  { %8019 = vmatprep.subr.bf16.mxu0 %v12122_v36 }
 0xba8   :  { %8021 = vmatpush1.bf16.msra.mxu0 %v10150_v40  ;;  %v8895_v40 = vpop.eup %8894 }
 0xba9   :  { %8022 = vmatprep.subr.bf16.mxu0 %v12122_v36 }
 0xbac   :  { %8024 = vmatpush1.bf16.msra.mxu0 %v10160_v58 }
 0xbad   :  { %8025 = vmatprep.subr.bf16.mxu0 %v12122_v36 }
 0xbb0   :  { %8027 = vmatpush1.bf16.msra.mxu0 %v10170_v4 }
 0xbb1   :  { %8028 = vmatprep.subr.bf16.mxu0 %v12122_v36 }
 0xbb4   :  { %8030 = vmatpush1.bf16.msra.mxu0 %v10180_v30  ;;  %v1990_v30 = vld [vmem:[#allocation3 + $0x18] sm:$0xff] }
 0xbb5   :  { %8031 = vmatprep.subr.bf16.mxu0 %v12122_v36 }
 0xbb8   :  { %8033 = vmatpush1.bf16.msra.mxu0 %v10193_v12 }
 0xbb9   :  { %8034 = vmatprep.subr.bf16.mxu0 %v12122_v36 }
 0xbbc   :  { %8037 = vmatpush1.bf16.msk.msra.mxu0 %vm10197_vm13, %v8035_v56 }
 0xbca   :  { %v1899_v10 = vpop.permute.xlu1 %1898 }
 0xbcb   :  { %v10301_v28 = vadd.f32 %v1899_v10, %v1895_v32 }
 0xbcd   :  { %8896 = vtanh.f32 %v10301_v28 }
 0xbce   :  { %v2334_v9 = vpop.permute.xlu1 %2333 }
 0xbd7   :  { %v8897_v58 = vpop.eup %8896 }
 0xbd8   :  { %v10304_v4 = vmul.f32 %v8897_v58, %v8895_v40  ;;  %v2450_v40 = vld [vmem:[#allocation8 + $0x20] sm:$0xff]  ;;  %v2452_v58 = vld [vmem:[#allocation8 + $0x30] sm:$0xff] }
 0xbda   :  { %1913 = vrot.lane.b32.xlu0 %v10304_v4, %s9315_s4 }
 0xbde   :  { %2335 = vrot.lane.b32.xlu0 %v1990_v30, %s9319_s21  ;;  %v2455_v30 = vld [vmem:[#allocation8 + $0x48] sm:$0xff] }
 0xc05   :  { %v2329_v15 = vpop.permute.xlu1 %2328 }
 0xc06   :  { %v2340_v44 = vsel %vm1550_vm14, %v2329_v15, %v2334_v9 }
 0xc4c   :  { %v1914_v12 = vpop.permute.xlu0 %1913 }
 0xc4d   :  { %7308 = vmatmul.mubr.msk.f32.vlgmr.msra.gmra.mrb[34].mxu1 %vm609_vm7, %v1914_v12  ;;  %v2457_v12 = vld [vmem:[#allocation8 + $0x58] sm:$0xff] }
 0xc4e   :  { %7969 = vmatpush3.bf16.msra.mxu1 %v9944_v23  ;;  %7331 = vmatprep.mubr.msk.f32.mxu1 %vm9318_vm8, %v12114_v61  ;;  %v12126_v23 = vld [vmem:[#allocation35_spill] sm:$0xff] }
 0xc4f   :  { %7970 = vmatprep.subr.bf16.mxu1 %v12122_v36 }
 0xc50   :  { %v2336_v19 = vpop.permute.xlu0 %2335 }
 0xc51   :  { %v2337_v27 = vsel %vm1550_vm14, %v2334_v9, %v2336_v19  ;;  %v2858_v9 = vld [vmem:[#allocation14 + $0x20] sm:$0xff]  ;;  %v2859_v19 = vld [vmem:[#allocation14 + $0x28] sm:$0xff] }
 0xc52   :  { %7972 = vmatpush3.bf16.msra.mxu1 %v9948_v55  ;;  %v12127_v55 = vld [vmem:[#allocation36_spill] sm:$0xff]  ;;  %v10403_v15 = vpack.c.bf16 %v2859_v19, %v2858_v9  ;;  %v2584_v19 = vld [vmem:[%s12064_s6 + $0xa0] sm:$0xff] }
 0xc53   :  { %7973 = vmatprep.subr.bf16.mxu1 %v12122_v36 }
 0xc56   :  { %7975 = vmatpush3.bf16.msra.mxu1 %v9973_v6  ;;  %v12128_v6 = vld [vmem:[#allocation37_spill] sm:$0xff] }
 0xc57   :  { %7976 = vmatprep.subr.bf16.mxu1 %v12122_v36 }
 0xc5a   :  { %7978 = vmatpush3.bf16.msra.mxu1 %v9979_v49 }
 0xc5b   :  { %7992 = vmatprep.subr.bf16.mxu1 %v10003_v16 }
 0xc5d   :  { %7332 = vmatmul.mubr.msk.f32.vlgmr.msra.gmra.mrb[36].mxu1 %vm609_vm7, %v10276_v3 }
 0xc5e   :  { %7994 = vmatpush1.bf16.msra.mxu1 %v10011_v60  ;;  %2318 = vmatprep.mubr.f32.mxu1 %v12114_v61 }
 0xc5f   :  { %7996 = vmatprep.subr.bf16.mxu1 %v12125_v0  ;;  %v10356_v0 = vpack.c.bf16 %v2452_v58, %v2450_v40 }
 0xc62   :  { %7998 = vmatpush1.bf16.msra.mxu1 %v12126_v23  ;;  %v10360_v23 = vpack.c.bf16 %v2457_v12, %v2455_v30  ;;  %v2568_v30 = vld [vmem:[%s12064_s6 + $0x20] sm:$0xff]  ;;  %v2570_v12 = vld [vmem:[%s12064_s6 + $0x30] sm:$0xff] }
 0xc63   :  { %8000 = vmatprep.subr.bf16.mxu1 %v12127_v55  ;;  %v2454_v55 = vld [vmem:[#allocation8 + $0x40] sm:$0xff] }
 0xc66   :  { %8002 = vmatpush1.bf16.msra.mxu1 %v12128_v6  ;;  %v2456_v6 = vld [vmem:[#allocation8 + $0x50] sm:$0xff] }
 0xc67   :  { %8004 = vmatprep.subr.bf16.mxu1 %v12129_v52  ;;  %v2459_v52 = vld [vmem:[#allocation8 + $0x68] sm:$0xff] }
 0xc6a   :  { %v2220_v49 = vpop.f32.mrb[20].mxu0  ;;  %8006 = vmatpush1.bf16.msra.mxu1 %v12130_v39  ;;  %v10363_v39 = vpack.c.bf16 %v2456_v6, %v2454_v55  ;;  %v2573_v55 = vld [vmem:[%s12064_s6 + $0x48] sm:$0xff]  ;;  %v2575_v6 = vld [vmem:[%s12064_s6 + $0x58] sm:$0xff] }
 0xc6b   :  { %v7352_v16 = vpop.f32.mrb[21].mxu0 }
 0xd20   :  { %v10330_v46 = vpop.f32.mrb[34].mxu1 }
 0xd21   :  { %v7309_v37 = vpop.f32.mrb[35].mxu1 }
 0xd22   :  { %v2458_v37 = vld [vmem:[#allocation8 + $0x60] sm:$0xff] }
 0xd30   :  { %v2146_v60 = vpop.f32.mrb[36].mxu1 }
 0xd31   :  { %v2225_v48 = vmul.f32 %v2146_v60, %v2146_v60  ;;  %v7333_v33 = vpop.f32.mrb[37].mxu1  ;;  %v2224_v62 = vsub.f32 %v10276_v3, %v2146_v60  ;;  %v2453_v3 = vld [vmem:[#allocation8 + $0x38] sm:$0xff]  ;;  %v2460_v60 = vld [vmem:[#allocation8 + $0x70] sm:$0xff] }
 0xd32   :  { %v10352_v10 = vpack.c.bf16 %v2453_v3, %v2451_v59  ;;  %v2776_v33 = vld [vmem:[#allocation12] sm:$0x7]  ;;  %v2565_v59 = vld [vmem:[%s12064_s6 + $0x8] sm:$0xff]  ;;  %v2567_v3 = vld [vmem:[%s12064_s6 + $0x18] sm:$0xff] }
 0xd33   :  { %v2226_v21 = vsub.f32 %v2220_v49, %v2225_v48  ;;  %v2461_v49 = vld [vmem:[#allocation8 + $0x78] sm:$0xff]  ;;  %v10369_v48 = vpack.c.bf16 %v2460_v60, %v2458_v37  ;;  %v2572_v37 = vld [vmem:[%s12064_s6 + $0x40] sm:$0xff] }
 0xd34   :  { %v10366_v16 = vpack.c.bf16 %v2461_v49, %v2459_v52  ;;  %v10449_v52 = vpack.c.bf16 %v2570_v12, %v2568_v30  ;;  %v10452_v49 = vpack.c.bf16 %v2575_v6, %v2573_v55  ;;  %v2574_v60 = vld [vmem:[%s12064_s6 + $0x50] sm:$0xff]  ;;  %v2595_v30 = vld [vmem:[%s12064_s6 + $0xf8] sm:$0xff]  ;;  %v2592_v6 = vld [vmem:[%s12064_s6 + $0xe0] sm:$0xff] }
 0xd35   :  { %v2227_v63 = vadd.f32 1e-05, %v2226_v21 }
 0xd37   :  { %8898 = vrsqrt.f32 %v2227_v63 }
 0xd41   :  { %v8899_v54 = vpop.eup %8898 }
 0xd42   :  { %v2229_v35 = vmul.f32 %v8899_v54, %v2224_v62 }
 0xd44   :  { %v2230_v5 = vmul.f32 %v10070_v7, %v2229_v35  ;;  %v2449_v7 = vld [vmem:[#allocation8 + $0x18] sm:$0xff] }
 0xd45   :  { %v10343_v18 = vpack.c.bf16 %v2449_v7, %v2447_v57  ;;  %v2854_v57 = vld [vmem:[#allocation14] sm:$0xff]  ;;  %v2855_v7 = vld [vmem:[#allocation14 + $0x8] sm:$0xff] }
 0xd46   :  { %v2231_v2 = vadd.f32 %v10072_v42, %v2230_v5 }
 0xd47   :  { %8039 = vmatprep.subr.bf16.mxu0 %v10343_v18 }
 0xd48   :  { %vm2232_vm0 = vcmp.ge.f32.partialorder %v2231_v2, 0.0  ;;  %v2233_v17 = vmul.f32 0.01, %v2231_v2 }
 0xd4a   :  { %v2234_v22 = vsel %vm2232_vm0, %v2231_v2, %v2233_v17 }
 0xd4b   :  { %6896 = vmatmul.mubr.msk.f32.vlgmr.msra.gmra.mrb[38].mxu1 %vm609_vm7, %v2234_v22 }
 0xd4c   :  { %2660 = vmatprep.mubr.f32.mxu1 %v12114_v61 }
 0xe1e   :  { %v2320_v42 = vpop.f32.mrb[38].mxu1 }
 0xe1f   :  { %v2321_v24 = vadd.f32 %v2320_v42, %v10220_v29  ;;  %v2322_v31 = vpop.f32.mrb[39].mxu1  ;;  %v2856_v42 = vld [vmem:[#allocation14 + $0x10] sm:$0xff] }
 0xe20   :  { %v2323_v1 = vadd.f32 %v2322_v31, %v10223_v38  ;;  %v2857_v31 = vld [vmem:[#allocation14 + $0x18] sm:$0xff] }
 0xe21   :  { %8900 = vtanh.f32 %v2321_v24  ;;  %v10396_v24 = vpack.c.bf16 %v2855_v7, %v2854_v57  ;;  %v2582_v57 = vld [vmem:[%s12064_s6 + $0x90] sm:$0xff]  ;;  %v2585_v7 = vld [vmem:[%s12064_s6 + $0xa8] sm:$0xff] }
 0xe22   :  { %8902 = vtanh.f32 %v2323_v1  ;;  %v10399_v1 = vpack.c.bf16 %v2857_v31, %v2856_v42  ;;  %v2587_v42 = vld [vmem:[%s12064_s6 + $0xb8] sm:$0xff] }
 0xe23   :  { %v10506_v9 = vpack.c.bf16 %v2587_v42, %v2585_v7 }
 0xe2b   :  { %v8901_v51 = vpop.eup %8900 }
 0xe2c   :  { %v8903_v8 = vpop.eup %8902  ;;  %v2341_v32 = vmul.f32 %v8901_v51, %v2340_v44  ;;  %v10408_v51 = vpack.c.bf16 %v2861_v50, %v2860_v20  ;;  %v2566_v44 = vld [vmem:[%s12064_s6 + $0x10] sm:$0xff]  ;;  %v2589_v50 = vld [vmem:[%s12064_s6 + $0xc8] sm:$0xff] }
 0xe2d   :  { %v2342_v26 = vmul.f32 %v8903_v8, %v2337_v27  ;;  %v2564_v8 = vld [vmem:[%s12064_s6] sm:$0xff]  ;;  %v10420_v27 = vpack.c.bf16 %v2567_v3, %v2565_v59  ;;  %v2586_v20 = vld [vmem:[%s12064_s6 + $0xb0] sm:$0xff]  ;;  %v2591_v59 = vld [vmem:[%s12064_s6 + $0xd8] sm:$0xff] }
 0xe2e   :  { %v10431_v40 = vpack.c.bf16 %v2566_v44, %v2564_v8  ;;  %v10521_v3 = vpack.c.bf16 %v2586_v20, %v2584_v19  ;;  %v10524_v8 = vpack.c.bf16 %v2591_v59, %v2589_v50  ;;  %v2588_v44 = vld [vmem:[%s12064_s6 + $0xc0] sm:$0xff] }
 0xe2f   :  { %6898 = vmatprep.mubr.msk.f32.mxu0 %vm1577_vm15, %v2342_v26  ;;  %v2569_v26 = vld [vmem:[%s12064_s6 + $0x28] sm:$0xff]  ;;  %8055 = vmatprep.subr.bf16.mxu1 %v10420_v27 }
 0xe30   :  { %2434 = vmatmul.mubr.f32.vlgmr.msra.gmra.mrb[22].mxu0 %v2341_v32  ;;  %v2571_v32 = vld [vmem:[%s12064_s6 + $0x38] sm:$0xff]  ;;  %8057 = vmatpush1.bf16.msra.mxu1 %v10431_v40 }
 0xe31   :  { %8041 = vmatpush1.bf16.msra.mxu0 %v10350_v25  ;;  %2528 = vmatprep.mubr.f32.mxu0 %v12114_v61  ;;  %v10433_v58 = vpack.c.bf16 %v2571_v32, %v2569_v26  ;;  %v2590_v26 = vld [vmem:[%s12064_s6 + $0xd0] sm:$0xff]  ;;  %v2593_v32 = vld [vmem:[%s12064_s6 + $0xe8] sm:$0xff] }
 0xe32   :  { %8043 = vmatprep.subr.bf16.mxu0 %v10352_v10  ;;  %v10539_v12 = vpack.c.bf16 %v2590_v26, %v2588_v44  ;;  %v10542_v55 = vpack.c.bf16 %v2595_v30, %v2593_v32 }
 0xe33   :  { %8059 = vmatprep.subr.bf16.mxu1 %v10433_v58 }
 0xe34   :  { %8061 = vmatpush1.bf16.msra.mxu1 %v10449_v52 }
 0xe35   :  { %8045 = vmatpush1.bf16.msra.mxu0 %v10356_v0  ;;  %8063 = vmatprep.subr.bf16.mxu1 %v10452_v49 }
 0xe36   :  { %8047 = vmatprep.subr.bf16.mxu0 %v10360_v23 }
 0xe39   :  { %8049 = vmatpush1.bf16.msra.mxu0 %v10363_v39 }
 0xe3a   :  { %8051 = vmatprep.subr.bf16.mxu0 %v10366_v16 }
 0xe3d   :  { %8053 = vmatpush1.bf16.msra.mxu0 %v10369_v48 }
 0xe3e   :  { %7372 = vmatprep.subr.mxu0 %v12114_v61 }
 0xe40   :  { %6900 = vmatmul.mubr.msk.f32.vlgmr.msra.gmra.mrb[6].mxu0 %vm609_vm7, %v10245_v14 }
 0xe41   :  { %7374 = vmatprep.mubr.msk.f32.mxu0 %vm9318_vm8, %v12114_v61  ;;  %7373 = vmatpush3.msk.msra.mxu0 %vm1207_vm9, %v2776_v33  ;;  %v2577_v33 = vld [vmem:[%s12064_s6 + $0x68] sm:$0xff] }
 0xe42   :  { %8098 = vmatprep.subr.bf16.mxu0 %v12122_v36 }
 0xf03   :  { %v2435_v21 = vpop.f32.mrb[22].mxu0 }
 0xf04   :  { %6899 = vst.msk [vmem:[%s12076_s18 + $0x8] sm:$0xff] %vm1203_vm10, %v2435_v21  ;;  %v2437_v63 = vpop.f32.mrb[23].mxu0  ;;  %7375 = vmatmul.mubr.msk.f32.vlgmr.msra.gmra.mrb[24].mxu0 %vm1203_vm10, %v2435_v21  ;;  %v2579_v21 = vld [vmem:[%s12064_s6 + $0x78] sm:$0xff] }
 0xf05   :  { %7393 = vmatprep.mubr.msk.f32.mxu0 %vm9318_vm8, %v12114_v61  ;;  %8100 = vmatpush3.bf16.msra.mxu0 %v10396_v24  ;;  %v10467_v63 = vpack.c.bf16 %v2574_v60, %v2572_v37  ;;  %v2594_v37 = vld [vmem:[%s12064_s6 + $0xf0] sm:$0xff] }
 0xf06   :  { %8101 = vmatprep.subr.bf16.mxu0 %v12122_v36  ;;  %v10551_v60 = vpack.c.bf16 %v2594_v37, %v2592_v6 }
 0xf07   :  { %8065 = vmatpush1.bf16.msra.mxu1 %v10467_v63 }
 0xf09   :  { %8103 = vmatpush3.bf16.msra.mxu0 %v10399_v1 }
 0xf0a   :  { %8104 = vmatprep.subr.bf16.mxu0 %v12122_v36 }
 0xf0d   :  { %8106 = vmatpush3.bf16.msra.mxu0 %v10403_v15 }
 0xf0e   :  { %8107 = vmatprep.subr.bf16.mxu0 %v12122_v36 }
 0xf11   :  { %8109 = vmatpush3.bf16.msra.mxu0 %v10408_v51 }
 0xf13   :  { %v2530_v14 = vpop.f32.mrb[6].mxu0 }
 0xf14   :  { %v8774_v62 = vadd.f32 %v2530_v14, %v9607_v41  ;;  %v2532_v54 = vpop.f32.mrb[7].mxu0  ;;  %v10470_v14 = vpack.c.bf16 %v2579_v21, %v2577_v33 }
 0xf15   :  { %v10389_v5 = vadd.f32 %v2532_v54, %v9613_v47  ;;  %v2578_v54 = vld [vmem:[%s12064_s6 + $0x70] sm:$0xff] }
 0xf16   :  { %v6901_v35 = vmul.f32 -1.442695, %v8774_v62  ;;  %v2576_v62 = vld [vmem:[%s12064_s6 + $0x60] sm:$0xff]  ;;  %8067 = vmatprep.subr.bf16.mxu1 %v10470_v14 }
 0xf17   :  { %v6902_v33 = vmul.f32 -1.442695, %v10389_v5 }
 0xf18   :  { %8904 = vpow2.f32 %v6901_v35  ;;  %v2581_v35 = vld [vmem:[%s12064_s6 + $0x88] sm:$0xff] }
 0xf19   :  { %8906 = vtanh.f32 %v10389_v5  ;;  %v1984_v5 = vadd.f32 %v9987_v53, %v10330_v46 }
 0xf22   :  { %v8905_v2 = vpop.eup %8904 }
 0xf23   :  { %v2540_v17 = vadd.f32 1.0, %v8905_v2  ;;  %v8907_v22 = vpop.eup %8906  ;;  %v2583_v2 = vld [vmem:[%s12064_s6 + $0x98] sm:$0xff] }
 0xf25   :  { %8908 = vrcp.f32 %v2540_v17  ;;  %v10485_v17 = vpack.c.bf16 %v2578_v54, %v2576_v62 }
 0xf26   :  { %8910 = vpow2.f32 %v6902_v33 }
 0xf27   :  { %8069 = vmatpush1.bf16.msra.mxu1 %v10485_v17 }
 0xf2f   :  { %v10392_v43 = vpop.eup %8908 }
 0xf30   :  { %v2551_v56 = vmul.f32 %v10392_v43, %v8907_v22  ;;  %v10488_v22 = vpack.c.bf16 %v2583_v2, %v2581_v35  ;;  %v8911_v21 = vpop.eup %8910  ;;  %v2550_v54 = vmul.f32 %v10392_v43, %v10228_v34 }
 0xf31   :  { %v2547_v62 = vadd.f32 1.0, %v8911_v21  ;;  %v2689_v21 = vld [vmem:[#allocation11] sm:$0xff] }
 0xf32   :  { %2553 = vrot.lane.b32.xlu0 %v2551_v56, %s9315_s4  ;;  %v2580_v56 = vld [vmem:[%s12064_s6 + $0x80] sm:$0xff]  ;;  %8071 = vmatprep.subr.bf16.mxu1 %v10488_v22 }
 0xf33   :  { %v10503_v31 = vpack.c.bf16 %v2582_v57, %v2580_v56  ;;  %8912 = vrcp.f32 %v2547_v62  ;;  %v2690_v62 = vld [vmem:[#allocation11 + $0x8] sm:$0xff] }
 0xf35   :  { %8073 = vmatpush1.bf16.msra.mxu1 %v10503_v31 }
 0xf36   :  { %8075 = vmatprep.subr.bf16.mxu1 %v10506_v9 }
 0xf39   :  { %8077 = vmatpush1.bf16.msra.mxu1 %v10521_v3 }
 0xf3a   :  { %8079 = vmatprep.subr.bf16.mxu1 %v10524_v8 }
 0xf3d   :  { %8081 = vmatpush1.bf16.msra.mxu1 %v10539_v12  ;;  %v8913_v56 = vpop.eup %8912 }
 0xf3e   :  { %8083 = vmatprep.subr.bf16.mxu1 %v10542_v55 }
 0xf41   :  { %8085 = vmatpush1.bf16.msra.mxu1 %v10551_v60 }
 0xf42   :  { %8086 = vmatprep.subr.bf16.mxu1 %v12122_v36 }
 0xfa4   :  { %v2554_v35 = vpop.permute.xlu0 %2553 }
 0xfa5   :  { %v10559_v2 = vadd.f32 %v2554_v35, %v2550_v54  ;;  %v2691_v54 = vld [vmem:[#allocation11 + $0x10] sm:$0xff]  ;;  %v10585_v35 = vpack.c.bf16 %v2690_v62, %v2689_v21 }
 0xfa7   :  { %8914 = vtanh.f32 %v10559_v2 }
 0xfb1   :  { %v8915_v57 = vpop.eup %8914 }
 0xfb2   :  { %v2558_v7 = vmul.f32 %v8915_v57, %v8913_v56  ;;  %v2692_v56 = vld [vmem:[#allocation11 + $0x18] sm:$0xff] }
 0xfb3   :  { %v10588_v57 = vpack.c.bf16 %v2692_v56, %v2691_v54 }
 0xfb4   :  { %2560 = vrot.lane.b32.xlu1 %v2558_v7, %s9315_s4  ;;  %v2693_v7 = vld [vmem:[#allocation11 + $0x20] sm:$0xff] }
 0xfd7   :  { %v10565_v42 = vpop.f32.mrb[24].mxu0 }
 0xfd8   :  { %v10568_v19 = vadd.f32 %v10565_v42, %v1984_v5  ;;  %v7376_v34 = vpop.f32.mrb[25].mxu0  ;;  %v2694_v5 = vld [vmem:[#allocation11 + $0x28] sm:$0xff] }
 0xfd9   :  { %v10592_v34 = vpack.c.bf16 %v2694_v5, %v2693_v7  ;;  %v3020_v7 = vld [vmem:[%s12072_s14] sm:$0xff]  ;;  %v3022_v5 = vld [vmem:[%s12072_s14 + $0x10] sm:$0xff] }
 0xfda   :  { %7394 = vmatmul.mubr.msk.f32.vlgmr.msra.gmra.mrb[26].mxu0 %vm609_vm7, %v10568_v19 }
 0xfdb   :  { %3103 = vmatprep.mubr.f32.mxu0 %v12114_v61 }
0x1026   :  { %v10573_v43 = vpop.permute.xlu1 %2560 }
0x1027   :  { %v2563_v20 = vsel %vm609_vm7, %v10573_v43, %v10304_v4 }
0x1028   :  { %2661 = vmatmul.mubr.f32.vlgmr.msra.gmra.mrb[40].mxu1 %v2563_v20  ;;  %v2695_v20 = vld [vmem:[#allocation11 + $0x30] sm:$0xff] }
0x1029   :  { %7369 = vmatprep.mubr.msk.f32.mxu1 %vm9318_vm8, %v12114_v61  ;;  %8088 = vmatpush3.bf16.msra.mxu1 %v10585_v35 }
0x102a   :  { %8089 = vmatprep.subr.bf16.mxu1 %v12122_v36 }
0x102d   :  { %8091 = vmatpush3.bf16.msra.mxu1 %v10588_v57 }
0x102e   :  { %8092 = vmatprep.subr.bf16.mxu1 %v12122_v36 }
0x1031   :  { %8094 = vmatpush3.bf16.msra.mxu1 %v10592_v34 }
0x1032   :  { %8095 = vmatprep.subr.bf16.mxu1 %v12122_v36 }
0x10ad   :  { %v10580_v53 = vpop.f32.mrb[26].mxu0 }
0x10ae   :  { %v7395_v46 = vpop.f32.mrb[27].mxu0 }
0x10af   :  { %v2696_v46 = vld [vmem:[#allocation11 + $0x38] sm:$0xff] }
0x10fb   :  { %v2662_v50 = vpop.f32.mrb[40].mxu1 }
0x10fc   :  { %v2663_v59 = vadd.f32 %v2662_v50, %v9865_v11  ;;  %v2664_v44 = vpop.f32.mrb[41].mxu1  ;;  %v10596_v50 = vpack.c.bf16 %v2696_v46, %v2695_v20  ;;  %v10637_v20 = vpack.c.bf16 %v3022_v5, %v3020_v7  ;;  %v3025_v46 = vld [vmem:[%s12072_s14 + $0x28] sm:$0xff]  ;;  %v3035_v5 = vld [vmem:[%s12072_s14 + $0x78] sm:$0xff] }
0x10fd   :  { %v2665_v32 = vadd.f32 %v2664_v44, %v9870_v45  ;;  %v3033_v7 = vld [vmem:[%s12072_s14 + $0x68] sm:$0xff] }
0x10fe   :  { %v6903_v26 = vmul.f32 -1.442695, %v2663_v59  ;;  %8097 = vmatpush3.bf16.msra.mxu1 %v10596_v50 }
0x10ff   :  { %8110 = vmatprep.subr.bf16.mxu1 %v12122_v36  ;;  %v6904_v59 = vmul.f32 -1.442695, %v2665_v32 }
0x1100   :  { %8916 = vpow2.f32 %v6903_v26 }
0x1101   :  { %8918 = vtanh.f32 %v2665_v32  ;;  %v3021_v32 = vld [vmem:[%s12072_s14 + $0x8] sm:$0xff] }
0x110a   :  { %v8917_v30 = vpop.eup %8916 }
0x110b   :  { %v2670_v6 = vadd.f32 1.0, %v8917_v30  ;;  %v8919_v4 = vpop.eup %8918 }
0x110d   :  { %8920 = vrcp.f32 %v2670_v6 }
0x110e   :  { %8922 = vpow2.f32 %v6904_v59  ;;  %v3027_v59 = vld [vmem:[%s12072_s14 + $0x38] sm:$0xff] }
0x1117   :  { %v8921_v37 = vpop.eup %8920 }
0x1118   :  { %v2681_v33 = vmul.f32 %v8921_v37, %v8919_v4  ;;  %v8923_v44 = vpop.eup %8922  ;;  %v2680_v30 = vmul.f32 %v8921_v37, %v10301_v28  ;;  %v2935_v28 = vmul.f32 %v10568_v19, %v10568_v19  ;;  %v3023_v37 = vld [vmem:[%s12072_s14 + $0x18] sm:$0xff] }
0x1119   :  { %v2677_v26 = vadd.f32 1.0, %v8923_v44  ;;  %v10629_v56 = vpack.c.bf16 %v3023_v37, %v3021_v32  ;;  %v10647_v44 = vpack.c.bf16 %v3027_v59, %v3025_v46  ;;  %v3030_v32 = vld [vmem:[%s12072_s14 + $0x50] sm:$0xff]  ;;  %v3032_v46 = vld [vmem:[%s12072_s14 + $0x60] sm:$0xff]  ;;  %v10686_v59 = vpack.c.bf16 %v3035_v5, %v3033_v7 }
0x111a   :  { %2683 = vrot.lane.b32.xlu0 %v2681_v33, %s9315_s4 }
0x111b   :  { %8924 = vrcp.f32 %v2677_v26  ;;  %8123 = vmatprep.subr.bf16.mxu0 %v10629_v56  ;;  %12131 = vst [vmem:[#allocation34_spill] sm:$0xff] %v10647_v44  ;;  %v3024_v26 = vld [vmem:[%s12072_s14 + $0x20] sm:$0xff]  ;;  %12135 = vst [vmem:[#allocation38_spill] sm:$0xff] %v10686_v59 }
0x111c   :  { %8125 = vmatpush1.bf16.msra.mxu0 %v10637_v20 }
0x111d   :  { %8127 = vmatprep.subr.bf16.mxu0 %v10647_v44 }
0x1125   :  { %v8925_v33 = vpop.eup %8924 }
0x118c   :  { %v2684_v6 = vpop.permute.xlu0 %2683 }
0x118d   :  { %v10602_v4 = vadd.f32 %v2684_v6, %v2680_v30  ;;  %v3026_v30 = vld [vmem:[%s12072_s14 + $0x30] sm:$0xff] }
0x118e   :  { %v10655_v6 = vpack.c.bf16 %v3026_v30, %v3024_v26  ;;  %v3034_v26 = vld [vmem:[%s12072_s14 + $0x70] sm:$0xff] }
0x118f   :  { %8926 = vtanh.f32 %v10602_v4  ;;  %v10691_v30 = vpack.c.bf16 %v3034_v26, %v3032_v46  ;;  %v3009_v46 = vsub.f32 %v10568_v19, %v10580_v53  ;;  %v3132_v19 = vld [vmem:[%s12075_s17 + $0x20] sm:$0xff] }
0x1190   :  { %12132 = vst [vmem:[#allocation35_spill] sm:$0xff] %v10655_v6  ;;  %8129 = vmatpush1.bf16.msra.mxu0 %v10655_v6 }
0x1191   :  { %12136 = vst [vmem:[#allocation39_spill] sm:$0xff] %v10691_v30 }
0x1199   :  { %v8927_v21 = vpop.eup %8926 }
0x119a   :  { %v10605_v62 = vmul.f32 %v8927_v21, %v8925_v33  ;;  %v3029_v33 = vld [vmem:[%s12072_s14 + $0x48] sm:$0xff]  ;;  %v3031_v21 = vld [vmem:[%s12072_s14 + $0x58] sm:$0xff] }
0x119c   :  { %2698 = vrot.lane.b32.xlu1 %v10605_v62, %s9315_s4 }
0x120e   :  { %v2699_v54 = vpop.permute.xlu1 %2698 }
0x120f   :  { %7370 = vmatmul.mubr.msk.f32.vlgmr.msra.gmra.mrb[42].mxu1 %vm609_vm7, %v2699_v54  ;;  %v10665_v54 = vpack.c.bf16 %v3031_v21, %v3029_v33 }
0x1210   :  { %8112 = vmatpush3.bf16.msra.mxu1 %v10396_v24  ;;  %7412 = vmatprep.mubr.msk.f32.mxu1 %vm9318_vm8, %v12114_v61 }
0x1211   :  { %8113 = vmatprep.subr.bf16.mxu1 %v12122_v36  ;;  %12133 = vst [vmem:[#allocation36_spill] sm:$0xff] %v10665_v54  ;;  %8131 = vmatprep.subr.bf16.mxu0 %v10665_v54  ;;  %v10702_v54 = vld [vmem:[#allocation15] ss:$0 sm:$0xff] }
0x1214   :  { %8115 = vmatpush3.bf16.msra.mxu1 %v10399_v1 }
0x1215   :  { %8116 = vmatprep.subr.bf16.mxu1 %v12122_v36 }
0x1218   :  { %8118 = vmatpush3.bf16.msra.mxu1 %v10403_v15 }
0x1219   :  { %8119 = vmatprep.subr.bf16.mxu1 %v12122_v36 }
0x121c   :  { %8121 = vmatpush3.bf16.msra.mxu1 %v10408_v51 }
0x121d   :  { %8138 = vmatprep.subr.bf16.mxu1 %v12122_v36 }
0x121f   :  { %7413 = vmatmul.mubr.msk.f32.vlgmr.msra.gmra.mrb[44].mxu1 %vm609_vm7, %v2935_v28  ;;  %v3028_v28 = vld [vmem:[%s12072_s14 + $0x40] sm:$0xff] }
0x1220   :  { %v10673_v37 = vpack.c.bf16 %v3030_v32, %v3028_v28  ;;  %v3010_v28 = vmul.f32 %v10580_v53, %v10580_v53 }
0x1222   :  { %12134 = vst [vmem:[#allocation37_spill] sm:$0xff] %v10673_v37  ;;  %8133 = vmatpush1.bf16.msra.mxu0 %v10673_v37 }
0x1223   :  { %8135 = vmatprep.subr.bf16.mxu0 %v10686_v59 }
0x1226   :  { %8137 = vmatpush1.bf16.msra.mxu0 %v10691_v30  ;;  %v10705_v30 = vld [vmem:[#allocation17] ss:$0 sm:$0xff] }
0x1227   :  { %8170 = vmatprep.subr.bf16.mxu0 %v10343_v18 }
0x12e2   :  { %v10696_v33 = vpop.f32.mrb[42].mxu1 }
0x12e3   :  { %v7371_v21 = vpop.f32.mrb[43].mxu1 }
0x12f2   :  { %v3005_v32 = vpop.f32.mrb[44].mxu1 }
0x12f3   :  { %v3011_v7 = vsub.f32 %v3005_v32, %v3010_v28  ;;  %v7414_v5 = vpop.f32.mrb[45].mxu1  ;;  %v3138_v32 = vld [vmem:[%s12075_s17 + $0x50] sm:$0xff] }
0x12f5   :  { %v3012_v37 = vadd.f32 1e-05, %v3011_v7  ;;  %v3139_v7 = vld [vmem:[%s12075_s17 + $0x58] sm:$0xff] }
0x12f6   :  { %v10804_v5 = vpack.c.bf16 %v3139_v7, %v3138_v32 }
0x12f7   :  { %8928 = vrsqrt.f32 %v3012_v37  ;;  %v3136_v37 = vld [vmem:[%s12075_s17 + $0x40] sm:$0xff] }
0x1301   :  { %v8929_v26 = vpop.eup %8928 }
0x1302   :  { %v3014_v59 = vmul.f32 %v8929_v26, %v3009_v46  ;;  %v3140_v46 = vld [vmem:[%s12075_s17 + $0x60] sm:$0xff]  ;;  %v3141_v26 = vld [vmem:[%s12075_s17 + $0x68] sm:$0xff] }
0x1304   :  { %v3015_v18 = vmul.f32 %v10702_v54, %v3014_v59  ;;  %v3137_v59 = vld [vmem:[%s12075_s17 + $0x48] sm:$0xff] }
0x1305   :  { %v10794_v28 = vpack.c.bf16 %v3137_v59, %v3136_v37 }
0x1306   :  { %v3016_v21 = vadd.f32 %v10705_v30, %v3015_v18  ;;  %v10814_v18 = vpack.c.bf16 %v3141_v26, %v3140_v46 }
0x1308   :  { %vm3017_vm1 = vcmp.ge.f32.partialorder %v3016_v21, 0.0  ;;  %v3018_v6 = vmul.f32 0.01, %v3016_v21 }
0x130a   :  { %v3019_v44 = vsel %vm3017_vm1, %v3016_v21, %v3018_v6  ;;  %v3142_v21 = vld [vmem:[%s12075_s17 + $0x70] sm:$0xff] }
0x130b   :  { %6910 = vmatmul.mubr.msk.f32.vlgmr.msra.gmra.mrb[28].mxu0 %vm609_vm7, %v3019_v44  ;;  %v3135_v44 = vld [vmem:[%s12075_s17 + $0x38] sm:$0xff] }
0x130c   :  { %8172 = vmatpush1.bf16.msra.mxu0 %v10350_v25  ;;  %3313 = vmatprep.mubr.f32.mxu0 %v12114_v61 }
0x130d   :  { %8174 = vmatprep.subr.bf16.mxu0 %v10352_v10 }
0x1310   :  { %8176 = vmatpush1.bf16.msra.mxu0 %v10356_v0  ;;  %v12137_v0 = vld [vmem:[#allocation26_spill] sm:$0xff] }
0x1311   :  { %8178 = vmatprep.subr.bf16.mxu0 %v10360_v23  ;;  %v334_v23 = vadd.f32 %v12137_v0, %v9607_v41  ;;  %v3143_v0 = vld [vmem:[%s12075_s17 + $0x78] sm:$0xff] }
0x1314   :  { %8180 = vmatpush1.bf16.msra.mxu0 %v10363_v39  ;;  %v12138_v39 = vld [vmem:[#allocation27_spill] sm:$0xff] }
0x1315   :  { %8182 = vmatprep.subr.bf16.mxu0 %v10366_v16  ;;  %v336_v16 = vadd.f32 %v12138_v39, %v9613_v47 }
0x1318   :  { %8184 = vmatpush1.bf16.msra.mxu0 %v10369_v48 }
0x1319   :  { %8186 = vmatprep.subr.bf16.mxu0 %v10420_v27 }
0x131b   :  { %6914 = vmatmul.mubr.msk.f32.vlgmr.msra.gmra.mrb[30].mxu0 %vm609_vm7, %v10573_v43  ;;  %v3133_v43 = vld [vmem:[%s12075_s17 + $0x28] sm:$0xff] }
0x131c   :  { %8188 = vmatpush1.bf16.msra.mxu0 %v10431_v40  ;;  %3445 = vmatprep.mubr.f32.mxu0 %v12114_v61  ;;  %v10774_v53 = vpack.c.bf16 %v3133_v43, %v3132_v19 }
0x131d   :  { %8190 = vmatprep.subr.bf16.mxu0 %v10433_v58 }
0x1320   :  { %8192 = vmatpush1.bf16.msra.mxu0 %v10449_v52 }
0x1321   :  { %8194 = vmatprep.subr.bf16.mxu0 %v10452_v49 }
0x1324   :  { %8196 = vmatpush1.bf16.msra.mxu0 %v10467_v63 }
0x1325   :  { %8198 = vmatprep.subr.bf16.mxu0 %v10470_v14 }
0x1328   :  { %8200 = vmatpush1.bf16.msra.mxu0 %v10485_v17 }
0x1329   :  { %8202 = vmatprep.subr.bf16.mxu0 %v10488_v22 }
0x132c   :  { %8204 = vmatpush1.bf16.msra.mxu0 %v10503_v31  ;;  %v2774_v31 = vld [vmem:[#allocation3 + $0x20] sm:$0xff] }
0x132d   :  { %8206 = vmatprep.subr.bf16.mxu0 %v10506_v9  ;;  %v3128_v9 = vld [vmem:[%s12075_s17] sm:$0xff] }
0x1330   :  { %8208 = vmatpush1.bf16.msra.mxu0 %v10521_v3  ;;  %v3129_v3 = vld [vmem:[%s12075_s17 + $0x8] sm:$0xff] }
0x1331   :  { %8210 = vmatprep.subr.bf16.mxu0 %v10524_v8  ;;  %v3130_v8 = vld [vmem:[%s12075_s17 + $0x10] sm:$0xff] }
0x1334   :  { %8212 = vmatpush1.bf16.msra.mxu0 %v10539_v12  ;;  %v10756_v12 = vpack.c.bf16 %v3129_v3, %v3128_v9  ;;  %v2775_v3 = vld [vmem:[#allocation3 + $0x28] sm:$0xff] }
0x1335   :  { %8214 = vmatprep.subr.bf16.mxu0 %v10542_v55  ;;  %v3131_v55 = vld [vmem:[%s12075_s17 + $0x18] sm:$0xff] }
0x1336   :  { %8140 = vmatpush1.bf16.msra.mxu1 %v10756_v12 }
0x1337   :  { %8141 = vmatprep.subr.bf16.mxu1 %v12122_v36 }
0x1338   :  { %8216 = vmatpush1.bf16.msra.mxu0 %v10551_v60  ;;  %v10764_v60 = vpack.c.bf16 %v3131_v55, %v3130_v8 }
0x1339   :  { %8241 = vmatprep.subr.bf16.mxu0 %v12122_v36 }
0x133a   :  { %8143 = vmatpush1.bf16.msra.mxu1 %v10764_v60 }
0x133b   :  { %8144 = vmatprep.subr.bf16.mxu1 %v12122_v36 }
0x133e   :  { %8146 = vmatpush1.bf16.msra.mxu1 %v10774_v53 }
0x133f   :  { %8147 = vmatprep.subr.bf16.mxu1 %v12122_v36 }
0x13de   :  { %v10737_v25 = vpop.f32.mrb[28].mxu0 }
0x13df   :  { %v10739_v10 = vpop.f32.mrb[29].mxu0  ;;  %v3106_v55 = vadd.f32 %v10737_v25, %v10220_v29 }
0x13e0   :  { %v3108_v8 = vadd.f32 %v10739_v10, %v10223_v38 }
0x13ee   :  { %v3315_v48 = vpop.f32.mrb[30].mxu0 }
0x13ef   :  { %v3320_v27 = vadd.f32 %v3315_v48, %v334_v23  ;;  %v3317_v40 = vpop.f32.mrb[31].mxu0  ;;  %v10824_v23 = vpack.c.bf16 %v3143_v0, %v3142_v21 }
0x13f0   :  { %v3321_v58 = vadd.f32 %v3317_v40, %v336_v16 }
0x13f1   :  { %v6915_v52 = vmul.f32 -1.442695, %v3320_v27 }
0x13f2   :  { %v6916_v39 = vmul.f32 -1.442695, %v3321_v58 }
0x13f3   :  { %8930 = vpow2.f32 %v6915_v52 }
0x13f4   :  { %8932 = vtanh.f32 %v3321_v58  ;;  %v3147_v58 = vld [vmem:[%s12075_s17 + $0x98] sm:$0x1] }
0x13fd   :  { %v8931_v49 = vpop.eup %8930 }
0x13fe   :  { %v3325_v63 = vadd.f32 1.0, %v8931_v49  ;;  %v8933_v14 = vpop.eup %8932  ;;  %v3144_v49 = vld [vmem:[%s12075_s17 + $0x80] sm:$0xff] }
0x1400   :  { %8934 = vrcp.f32 %v3325_v63  ;;  %v3145_v63 = vld [vmem:[%s12075_s17 + $0x88] sm:$0xff] }
0x1401   :  { %8936 = vpow2.f32 %v6916_v39 }
0x140a   :  { %v8935_v17 = vpop.eup %8934 }
0x140b   :  { %v3336_v22 = vmul.f32 %v8935_v17, %v8933_v14  ;;  %v8937_v16 = vpop.eup %8936  ;;  %v3335_v27 = vmul.f32 %v8935_v17, %v10559_v2  ;;  %v10838_v14 = vpack.c.bf16 %v3145_v63, %v3144_v49  ;;  %v10846_v2 = vld [vmem:[%s12075_s17 + $0x90] sm:$0xff] }
0x140c   :  { %v3332_v48 = vadd.f32 1.0, %v8937_v16  ;;  %v8166_v17 = vpack.c.bf16 %v3147_v58, %v10846_v2 }
0x140d   :  { %3338 = vrot.lane.b32.xlu0 %v3336_v22, %s9315_s4 }
0x140e   :  { %8938 = vrcp.f32 %v3332_v48 }
0x1411   :  { %3118 = vrot.lane.b32.xlu0 %v2774_v31, %s9319_s21 }
0x1415   :  { %3113 = vrot.lane.b32.xlu0 %v10565_v42, %s9315_s4  ;;  %v3134_v42 = vld [vmem:[%s12075_s17 + $0x30] sm:$0xff] }
0x1416   :  { %v10784_v6 = vpack.c.bf16 %v3135_v44, %v3134_v42 }
0x1418   :  { %8149 = vmatpush1.bf16.msra.mxu1 %v10784_v6  ;;  %v8939_v22 = vpop.eup %8938 }
0x1419   :  { %8150 = vmatprep.subr.bf16.mxu1 %v12122_v36 }
0x141c   :  { %8152 = vmatpush1.bf16.msra.mxu1 %v10794_v28 }
0x141d   :  { %8153 = vmatprep.subr.bf16.mxu1 %v12122_v36 }
0x1420   :  { %8155 = vmatpush1.bf16.msra.mxu1 %v10804_v5 }
0x1421   :  { %8156 = vmatprep.subr.bf16.mxu1 %v12122_v36 }
0x1424   :  { %8158 = vmatpush1.bf16.msra.mxu1 %v10814_v18 }
0x1425   :  { %8159 = vmatprep.subr.bf16.mxu1 %v12122_v36 }
0x1428   :  { %8161 = vmatpush1.bf16.msra.mxu1 %v10824_v23 }
0x1429   :  { %8162 = vmatprep.subr.bf16.mxu1 %v12122_v36 }
0x142c   :  { %8164 = vmatpush1.bf16.msra.mxu1 %v10838_v14 }
0x142d   :  { %8165 = vmatprep.subr.bf16.mxu1 %v12122_v36 }
0x1430   :  { %8168 = vmatpush1.bf16.msk.msra.mxu1 %vm10197_vm13, %v8166_v17 }
0x1431   :  { %8217 = vmatprep.subr.bf16.mxu1 %v12122_v36 }
0x147f   :  { %v3339_v40 = vpop.permute.xlu0 %3338 }
0x1480   :  { %v10830_v52 = vadd.f32 %v3339_v40, %v3335_v27  ;;  %v3559_v40 = vld [vmem:[#allocation3 + $0x30] sm:$0xff] }
0x1482   :  { %8940 = vtanh.f32 %v10830_v52 }
0x1483   :  { %8942 = vtanh.f32 %v3108_v8  ;;  %v3119_v19 = vpop.permute.xlu0 %3118 }
0x1484   :  { %8944 = vtanh.f32 %v3106_v55  ;;  %v3560_v55 = vld [vmem:[#allocation3 + $0x38] sm:$0xff] }
0x1487   :  { %v3114_v42 = vpop.permute.xlu0 %3113 }
0x1488   :  { %v3125_v10 = vsel %vm1550_vm14, %v3114_v42, %v3119_v19 }
0x148c   :  { %v8941_v31 = vpop.eup %8940 }
0x148d   :  { %v3343_v9 = vmul.f32 %v8941_v31, %v8939_v22  ;;  %v8943_v25 = vpop.eup %8942 }
0x148e   :  { %v8945_v32 = vpop.eup %8944 }
0x148f   :  { %3345 = vrot.lane.b32.xlu1 %v3343_v9, %s9315_s4  ;;  %v3126_v46 = vmul.f32 %v8945_v32, %v3125_v10  ;;  %v12144_v32 = vld [vmem:[#allocation39_spill] sm:$0xff] }
0x1493   :  { %3120 = vrot.lane.b32.xlu1 %v2775_v3, %s9319_s21 }
0x1501   :  { %v10861_v43 = vpop.permute.xlu1 %3345 }
0x1502   :  { %v3348_v44 = vsel %vm609_vm7, %v10861_v43, %v10605_v62 }
0x1503   :  { %3446 = vmatmul.mubr.f32.vlgmr.msra.gmra.mrb[32].mxu0 %v3348_v44  ;;  %v10927_v44 = vld [vmem:[%s12067_s9] ss:$0 sm:$0xff] }
0x1504   :  { %8243 = vmatpush3.bf16.msra.mxu0 %v10396_v24  ;;  %7474 = vmatprep.mubr.msk.f32.mxu0 %vm9318_vm8, %v12114_v61 }
0x1505   :  { %v3121_v37 = vpop.permute.xlu1 %3120  ;;  %8244 = vmatprep.subr.bf16.mxu0 %v12122_v36 }
0x1506   :  { %v3122_v59 = vsel %vm1550_vm14, %v3119_v19, %v3121_v37  ;;  %v3561_v19 = vld [vmem:[#allocation12] sm:$0x7] }
0x1507   :  { %v3127_v7 = vmul.f32 %v8943_v25, %v3122_v59  ;;  %v12142_v59 = vld [vmem:[#allocation37_spill] sm:$0xff] }
0x1508   :  { %8246 = vmatpush3.bf16.msra.mxu0 %v10399_v1 }
0x1509   :  { %6912 = vmatprep.mubr.msk.f32.mxu1 %vm1577_vm15, %v3127_v7  ;;  %8247 = vmatprep.subr.bf16.mxu0 %v12122_v36 }
0x150a   :  { %3219 = vmatmul.mubr.f32.vlgmr.msra.gmra.mrb[46].mxu1 %v3126_v46 }
0x150b   :  { %8219 = vmatpush3.bf16.msra.mxu1 %v10585_v35  ;;  %7431 = vmatprep.mubr.msk.f32.mxu1 %vm9318_vm8, %v12114_v61 }
0x150c   :  { %8220 = vmatprep.subr.bf16.mxu1 %v12122_v36  ;;  %8249 = vmatpush3.bf16.msra.mxu0 %v10403_v15 }
0x150d   :  { %8250 = vmatprep.subr.bf16.mxu0 %v12122_v36 }
0x150f   :  { %8222 = vmatpush3.bf16.msra.mxu1 %v10588_v57 }
0x1510   :  { %8223 = vmatprep.subr.bf16.mxu1 %v12122_v36  ;;  %8252 = vmatpush3.bf16.msra.mxu0 %v10408_v51 }
0x1511   :  { %8269 = vmatprep.subr.bf16.mxu0 %v12122_v36 }
0x1513   :  { %8225 = vmatpush3.bf16.msra.mxu1 %v10592_v34 }
0x1514   :  { %8226 = vmatprep.subr.bf16.mxu1 %v12122_v36 }
0x1517   :  { %8228 = vmatpush3.bf16.msra.mxu1 %v10596_v50 }
0x1518   :  { %7434 = vmatprep.subr.mxu1 %v12114_v61 }
0x15d6   :  { %v3447_v35 = vpop.f32.mrb[32].mxu0 }
0x15d7   :  { %v3448_v62 = vadd.f32 %v3447_v35, %v9865_v11  ;;  %v3449_v26 = vpop.f32.mrb[33].mxu0 }
0x15d8   :  { %v3450_v34 = vadd.f32 %v3449_v26, %v9870_v45 }
0x15d9   :  { %v6917_v21 = vmul.f32 -1.442695, %v3448_v62 }
0x15da   :  { %v6918_v49 = vmul.f32 -1.442695, %v3450_v34 }
0x15db   :  { %8946 = vpow2.f32 %v6917_v21  ;;  %v3932_v21 = vld [vmem:[%s12075_s17 + $0x98] sm:$0x1] }
0x15dc   :  { %8948 = vtanh.f32 %v3450_v34 }
0x15dd   :  { %v3220_v57 = vpop.f32.mrb[46].mxu1 }
0x15de   :  { %6913 = vst.msk [vmem:[%s12076_s18 + $0x10] sm:$0xff] %vm1203_vm10, %v3220_v57  ;;  %v3222_v0 = vpop.f32.mrb[47].mxu1 }
0x15df   :  { %v4017_v0 = vld [vmem:[#allocation8 + $0x8] sm:$0xff] }
0x15e5   :  { %v8947_v39 = vpop.eup %8946 }
0x15e6   :  { %v3455_v16 = vadd.f32 1.0, %v8947_v39  ;;  %v8949_v50 = vpop.eup %8948 }
0x15e8   :  { %8950 = vrcp.f32 %v3455_v16 }
0x15e9   :  { %8952 = vpow2.f32 %v6918_v49  ;;  %v4018_v49 = vld [vmem:[#allocation8 + $0x10] sm:$0xff] }
0x15f2   :  { %v8951_v48 = vpop.eup %8950 }
0x15f3   :  { %v3466_v27 = vmul.f32 %v8951_v48, %v8949_v50  ;;  %v8953_v63 = vpop.eup %8952  ;;  %v3465_v17 = vmul.f32 %v8951_v48, %v10602_v4 }
0x15f4   :  { %v3462_v58 = vadd.f32 1.0, %v8953_v63 }
0x15f5   :  { %3468 = vrot.lane.b32.xlu1 %v3466_v27, %s9315_s4 }
0x15f6   :  { %8954 = vrcp.f32 %v3462_v58  ;;  %v4021_v58 = vld [vmem:[#allocation8 + $0x28] sm:$0xff] }
0x15f9   :  { %3903 = vrot.lane.b32.xlu1 %v3559_v40, %s9319_s21  ;;  %v4016_v40 = vld [vmem:[#allocation8] sm:$0xff] }
0x1600   :  { %v8955_v9 = vpop.eup %8954 }
0x1667   :  { %v3469_v22 = vpop.permute.xlu1 %3468 }
0x1668   :  { %v10898_v31 = vadd.f32 %v3469_v22, %v3465_v17  ;;  %v4023_v17 = vld [vmem:[#allocation8 + $0x38] sm:$0xff] }
0x166a   :  { %8956 = vtanh.f32 %v10898_v31 }
0x166b   :  { %v3904_v48 = vpop.permute.xlu1 %3903 }
0x1674   :  { %v8957_v3 = vpop.eup %8956 }
0x1675   :  { %v10901_v8 = vmul.f32 %v8957_v3, %v8955_v9 }
0x1677   :  { %3483 = vrot.lane.b32.xlu0 %v10901_v8, %s9315_s4 }
0x167b   :  { %3905 = vrot.lane.b32.xlu0 %v3560_v55, %s9319_s21 }
0x16e9   :  { %v3484_v42 = vpop.permute.xlu0 %3483 }
0x16ea   :  { %7432 = vmatmul.mubr.msk.f32.vlgmr.msra.gmra.mrb[48].mxu1 %vm609_vm7, %v3484_v42 }
0x16eb   :  { %7435 = vmatpush3.msk.msra.mxu1 %vm1207_vm9, %v3561_v19  ;;  %7436 = vmatprep.mubr.msk.f32.mxu1 %vm9318_vm8, %v12114_v61  ;;  %v10977_v19 = vpack.c.bf16 %v4018_v49, %v4016_v40  ;;  %v4428_v49 = vld [vmem:[#allocation14 + $0x20] sm:$0xff] }
0x16ec   :  { %8229 = vmatprep.subr.bf16.mxu1 %v12122_v36 }
0x16ed   :  { %v3906_v27 = vpop.permute.xlu0 %3905 }
0x16ee   :  { %7437 = vmatmul.mubr.msk.f32.vlgmr.msra.gmra.mrb[50].mxu1 %vm1203_vm10, %v3220_v57  ;;  %v8297_v57 = vpack.c.bf16 %v3932_v21, %v10846_v2  ;;  %v3907_v9 = vsel %vm1550_vm14, %v3904_v48, %v3906_v27 }
0x16ef   :  { %8231 = vmatpush3.bf16.msra.mxu1 %v10396_v24  ;;  %7455 = vmatprep.mubr.msk.f32.mxu1 %vm9318_vm8, %v12114_v61 }
0x16f0   :  { %8232 = vmatprep.subr.bf16.mxu1 %v12122_v36 }
0x16f3   :  { %8234 = vmatpush3.bf16.msra.mxu1 %v10399_v1  ;;  %v2769_v1 = vadd.f32 %v10927_v44, %v10696_v33  ;;  %v12141_v33 = vld [vmem:[#allocation36_spill] sm:$0xff] }
0x16f4   :  { %8235 = vmatprep.subr.bf16.mxu1 %v12122_v36 }
0x16f7   :  { %8237 = vmatpush3.bf16.msra.mxu1 %v10403_v15 }
0x16f8   :  { %8238 = vmatprep.subr.bf16.mxu1 %v12122_v36 }
0x16fb   :  { %8240 = vmatpush3.bf16.msra.mxu1 %v10408_v51  ;;  %v12139_v51 = vld [vmem:[#allocation34_spill] sm:$0xff] }
0x16fc   :  { %8254 = vmatprep.subr.bf16.mxu1 %v10629_v56  ;;  %v12140_v56 = vld [vmem:[#allocation35_spill] sm:$0xff] }
0x17bd   :  { %v10922_v4 = vpop.f32.mrb[48].mxu1 }
0x17be   :  { %v7433_v24 = vpop.f32.mrb[49].mxu1 }
0x17bf   :  { %v10979_v24 = vpack.c.bf16 %v4023_v17, %v4021_v58  ;;  %v4430_v17 = vld [vmem:[#allocation14 + $0x30] sm:$0xff] }
0x17c1   :  { %v3634_v10 = vpop.f32.mrb[50].mxu1 }
0x17c2   :  { %v3638_v37 = vadd.f32 %v3634_v10, %v2769_v1  ;;  %3898 = vrot.lane.b32.xlu1 %v3634_v10, %s9315_s4  ;;  %v7438_v15 = vpop.f32.mrb[51].mxu1  ;;  %v4020_v1 = vld [vmem:[#allocation8 + $0x20] sm:$0xff]  ;;  %v4022_v10 = vld [vmem:[#allocation8 + $0x30] sm:$0xff] }
0x17c3   :  { %v4027_v15 = vld [vmem:[#allocation8 + $0x58] sm:$0xff] }
0x17c4   :  { %v3720_v25 = vmul.f32 %v3638_v37, %v3638_v37  ;;  %7456 = vmatmul.mubr.msk.f32.vlgmr.msra.gmra.mrb[52].mxu1 %vm609_vm7, %v3638_v37 }
0x17c5   :  { %8256 = vmatpush1.bf16.msra.mxu1 %v10637_v20  ;;  %3888 = vmatprep.mubr.f32.mxu1 %v12114_v61  ;;  %v12143_v20 = vld [vmem:[#allocation38_spill] sm:$0xff] }
0x17c6   :  { %7475 = vmatmul.mubr.msk.f32.vlgmr.msra.gmra.mrb[34].mxu0 %vm609_vm7, %v3720_v25  ;;  %8258 = vmatprep.subr.bf16.mxu1 %v12139_v51  ;;  %v10983_v25 = vpack.c.bf16 %v4022_v10, %v4020_v1  ;;  %v4136_v10 = vld [vmem:[%s12064_s6 + $0x10] sm:$0xff] }
0x17c7   :  { %8271 = vmatpush1.bf16.msra.mxu0 %v10756_v12 }
0x17c8   :  { %8272 = vmatprep.subr.bf16.mxu0 %v12122_v36 }
0x17c9   :  { %8260 = vmatpush1.bf16.msra.mxu1 %v12140_v56  ;;  %v4024_v56 = vld [vmem:[#allocation8 + $0x40] sm:$0xff] }
0x17ca   :  { %8262 = vmatprep.subr.bf16.mxu1 %v12141_v33  ;;  %v4026_v33 = vld [vmem:[#allocation8 + $0x50] sm:$0xff] }
0x17cb   :  { %8274 = vmatpush1.bf16.msra.mxu0 %v10764_v60 }
0x17cc   :  { %8275 = vmatprep.subr.bf16.mxu0 %v12122_v36 }
0x17cd   :  { %8264 = vmatpush1.bf16.msra.mxu1 %v12142_v59  ;;  %v4029_v59 = vld [vmem:[#allocation8 + $0x68] sm:$0xff] }
0x17ce   :  { %8266 = vmatprep.subr.bf16.mxu1 %v12143_v20  ;;  %v4031_v20 = vld [vmem:[#allocation8 + $0x78] sm:$0xff] }
0x17cf   :  { %8277 = vmatpush1.bf16.msra.mxu0 %v10774_v53 }
0x17d0   :  { %8278 = vmatprep.subr.bf16.mxu0 %v12122_v36 }
0x17d1   :  { %8268 = vmatpush1.bf16.msra.mxu1 %v12144_v32  ;;  %v10990_v32 = vpack.c.bf16 %v4026_v33, %v4024_v56 }
0x17d3   :  { %8280 = vmatpush1.bf16.msra.mxu0 %v10784_v6 }
0x17d4   :  { %8281 = vmatprep.subr.bf16.mxu0 %v12122_v36 }
0x17d7   :  { %8283 = vmatpush1.bf16.msra.mxu0 %v10794_v28 }
0x17d8   :  { %8284 = vmatprep.subr.bf16.mxu0 %v12122_v36 }
0x17db   :  { %8286 = vmatpush1.bf16.msra.mxu0 %v10804_v5 }
0x17dc   :  { %8287 = vmatprep.subr.bf16.mxu0 %v12122_v36 }
0x17df   :  { %8289 = vmatpush1.bf16.msra.mxu0 %v10814_v18 }
0x17e0   :  { %8290 = vmatprep.subr.bf16.mxu0 %v12122_v36 }
0x17e3   :  { %8292 = vmatpush1.bf16.msra.mxu0 %v10824_v23 }
0x17e4   :  { %8293 = vmatprep.subr.bf16.mxu0 %v12122_v36 }
0x17e7   :  { %8295 = vmatpush1.bf16.msra.mxu0 %v10838_v14 }
0x17e8   :  { %8296 = vmatprep.subr.bf16.mxu0 %v12122_v36 }
0x17eb   :  { %8299 = vmatpush1.bf16.msk.msra.mxu0 %vm10197_vm13, %v8297_v57 }
0x1834   :  { %v3899_v2 = vpop.permute.xlu1 %3898 }
0x1835   :  { %v3910_v3 = vsel %vm1550_vm14, %v3899_v2, %v3904_v48  ;;  %v4426_v48 = vld [vmem:[#allocation14 + $0x10] sm:$0xff]  ;;  %v4427_v2 = vld [vmem:[#allocation14 + $0x18] sm:$0xff] }
0x1836   :  { %v11028_v40 = vpack.c.bf16 %v4427_v2, %v4426_v48  ;;  %v4157_v48 = vld [vmem:[%s12064_s6 + $0xb8] sm:$0xff] }
0x1897   :  { %v3716_v12 = vpop.f32.mrb[52].mxu1 }
0x1898   :  { %v3795_v60 = vmul.f32 %v3716_v12, %v3716_v12  ;;  %v7457_v53 = vpop.f32.mrb[53].mxu1  ;;  %v3794_v46 = vsub.f32 %v3638_v37, %v3716_v12  ;;  %v4025_v37 = vld [vmem:[#allocation8 + $0x48] sm:$0xff]  ;;  %v10993_v12 = vpack.c.bf16 %v4031_v20, %v4029_v59  ;;  %v4140_v20 = vld [vmem:[%s12064_s6 + $0x30] sm:$0xff] }
0x1899   :  { %v3790_v6 = vpop.f32.mrb[34].mxu0  ;;  %v10987_v51 = vpack.c.bf16 %v4027_v15, %v4025_v37  ;;  %v4030_v53 = vld [vmem:[#allocation8 + $0x70] sm:$0xff]  ;;  %v4141_v15 = vld [vmem:[%s12064_s6 + $0x38] sm:$0xff] }
0x189a   :  { %v3796_v28 = vsub.f32 %v3790_v6, %v3795_v60  ;;  %v7476_v5 = vpop.f32.mrb[35].mxu0  ;;  %v4028_v60 = vld [vmem:[#allocation8 + $0x60] sm:$0xff]  ;;  %v4139_v37 = vld [vmem:[%s12064_s6 + $0x28] sm:$0xff]  ;;  %v4138_v59 = vld [vmem:[%s12064_s6 + $0x20] sm:$0xff] }
0x189b   :  { %v10996_v6 = vpack.c.bf16 %v4030_v53, %v4028_v60  ;;  %v11062_v33 = vpack.c.bf16 %v4141_v15, %v4139_v37  ;;  %v4143_v60 = vld [vmem:[%s12064_s6 + $0x48] sm:$0xff]  ;;  %v4145_v53 = vld [vmem:[%s12064_s6 + $0x58] sm:$0xff]  ;;  %v4160_v37 = vld [vmem:[%s12064_s6 + $0xd0] sm:$0xff] }
0x189c   :  { %v3797_v7 = vadd.f32 1e-05, %v3796_v28  ;;  %v4346_v28 = vld [vmem:[#allocation12] sm:$0x7]  ;;  %v4163_v15 = vld [vmem:[%s12064_s6 + $0xe8] sm:$0xff] }
0x189e   :  { %8958 = vrsqrt.f32 %v3797_v7 }
0x18a8   :  { %v8959_v18 = vpop.eup %8958 }
0x18a9   :  { %v3799_v35 = vmul.f32 %v8959_v18, %v3794_v46  ;;  %v12146_v18 = vld [vmem:[#allocation29_spill] sm:$0xff] }
0x18ab   :  { %v3800_v62 = vmul.f32 %v10702_v54, %v3799_v35  ;;  %v4019_v54 = vld [vmem:[#allocation8 + $0x18] sm:$0xff]  ;;  %v342_v35 = vadd.f32 %v12146_v18, %v9613_v47  ;;  %v4149_v18 = vld [vmem:[%s12064_s6 + $0x78] sm:$0xff] }
0x18ac   :  { %v10970_v34 = vpack.c.bf16 %v4019_v54, %v4017_v0 }
0x18ad   :  { %v3801_v23 = vadd.f32 %v10705_v30, %v3800_v62 }
0x18ae   :  { %8301 = vmatprep.subr.bf16.mxu0 %v10970_v34 }
0x18af   :  { %vm3802_vm2 = vcmp.ge.f32.partialorder %v3801_v23, 0.0  ;;  %v3803_v26 = vmul.f32 0.01, %v3801_v23 }
0x18b1   :  { %v3804_v14 = vsel %vm3802_vm2, %v3801_v23, %v3803_v26 }
0x18b2   :  { %6924 = vmatmul.mubr.msk.f32.vlgmr.msra.gmra.mrb[54].mxu1 %vm609_vm7, %v3804_v14 }
0x18b3   :  { %4230 = vmatprep.mubr.f32.mxu1 %v12114_v61 }
0x1985   :  { %v3890_v30 = vpop.f32.mrb[54].mxu1 }
0x1986   :  { %v3891_v39 = vadd.f32 %v3890_v30, %v10220_v29  ;;  %v3892_v16 = vpop.f32.mrb[55].mxu1 }
0x1987   :  { %v3893_v50 = vadd.f32 %v3892_v16, %v10223_v38  ;;  %v4424_v16 = vld [vmem:[#allocation14] sm:$0xff] }
0x1988   :  { %8960 = vtanh.f32 %v3891_v39 }
0x1989   :  { %8962 = vtanh.f32 %v3893_v50  ;;  %v4425_v50 = vld [vmem:[#allocation14 + $0x8] sm:$0xff] }
0x198a   :  { %v11025_v27 = vpack.c.bf16 %v4425_v50, %v4424_v16  ;;  %v4152_v16 = vld [vmem:[%s12064_s6 + $0x90] sm:$0xff]  ;;  %v4155_v50 = vld [vmem:[%s12064_s6 + $0xa8] sm:$0xff] }
0x1992   :  { %v8961_v63 = vpop.eup %8960 }
0x1993   :  { %v8963_v22 = vpop.eup %8962  ;;  %v3911_v42 = vmul.f32 %v8961_v63, %v3910_v3  ;;  %v4429_v63 = vld [vmem:[#allocation14 + $0x28] sm:$0xff]  ;;  %v4135_v3 = vld [vmem:[%s12064_s6 + $0x8] sm:$0xff] }
0x1994   :  { %v3912_v55 = vmul.f32 %v8963_v22, %v3907_v9  ;;  %v11032_v58 = vpack.c.bf16 %v4429_v63, %v4428_v49  ;;  %v4431_v22 = vld [vmem:[#allocation14 + $0x38] sm:$0xff]  ;;  %v11135_v49 = vpack.c.bf16 %v4157_v48, %v4155_v50  ;;  %v4154_v63 = vld [vmem:[%s12064_s6 + $0xa0] sm:$0xff] }
0x1995   :  { %v11037_v9 = vpack.c.bf16 %v4431_v22, %v4430_v17  ;;  %v4156_v17 = vld [vmem:[%s12064_s6 + $0xb0] sm:$0xff]  ;;  %v4159_v22 = vld [vmem:[%s12064_s6 + $0xc8] sm:$0xff] }
0x1996   :  { %6926 = vmatprep.mubr.msk.f32.mxu0 %vm1577_vm15, %v3912_v55  ;;  %v4137_v55 = vld [vmem:[%s12064_s6 + $0x18] sm:$0xff] }
0x1997   :  { %4004 = vmatmul.mubr.f32.vlgmr.msra.gmra.mrb[36].mxu0 %v3911_v42  ;;  %v4134_v42 = vld [vmem:[%s12064_s6] sm:$0xff]  ;;  %v11049_v1 = vpack.c.bf16 %v4137_v55, %v4135_v3  ;;  %v4161_v3 = vld [vmem:[%s12064_s6 + $0xd8] sm:$0xff]  ;;  %v11150_v55 = vpack.c.bf16 %v4156_v17, %v4154_v63 }
0x1998   :  { %8303 = vmatpush1.bf16.msra.mxu0 %v10977_v19  ;;  %4098 = vmatprep.mubr.f32.mxu0 %v12114_v61  ;;  %v11060_v56 = vpack.c.bf16 %v4136_v10, %v4134_v42  ;;  %v11153_v42 = vpack.c.bf16 %v4161_v3, %v4159_v22  ;;  %v4158_v10 = vld [vmem:[%s12064_s6 + $0xc0] sm:$0xff] }
0x1999   :  { %8305 = vmatprep.subr.bf16.mxu0 %v10979_v24  ;;  %8317 = vmatprep.subr.bf16.mxu1 %v11049_v1 }
0x199a   :  { %8319 = vmatpush1.bf16.msra.mxu1 %v11060_v56 }
0x199b   :  { %8321 = vmatprep.subr.bf16.mxu1 %v11062_v33 }
0x199c   :  { %8307 = vmatpush1.bf16.msra.mxu0 %v10983_v25 }
0x199d   :  { %8309 = vmatprep.subr.bf16.mxu0 %v10987_v51 }
0x19a0   :  { %8311 = vmatpush1.bf16.msra.mxu0 %v10990_v32 }
0x19a1   :  { %8313 = vmatprep.subr.bf16.mxu0 %v10993_v12 }
0x19a4   :  { %8315 = vmatpush1.bf16.msra.mxu0 %v10996_v6 }
0x19a5   :  { %7496 = vmatprep.subr.mxu0 %v12114_v61 }
0x19a7   :  { %6928 = vmatmul.mubr.msk.f32.vlgmr.msra.gmra.mrb[38].mxu0 %vm609_vm7, %v10861_v43  ;;  %v12145_v43 = vld [vmem:[#allocation28_spill] sm:$0xff] }
0x19a8   :  { %7498 = vmatprep.mubr.msk.f32.mxu0 %vm9318_vm8, %v12114_v61  ;;  %7497 = vmatpush3.msk.msra.mxu0 %vm1207_vm9, %v4346_v28  ;;  %v340_v46 = vadd.f32 %v12145_v43, %v9607_v41  ;;  %v11078_v28 = vpack.c.bf16 %v4140_v20, %v4138_v59  ;;  %v4144_v43 = vld [vmem:[%s12064_s6 + $0x50] sm:$0xff]  ;;  %v4165_v59 = vld [vmem:[%s12064_s6 + $0xf8] sm:$0xff]  ;;  %v11168_v20 = vpack.c.bf16 %v4160_v37, %v4158_v10 }
0x19a9   :  { %8360 = vmatprep.subr.bf16.mxu0 %v12122_v36 }
0x19aa   :  { %8323 = vmatpush1.bf16.msra.mxu1 %v11078_v28 }
0x1a6a   :  { %v4005_v5 = vpop.f32.mrb[36].mxu0 }
0x1a6b   :  { %6927 = vst.msk [vmem:[%s12076_s18 + $0x18] sm:$0xff] %vm1203_vm10, %v4005_v5  ;;  %v4007_v7 = vpop.f32.mrb[37].mxu0  ;;  %7499 = vmatmul.mubr.msk.f32.vlgmr.msra.gmra.mrb[40].mxu0 %vm1203_vm10, %v4005_v5  ;;  %v11081_v5 = vpack.c.bf16 %v4145_v53, %v4143_v60  ;;  %v11171_v60 = vpack.c.bf16 %v4165_v59, %v4163_v15  ;;  %v4162_v53 = vld [vmem:[%s12064_s6 + $0xe0] sm:$0xff] }
0x1a6c   :  { %7517 = vmatprep.mubr.msk.f32.mxu0 %vm9318_vm8, %v12114_v61  ;;  %8362 = vmatpush3.bf16.msra.mxu0 %v11025_v27  ;;  %v4142_v7 = vld [vmem:[%s12064_s6 + $0x40] sm:$0xff] }
0x1a6d   :  { %8363 = vmatprep.subr.bf16.mxu0 %v12122_v36  ;;  %8325 = vmatprep.subr.bf16.mxu1 %v11081_v5 }
0x1a70   :  { %8365 = vmatpush3.bf16.msra.mxu0 %v11028_v40 }
0x1a71   :  { %8366 = vmatprep.subr.bf16.mxu0 %v12122_v36 }
0x1a74   :  { %8368 = vmatpush3.bf16.msra.mxu0 %v11032_v58 }
0x1a75   :  { %8369 = vmatprep.subr.bf16.mxu0 %v12122_v36 }
0x1a78   :  { %8371 = vmatpush3.bf16.msra.mxu0 %v11037_v9 }
0x1a7a   :  { %v4100_v62 = vpop.f32.mrb[38].mxu0 }
0x1a7b   :  { %v4105_v23 = vadd.f32 %v4100_v62, %v340_v46  ;;  %v4102_v26 = vpop.f32.mrb[39].mxu0  ;;  %v4147_v46 = vld [vmem:[%s12064_s6 + $0x68] sm:$0xff] }
0x1a7c   :  { %v11018_v14 = vadd.f32 %v4102_v26, %v342_v35  ;;  %v11096_v35 = vpack.c.bf16 %v4144_v43, %v4142_v7  ;;  %v11099_v62 = vpack.c.bf16 %v4149_v18, %v4147_v46  ;;  %v4148_v26 = vld [vmem:[%s12064_s6 + $0x70] sm:$0xff] }
0x1a7d   :  { %v6929_v21 = vmul.f32 -1.442695, %v4105_v23  ;;  %v4146_v23 = vld [vmem:[%s12064_s6 + $0x60] sm:$0xff]  ;;  %v4164_v7 = vld [vmem:[%s12064_s6 + $0xf0] sm:$0xff] }
0x1a7e   :  { %8327 = vmatpush1.bf16.msra.mxu1 %v11096_v35  ;;  %v11180_v43 = vpack.c.bf16 %v4164_v7, %v4162_v53  ;;  %v6930_v46 = vmul.f32 -1.442695, %v11018_v14 }
0x1a7f   :  { %8964 = vpow2.f32 %v6929_v21  ;;  %v4151_v21 = vld [vmem:[%s12064_s6 + $0x88] sm:$0xff]  ;;  %8329 = vmatprep.subr.bf16.mxu1 %v11099_v62 }
0x1a80   :  { %8966 = vtanh.f32 %v11018_v14  ;;  %v3554_v14 = vadd.f32 %v10927_v44, %v10922_v4 }
0x1a89   :  { %v8965_v57 = vpop.eup %8964 }
0x1a8a   :  { %v4110_v0 = vadd.f32 1.0, %v8965_v57  ;;  %v8967_v54 = vpop.eup %8966  ;;  %v4153_v57 = vld [vmem:[%s12064_s6 + $0x98] sm:$0xff] }
0x1a8c   :  { %8968 = vrcp.f32 %v4110_v0  ;;  %v11114_v0 = vpack.c.bf16 %v4148_v26, %v4146_v23 }
0x1a8d   :  { %8970 = vpow2.f32 %v6930_v46 }
0x1a8e   :  { %8331 = vmatpush1.bf16.msra.mxu1 %v11114_v0 }
0x1a96   :  { %v11021_v30 = vpop.eup %8968 }
0x1a97   :  { %v4121_v39 = vmul.f32 %v11021_v30, %v8967_v54  ;;  %v11117_v54 = vpack.c.bf16 %v4153_v57, %v4151_v21  ;;  %v8971_v18 = vpop.eup %8970  ;;  %v4120_v26 = vmul.f32 %v11021_v30, %v10830_v52 }
0x1a98   :  { %v4117_v23 = vadd.f32 1.0, %v8971_v18  ;;  %v4259_v18 = vld [vmem:[#allocation11] sm:$0xff] }
0x1a99   :  { %4123 = vrot.lane.b32.xlu0 %v4121_v39, %s9315_s4  ;;  %v4150_v39 = vld [vmem:[%s12064_s6 + $0x80] sm:$0xff]  ;;  %8333 = vmatprep.subr.bf16.mxu1 %v11117_v54 }
0x1a9a   :  { %v11132_v2 = vpack.c.bf16 %v4152_v16, %v4150_v39  ;;  %8972 = vrcp.f32 %v4117_v23  ;;  %v4260_v23 = vld [vmem:[#allocation11 + $0x8] sm:$0xff] }
0x1a9c   :  { %8335 = vmatpush1.bf16.msra.mxu1 %v11132_v2 }
0x1a9d   :  { %8337 = vmatprep.subr.bf16.mxu1 %v11135_v49 }
0x1aa0   :  { %8339 = vmatpush1.bf16.msra.mxu1 %v11150_v55 }
0x1aa1   :  { %8341 = vmatprep.subr.bf16.mxu1 %v11153_v42 }
0x1aa4   :  { %8343 = vmatpush1.bf16.msra.mxu1 %v11168_v20  ;;  %v8973_v39 = vpop.eup %8972 }
0x1aa5   :  { %8345 = vmatprep.subr.bf16.mxu1 %v11171_v60 }
0x1aa8   :  { %8347 = vmatpush1.bf16.msra.mxu1 %v11180_v43 }
0x1aa9   :  { %8348 = vmatprep.subr.bf16.mxu1 %v12122_v36 }
0x1b0b   :  { %v4124_v21 = vpop.permute.xlu0 %4123 }
0x1b0c   :  { %v11188_v57 = vadd.f32 %v4124_v21, %v4120_v26  ;;  %v4261_v26 = vld [vmem:[#allocation11 + $0x10] sm:$0xff]  ;;  %v11214_v21 = vpack.c.bf16 %v4260_v23, %v4259_v18 }
0x1b0e   :  { %8974 = vtanh.f32 %v11188_v57 }
0x1b18   :  { %v8975_v16 = vpop.eup %8974 }
0x1b19   :  { %v4128_v50 = vmul.f32 %v8975_v16, %v8973_v39  ;;  %v4262_v39 = vld [vmem:[#allocation11 + $0x18] sm:$0xff] }
0x1b1a   :  { %v11217_v16 = vpack.c.bf16 %v4262_v39, %v4261_v26 }
0x1b1b   :  { %4130 = vrot.lane.b32.xlu1 %v4128_v50, %s9315_s4  ;;  %v4263_v50 = vld [vmem:[#allocation11 + $0x20] sm:$0xff] }
0x1b3e   :  { %v11194_v48 = vpop.f32.mrb[40].mxu0 }
0x1b3f   :  { %v11197_v63 = vadd.f32 %v11194_v48, %v3554_v14  ;;  %v7500_v52 = vpop.f32.mrb[41].mxu0  ;;  %v4264_v14 = vld [vmem:[#allocation11 + $0x28] sm:$0xff] }
0x1b40   :  { %v11221_v52 = vpack.c.bf16 %v4264_v14, %v4263_v50  ;;  %v4590_v50 = vld [vmem:[%s12072_s14] sm:$0xff]  ;;  %v4592_v14 = vld [vmem:[%s12072_s14 + $0x10] sm:$0xff] }
0x1b41   :  { %7518 = vmatmul.mubr.msk.f32.vlgmr.msra.gmra.mrb[42].mxu0 %vm609_vm7, %v11197_v63 }
0x1b42   :  { %4673 = vmatprep.mubr.f32.mxu0 %v12114_v61 }
0x1b8d   :  { %v11202_v30 = vpop.permute.xlu1 %4130 }
0x1b8e   :  { %v4133_v17 = vsel %vm609_vm7, %v11202_v30, %v10901_v8 }
0x1b8f   :  { %4231 = vmatmul.mubr.f32.vlgmr.msra.gmra.mrb[56].mxu1 %v4133_v17  ;;  %v4265_v17 = vld [vmem:[#allocation11 + $0x30] sm:$0xff] }
0x1b90   :  { %7493 = vmatprep.mubr.msk.f32.mxu1 %vm9318_vm8, %v12114_v61  ;;  %8350 = vmatpush3.bf16.msra.mxu1 %v11214_v21 }
0x1b91   :  { %8351 = vmatprep.subr.bf16.mxu1 %v12122_v36 }
0x1b94   :  { %8353 = vmatpush3.bf16.msra.mxu1 %v11217_v16 }
0x1b95   :  { %8354 = vmatprep.subr.bf16.mxu1 %v12122_v36 }
0x1b98   :  { %8356 = vmatpush3.bf16.msra.mxu1 %v11221_v52 }
0x1b99   :  { %8357 = vmatprep.subr.bf16.mxu1 %v12122_v36 }
0x1c14   :  { %v11209_v4 = vpop.f32.mrb[42].mxu0 }
0x1c15   :  { %v7519_v44 = vpop.f32.mrb[43].mxu0 }
0x1c16   :  { %v4266_v44 = vld [vmem:[#allocation11 + $0x38] sm:$0xff] }
0x1c62   :  { %v4232_v22 = vpop.f32.mrb[56].mxu1 }
0x1c63   :  { %v4233_v3 = vadd.f32 %v4232_v22, %v9865_v11  ;;  %v4234_v10 = vpop.f32.mrb[57].mxu1  ;;  %v11225_v22 = vpack.c.bf16 %v4266_v44, %v4265_v17  ;;  %v11266_v17 = vpack.c.bf16 %v4592_v14, %v4590_v50  ;;  %v4595_v44 = vld [vmem:[%s12072_s14 + $0x28] sm:$0xff]  ;;  %v4605_v14 = vld [vmem:[%s12072_s14 + $0x78] sm:$0xff] }
0x1c64   :  { %v4235_v15 = vadd.f32 %v4234_v10, %v9870_v45  ;;  %v4603_v50 = vld [vmem:[%s12072_s14 + $0x68] sm:$0xff] }
0x1c65   :  { %v6931_v37 = vmul.f32 -1.442695, %v4233_v3  ;;  %8359 = vmatpush3.bf16.msra.mxu1 %v11225_v22 }
0x1c66   :  { %8372 = vmatprep.subr.bf16.mxu1 %v12122_v36  ;;  %v6932_v3 = vmul.f32 -1.442695, %v4235_v15 }
0x1c67   :  { %8976 = vpow2.f32 %v6931_v37 }
0x1c68   :  { %8978 = vtanh.f32 %v4235_v15  ;;  %v4591_v15 = vld [vmem:[%s12072_s14 + $0x8] sm:$0xff] }
0x1c71   :  { %v8977_v59 = vpop.eup %8976 }
0x1c72   :  { %v4240_v53 = vadd.f32 1.0, %v8977_v59  ;;  %v8979_v8 = vpop.eup %8978 }
0x1c74   :  { %8980 = vrcp.f32 %v4240_v53 }
0x1c75   :  { %8982 = vpow2.f32 %v6932_v3  ;;  %v4597_v3 = vld [vmem:[%s12072_s14 + $0x38] sm:$0xff] }
0x1c7e   :  { %v8981_v7 = vpop.eup %8980 }
0x1c7f   :  { %v4251_v46 = vmul.f32 %v8981_v7, %v8979_v8  ;;  %v8983_v10 = vpop.eup %8982  ;;  %v4250_v59 = vmul.f32 %v8981_v7, %v10898_v31  ;;  %v4505_v31 = vmul.f32 %v11197_v63, %v11197_v63  ;;  %v4593_v7 = vld [vmem:[%s12072_s14 + $0x18] sm:$0xff] }
0x1c80   :  { %v4247_v37 = vadd.f32 1.0, %v8983_v10  ;;  %v11258_v39 = vpack.c.bf16 %v4593_v7, %v4591_v15  ;;  %v11276_v10 = vpack.c.bf16 %v4597_v3, %v4595_v44  ;;  %v4600_v15 = vld [vmem:[%s12072_s14 + $0x50] sm:$0xff]  ;;  %v4602_v44 = vld [vmem:[%s12072_s14 + $0x60] sm:$0xff]  ;;  %v11315_v3 = vpack.c.bf16 %v4605_v14, %v4603_v50 }
0x1c81   :  { %4253 = vrot.lane.b32.xlu0 %v4251_v46, %s9315_s4 }
0x1c82   :  { %8984 = vrcp.f32 %v4247_v37  ;;  %8385 = vmatprep.subr.bf16.mxu0 %v11258_v39  ;;  %12147 = vst [vmem:[#allocation26_spill] sm:$0xff] %v11276_v10  ;;  %v4594_v37 = vld [vmem:[%s12072_s14 + $0x20] sm:$0xff]  ;;  %12151 = vst [vmem:[#allocation36_spill] sm:$0xff] %v11315_v3 }
0x1c83   :  { %8387 = vmatpush1.bf16.msra.mxu0 %v11266_v17 }
0x1c84   :  { %8389 = vmatprep.subr.bf16.mxu0 %v11276_v10 }
0x1c8c   :  { %v8985_v46 = vpop.eup %8984 }
0x1cf3   :  { %v4254_v53 = vpop.permute.xlu0 %4253 }
0x1cf4   :  { %v11231_v8 = vadd.f32 %v4254_v53, %v4250_v59  ;;  %v4596_v59 = vld [vmem:[%s12072_s14 + $0x30] sm:$0xff] }
0x1cf5   :  { %v11284_v53 = vpack.c.bf16 %v4596_v59, %v4594_v37  ;;  %v4604_v37 = vld [vmem:[%s12072_s14 + $0x70] sm:$0xff] }
0x1cf6   :  { %8986 = vtanh.f32 %v11231_v8  ;;  %v11320_v59 = vpack.c.bf16 %v4604_v37, %v4602_v44  ;;  %v4579_v44 = vsub.f32 %v11197_v63, %v11209_v4  ;;  %v4702_v63 = vld [vmem:[%s12075_s17 + $0x20] sm:$0xff] }
0x1cf7   :  { %12148 = vst [vmem:[#allocation27_spill] sm:$0xff] %v11284_v53  ;;  %8391 = vmatpush1.bf16.msra.mxu0 %v11284_v53 }
0x1cf8   :  { %12152 = vst [vmem:[#allocation37_spill] sm:$0xff] %v11320_v59 }
0x1d00   :  { %v8987_v18 = vpop.eup %8986 }
0x1d01   :  { %v11234_v23 = vmul.f32 %v8987_v18, %v8985_v46  ;;  %v4599_v46 = vld [vmem:[%s12072_s14 + $0x48] sm:$0xff]  ;;  %v4601_v18 = vld [vmem:[%s12072_s14 + $0x58] sm:$0xff] }
0x1d03   :  { %4268 = vrot.lane.b32.xlu1 %v11234_v23, %s9315_s4 }
0x1d75   :  { %v4269_v26 = vpop.permute.xlu1 %4268 }
0x1d76   :  { %7494 = vmatmul.mubr.msk.f32.vlgmr.msra.gmra.mrb[58].mxu1 %vm609_vm7, %v4269_v26  ;;  %v11294_v26 = vpack.c.bf16 %v4601_v18, %v4599_v46 }
0x1d77   :  { %8374 = vmatpush3.bf16.msra.mxu1 %v11025_v27  ;;  %7536 = vmatprep.mubr.msk.f32.mxu1 %vm9318_vm8, %v12114_v61 }
0x1d78   :  { %8375 = vmatprep.subr.bf16.mxu1 %v12122_v36  ;;  %12149 = vst [vmem:[#allocation34_spill] sm:$0xff] %v11294_v26  ;;  %8393 = vmatprep.subr.bf16.mxu0 %v11294_v26  ;;  %v11331_v26 = vld [vmem:[#allocation15] ss:$0 sm:$0xff] }
0x1d7b   :  { %8377 = vmatpush3.bf16.msra.mxu1 %v11028_v40 }
0x1d7c   :  { %8378 = vmatprep.subr.bf16.mxu1 %v12122_v36 }
0x1d7f   :  { %8380 = vmatpush3.bf16.msra.mxu1 %v11032_v58 }
0x1d80   :  { %8381 = vmatprep.subr.bf16.mxu1 %v12122_v36 }
0x1d83   :  { %8383 = vmatpush3.bf16.msra.mxu1 %v11037_v9 }
0x1d84   :  { %8400 = vmatprep.subr.bf16.mxu1 %v12122_v36 }
0x1d86   :  { %7537 = vmatmul.mubr.msk.f32.vlgmr.msra.gmra.mrb[60].mxu1 %vm609_vm7, %v4505_v31  ;;  %v4598_v31 = vld [vmem:[%s12072_s14 + $0x40] sm:$0xff] }
0x1d87   :  { %v11302_v7 = vpack.c.bf16 %v4600_v15, %v4598_v31  ;;  %v4580_v31 = vmul.f32 %v11209_v4, %v11209_v4 }
0x1d89   :  { %12150 = vst [vmem:[#allocation35_spill] sm:$0xff] %v11302_v7  ;;  %8395 = vmatpush1.bf16.msra.mxu0 %v11302_v7 }
0x1d8a   :  { %8397 = vmatprep.subr.bf16.mxu0 %v11315_v3 }
0x1d8d   :  { %8399 = vmatpush1.bf16.msra.mxu0 %v11320_v59  ;;  %v11334_v59 = vld [vmem:[#allocation17] ss:$0 sm:$0xff] }
0x1d8e   :  { %8432 = vmatprep.subr.bf16.mxu0 %v10970_v34 }
0x1e49   :  { %v11325_v46 = vpop.f32.mrb[58].mxu1 }
0x1e4a   :  { %v7495_v18 = vpop.f32.mrb[59].mxu1 }
0x1e59   :  { %v4575_v15 = vpop.f32.mrb[60].mxu1 }
0x1e5a   :  { %v4581_v50 = vsub.f32 %v4575_v15, %v4580_v31  ;;  %v7538_v14 = vpop.f32.mrb[61].mxu1  ;;  %v4708_v15 = vld [vmem:[%s12075_s17 + $0x50] sm:$0xff] }
0x1e5c   :  { %v4582_v7 = vadd.f32 1e-05, %v4581_v50  ;;  %v4709_v50 = vld [vmem:[%s12075_s17 + $0x58] sm:$0xff] }
0x1e5d   :  { %v11433_v14 = vpack.c.bf16 %v4709_v50, %v4708_v15 }
0x1e5e   :  { %8988 = vrsqrt.f32 %v4582_v7  ;;  %v4706_v7 = vld [vmem:[%s12075_s17 + $0x40] sm:$0xff] }
0x1e68   :  { %v8989_v37 = vpop.eup %8988 }
0x1e69   :  { %v4584_v3 = vmul.f32 %v8989_v37, %v4579_v44  ;;  %v4710_v44 = vld [vmem:[%s12075_s17 + $0x60] sm:$0xff]  ;;  %v4711_v37 = vld [vmem:[%s12075_s17 + $0x68] sm:$0xff] }
0x1e6b   :  { %v4585_v34 = vmul.f32 %v11331_v26, %v4584_v3  ;;  %v4707_v3 = vld [vmem:[%s12075_s17 + $0x48] sm:$0xff] }
0x1e6c   :  { %v11423_v31 = vpack.c.bf16 %v4707_v3, %v4706_v7 }
0x1e6d   :  { %v4586_v18 = vadd.f32 %v11334_v59, %v4585_v34  ;;  %v11443_v34 = vpack.c.bf16 %v4711_v37, %v4710_v44 }
0x1e6f   :  { %vm4587_vm3 = vcmp.ge.f32.partialorder %v4586_v18, 0.0  ;;  %v4588_v53 = vmul.f32 0.01, %v4586_v18 }
0x1e71   :  { %v4589_v10 = vsel %vm4587_vm3, %v4586_v18, %v4588_v53  ;;  %v4712_v18 = vld [vmem:[%s12075_s17 + $0x70] sm:$0xff] }
0x1e72   :  { %6938 = vmatmul.mubr.msk.f32.vlgmr.msra.gmra.mrb[44].mxu0 %vm609_vm7, %v4589_v10  ;;  %v4705_v10 = vld [vmem:[%s12075_s17 + $0x38] sm:$0xff] }
0x1e73   :  { %8434 = vmatpush1.bf16.msra.mxu0 %v10977_v19  ;;  %4883 = vmatprep.mubr.f32.mxu0 %v12114_v61 }
0x1e74   :  { %8436 = vmatprep.subr.bf16.mxu0 %v10979_v24 }
0x1e77   :  { %8438 = vmatpush1.bf16.msra.mxu0 %v10983_v25  ;;  %v12153_v25 = vld [vmem:[#allocation30_spill] sm:$0xff] }
0x1e78   :  { %8440 = vmatprep.subr.bf16.mxu0 %v10987_v51  ;;  %v346_v51 = vadd.f32 %v12153_v25, %v9607_v41  ;;  %v4713_v25 = vld [vmem:[%s12075_s17 + $0x78] sm:$0xff] }
0x1e7b   :  { %8442 = vmatpush1.bf16.msra.mxu0 %v10990_v32  ;;  %v12154_v32 = vld [vmem:[#allocation31_spill] sm:$0xff] }
0x1e7c   :  { %8444 = vmatprep.subr.bf16.mxu0 %v10993_v12  ;;  %v348_v12 = vadd.f32 %v12154_v32, %v9613_v47 }
0x1e7f   :  { %8446 = vmatpush1.bf16.msra.mxu0 %v10996_v6 }
0x1e80   :  { %8448 = vmatprep.subr.bf16.mxu0 %v11049_v1 }
0x1e82   :  { %6942 = vmatmul.mubr.msk.f32.vlgmr.msra.gmra.mrb[46].mxu0 %vm609_vm7, %v11202_v30  ;;  %v4703_v30 = vld [vmem:[%s12075_s17 + $0x28] sm:$0xff] }
0x1e83   :  { %8450 = vmatpush1.bf16.msra.mxu0 %v11060_v56  ;;  %5015 = vmatprep.mubr.f32.mxu0 %v12114_v61  ;;  %v11403_v4 = vpack.c.bf16 %v4703_v30, %v4702_v63 }
0x1e84   :  { %8452 = vmatprep.subr.bf16.mxu0 %v11062_v33 }
0x1e87   :  { %8454 = vmatpush1.bf16.msra.mxu0 %v11078_v28 }
0x1e88   :  { %8456 = vmatprep.subr.bf16.mxu0 %v11081_v5 }
0x1e8b   :  { %8458 = vmatpush1.bf16.msra.mxu0 %v11096_v35 }
0x1e8c   :  { %8460 = vmatprep.subr.bf16.mxu0 %v11099_v62 }
0x1e8f   :  { %8462 = vmatpush1.bf16.msra.mxu0 %v11114_v0 }
0x1e90   :  { %8464 = vmatprep.subr.bf16.mxu0 %v11117_v54 }
0x1e93   :  { %8466 = vmatpush1.bf16.msra.mxu0 %v11132_v2  ;;  %v4344_v2 = vld [vmem:[#allocation3 + $0x40] sm:$0xff] }
0x1e94   :  { %8468 = vmatprep.subr.bf16.mxu0 %v11135_v49  ;;  %v4698_v49 = vld [vmem:[%s12075_s17] sm:$0xff] }
0x1e97   :  { %8470 = vmatpush1.bf16.msra.mxu0 %v11150_v55  ;;  %v4699_v55 = vld [vmem:[%s12075_s17 + $0x8] sm:$0xff] }
0x1e98   :  { %8472 = vmatprep.subr.bf16.mxu0 %v11153_v42  ;;  %v4700_v42 = vld [vmem:[%s12075_s17 + $0x10] sm:$0xff] }
0x1e9b   :  { %8474 = vmatpush1.bf16.msra.mxu0 %v11168_v20  ;;  %v11385_v20 = vpack.c.bf16 %v4699_v55, %v4698_v49  ;;  %v4345_v55 = vld [vmem:[#allocation3 + $0x48] sm:$0xff] }
0x1e9c   :  { %8476 = vmatprep.subr.bf16.mxu0 %v11171_v60  ;;  %v4701_v60 = vld [vmem:[%s12075_s17 + $0x18] sm:$0xff] }
0x1e9d   :  { %8402 = vmatpush1.bf16.msra.mxu1 %v11385_v20 }
0x1e9e   :  { %8403 = vmatprep.subr.bf16.mxu1 %v12122_v36 }
0x1e9f   :  { %8478 = vmatpush1.bf16.msra.mxu0 %v11180_v43  ;;  %v11393_v43 = vpack.c.bf16 %v4701_v60, %v4700_v42 }
0x1ea0   :  { %8503 = vmatprep.subr.bf16.mxu0 %v12122_v36 }
0x1ea1   :  { %8405 = vmatpush1.bf16.msra.mxu1 %v11393_v43 }
0x1ea2   :  { %8406 = vmatprep.subr.bf16.mxu1 %v12122_v36 }
0x1ea5   :  { %8408 = vmatpush1.bf16.msra.mxu1 %v11403_v4 }
0x1ea6   :  { %8409 = vmatprep.subr.bf16.mxu1 %v12122_v36 }
0x1f45   :  { %v11366_v19 = vpop.f32.mrb[44].mxu0 }
0x1f46   :  { %v11368_v24 = vpop.f32.mrb[45].mxu0  ;;  %v4676_v60 = vadd.f32 %v11366_v19, %v10220_v29 }
0x1f47   :  { %v4678_v42 = vadd.f32 %v11368_v24, %v10223_v38 }
0x1f55   :  { %v4885_v6 = vpop.f32.mrb[46].mxu0 }
0x1f56   :  { %v4890_v1 = vadd.f32 %v4885_v6, %v346_v51  ;;  %v4887_v56 = vpop.f32.mrb[47].mxu0  ;;  %v11453_v51 = vpack.c.bf16 %v4713_v25, %v4712_v18 }
0x1f57   :  { %v4891_v33 = vadd.f32 %v4887_v56, %v348_v12 }
0x1f58   :  { %v6943_v28 = vmul.f32 -1.442695, %v4890_v1 }
0x1f59   :  { %v6944_v32 = vmul.f32 -1.442695, %v4891_v33 }
0x1f5a   :  { %8990 = vpow2.f32 %v6943_v28 }
0x1f5b   :  { %8992 = vtanh.f32 %v4891_v33  ;;  %v4717_v33 = vld [vmem:[%s12075_s17 + $0x98] sm:$0x1] }
0x1f64   :  { %v8991_v5 = vpop.eup %8990 }
0x1f65   :  { %v4895_v35 = vadd.f32 1.0, %v8991_v5  ;;  %v8993_v62 = vpop.eup %8992  ;;  %v4714_v5 = vld [vmem:[%s12075_s17 + $0x80] sm:$0xff] }
0x1f67   :  { %8994 = vrcp.f32 %v4895_v35  ;;  %v4715_v35 = vld [vmem:[%s12075_s17 + $0x88] sm:$0xff] }
0x1f68   :  { %8996 = vpow2.f32 %v6944_v32 }
0x1f71   :  { %v8995_v0 = vpop.eup %8994 }
0x1f72   :  { %v4906_v54 = vmul.f32 %v8995_v0, %v8993_v62  ;;  %v8997_v12 = vpop.eup %8996  ;;  %v4905_v1 = vmul.f32 %v8995_v0, %v11188_v57  ;;  %v11467_v62 = vpack.c.bf16 %v4715_v35, %v4714_v5  ;;  %v11475_v57 = vld [vmem:[%s12075_s17 + $0x90] sm:$0xff] }
0x1f73   :  { %v4902_v6 = vadd.f32 1.0, %v8997_v12  ;;  %v8428_v0 = vpack.c.bf16 %v4717_v33, %v11475_v57 }
0x1f74   :  { %4908 = vrot.lane.b32.xlu0 %v4906_v54, %s9315_s4 }
0x1f75   :  { %8998 = vrcp.f32 %v4902_v6 }
0x1f78   :  { %4688 = vrot.lane.b32.xlu0 %v4344_v2, %s9319_s21 }
0x1f7c   :  { %4683 = vrot.lane.b32.xlu0 %v11194_v48, %s9315_s4  ;;  %v4704_v48 = vld [vmem:[%s12075_s17 + $0x30] sm:$0xff] }
0x1f7d   :  { %v11413_v53 = vpack.c.bf16 %v4705_v10, %v4704_v48 }
0x1f7f   :  { %8411 = vmatpush1.bf16.msra.mxu1 %v11413_v53  ;;  %v8999_v54 = vpop.eup %8998 }
0x1f80   :  { %8412 = vmatprep.subr.bf16.mxu1 %v12122_v36 }
0x1f83   :  { %8414 = vmatpush1.bf16.msra.mxu1 %v11423_v31 }
0x1f84   :  { %8415 = vmatprep.subr.bf16.mxu1 %v12122_v36 }
0x1f87   :  { %8417 = vmatpush1.bf16.msra.mxu1 %v11433_v14 }
0x1f88   :  { %8418 = vmatprep.subr.bf16.mxu1 %v12122_v36 }
0x1f8b   :  { %8420 = vmatpush1.bf16.msra.mxu1 %v11443_v34 }
0x1f8c   :  { %8421 = vmatprep.subr.bf16.mxu1 %v12122_v36 }
0x1f8f   :  { %8423 = vmatpush1.bf16.msra.mxu1 %v11453_v51 }
0x1f90   :  { %8424 = vmatprep.subr.bf16.mxu1 %v12122_v36 }
0x1f93   :  { %8426 = vmatpush1.bf16.msra.mxu1 %v11467_v62 }
0x1f94   :  { %8427 = vmatprep.subr.bf16.mxu1 %v12122_v36 }
0x1f97   :  { %8430 = vmatpush1.bf16.msk.msra.mxu1 %vm10197_vm13, %v8428_v0 }
0x1f98   :  { %8479 = vmatprep.subr.bf16.mxu1 %v12122_v36 }
0x1fe6   :  { %v4909_v56 = vpop.permute.xlu0 %4908 }
0x1fe7   :  { %v11459_v28 = vadd.f32 %v4909_v56, %v4905_v1  ;;  %v5129_v56 = vld [vmem:[#allocation3 + $0x50] sm:$0xff] }
0x1fe9   :  { %9000 = vtanh.f32 %v11459_v28 }
0x1fea   :  { %9002 = vtanh.f32 %v4678_v42  ;;  %v4689_v63 = vpop.permute.xlu0 %4688 }
0x1feb   :  { %9004 = vtanh.f32 %v4676_v60  ;;  %v5130_v60 = vld [vmem:[#allocation3 + $0x58] sm:$0xff] }
0x1fee   :  { %v4684_v48 = vpop.permute.xlu0 %4683 }
0x1fef   :  { %v4695_v24 = vsel %vm1550_vm14, %v4684_v48, %v4689_v63 }
0x1ff3   :  { %v9001_v2 = vpop.eup %9000 }
0x1ff4   :  { %v4913_v49 = vmul.f32 %v9001_v2, %v8999_v54  ;;  %v9003_v19 = vpop.eup %9002 }
0x1ff5   :  { %v9005_v15 = vpop.eup %9004 }
0x1ff6   :  { %4915 = vrot.lane.b32.xlu1 %v4913_v49, %s9315_s4  ;;  %v4696_v44 = vmul.f32 %v9005_v15, %v4695_v24  ;;  %v12160_v15 = vld [vmem:[#allocation37_spill] sm:$0xff] }
0x1ffa   :  { %4690 = vrot.lane.b32.xlu1 %v4345_v55, %s9319_s21 }
0x2068   :  { %v11490_v30 = vpop.permute.xlu1 %4915 }
0x2069   :  { %v4918_v10 = vsel %vm609_vm7, %v11490_v30, %v11234_v23 }
0x206a   :  { %5016 = vmatmul.mubr.f32.vlgmr.msra.gmra.mrb[48].mxu0 %v4918_v10  ;;  %v11556_v10 = vld [vmem:[%s12067_s9] ss:$0 sm:$0xff] }
0x206b   :  { %8505 = vmatpush3.bf16.msra.mxu0 %v11025_v27  ;;  %7598 = vmatprep.mubr.msk.f32.mxu0 %vm9318_vm8, %v12114_v61 }
0x206c   :  { %v4691_v7 = vpop.permute.xlu1 %4690  ;;  %8506 = vmatprep.subr.bf16.mxu0 %v12122_v36 }
0x206d   :  { %v4692_v3 = vsel %vm1550_vm14, %v4689_v63, %v4691_v7  ;;  %v5131_v63 = vld [vmem:[#allocation12] sm:$0x7] }
0x206e   :  { %v4697_v50 = vmul.f32 %v9003_v19, %v4692_v3  ;;  %v12158_v3 = vld [vmem:[#allocation35_spill] sm:$0xff] }
0x206f   :  { %8508 = vmatpush3.bf16.msra.mxu0 %v11028_v40 }
0x2070   :  { %6940 = vmatprep.mubr.msk.f32.mxu1 %vm1577_vm15, %v4697_v50  ;;  %8509 = vmatprep.subr.bf16.mxu0 %v12122_v36 }
0x2071   :  { %4789 = vmatmul.mubr.f32.vlgmr.msra.gmra.mrb[62].mxu1 %v4696_v44 }
0x2072   :  { %8481 = vmatpush3.bf16.msra.mxu1 %v11214_v21  ;;  %7555 = vmatprep.mubr.msk.f32.mxu1 %vm9318_vm8, %v12114_v61 }
0x2073   :  { %8482 = vmatprep.subr.bf16.mxu1 %v12122_v36  ;;  %8511 = vmatpush3.bf16.msra.mxu0 %v11032_v58 }
0x2074   :  { %8512 = vmatprep.subr.bf16.mxu0 %v12122_v36 }
0x2076   :  { %8484 = vmatpush3.bf16.msra.mxu1 %v11217_v16 }
0x2077   :  { %8485 = vmatprep.subr.bf16.mxu1 %v12122_v36  ;;  %8514 = vmatpush3.bf16.msra.mxu0 %v11037_v9 }
0x2078   :  { %8531 = vmatprep.subr.bf16.mxu0 %v12122_v36 }
0x207a   :  { %8487 = vmatpush3.bf16.msra.mxu1 %v11221_v52 }
0x207b   :  { %8488 = vmatprep.subr.bf16.mxu1 %v12122_v36 }
0x207e   :  { %8490 = vmatpush3.bf16.msra.mxu1 %v11225_v22 }
0x207f   :  { %7558 = vmatprep.subr.mxu1 %v12114_v61 }
0x213d   :  { %v5017_v21 = vpop.f32.mrb[48].mxu0 }
0x213e   :  { %v5018_v23 = vadd.f32 %v5017_v21, %v9865_v11  ;;  %v5019_v37 = vpop.f32.mrb[49].mxu0 }
0x213f   :  { %v5020_v52 = vadd.f32 %v5019_v37, %v9870_v45 }
0x2140   :  { %v6945_v18 = vmul.f32 -1.442695, %v5018_v23 }
0x2141   :  { %v6946_v5 = vmul.f32 -1.442695, %v5020_v52 }
0x2142   :  { %9006 = vpow2.f32 %v6945_v18  ;;  %v5502_v18 = vld [vmem:[%s12075_s17 + $0x98] sm:$0x1] }
0x2143   :  { %9008 = vtanh.f32 %v5020_v52 }
0x2144   :  { %v4790_v16 = vpop.f32.mrb[62].mxu1 }
0x2145   :  { %6941 = vst.msk [vmem:[%s12076_s18 + $0x20] sm:$0xff] %vm1203_vm10, %v4790_v16  ;;  %v4792_v25 = vpop.f32.mrb[63].mxu1 }
0x2146   :  { %v5587_v25 = vld [vmem:[#allocation8 + $0x8] sm:$0xff] }
0x214c   :  { %v9007_v32 = vpop.eup %9006 }
0x214d   :  { %v5025_v12 = vadd.f32 1.0, %v9007_v32  ;;  %v9009_v22 = vpop.eup %9008 }
0x214f   :  { %9010 = vrcp.f32 %v5025_v12 }
0x2150   :  { %9012 = vpow2.f32 %v6946_v5  ;;  %v5586_v5 = vld [vmem:[#allocation8] sm:$0xff] }
0x2159   :  { %v9011_v6 = vpop.eup %9010 }
0x215a   :  { %v5036_v1 = vmul.f32 %v9011_v6, %v9009_v22  ;;  %v9013_v35 = vpop.eup %9012  ;;  %v5035_v0 = vmul.f32 %v9011_v6, %v11231_v8 }
0x215b   :  { %v5032_v33 = vadd.f32 1.0, %v9013_v35 }
0x215c   :  { %5038 = vrot.lane.b32.xlu1 %v5036_v1, %s9315_s4 }
0x215d   :  { %9014 = vrcp.f32 %v5032_v33  ;;  %v5591_v33 = vld [vmem:[#allocation8 + $0x28] sm:$0xff] }
0x2160   :  { %5473 = vrot.lane.b32.xlu1 %v5129_v56, %s9319_s21 }
0x2167   :  { %v9015_v49 = vpop.eup %9014 }
0x21ce   :  { %v5039_v54 = vpop.permute.xlu1 %5038 }
0x21cf   :  { %v11527_v2 = vadd.f32 %v5039_v54, %v5035_v0  ;;  %v5593_v0 = vld [vmem:[#allocation8 + $0x38] sm:$0xff] }
0x21d1   :  { %9016 = vtanh.f32 %v11527_v2 }
0x21d2   :  { %v5474_v6 = vpop.permute.xlu1 %5473 }
0x21db   :  { %v9017_v55 = vpop.eup %9016 }
0x21dc   :  { %v11530_v42 = vmul.f32 %v9017_v55, %v9015_v49 }
0x21de   :  { %5053 = vrot.lane.b32.xlu0 %v11530_v42, %s9315_s4 }
0x21e2   :  { %5475 = vrot.lane.b32.xlu0 %v5130_v60, %s9319_s21 }
0x2250   :  { %v5054_v48 = vpop.permute.xlu0 %5053 }
0x2251   :  { %7556 = vmatmul.mubr.msk.f32.vlgmr.msra.gmra.mrb[64].mxu1 %vm609_vm7, %v5054_v48 }
0x2252   :  { %7559 = vmatpush3.msk.msra.mxu1 %vm1207_vm9, %v5131_v63  ;;  %7560 = vmatprep.mubr.msk.f32.mxu1 %vm9318_vm8, %v12114_v61 }
0x2253   :  { %8491 = vmatprep.subr.bf16.mxu1 %v12122_v36 }
0x2254   :  { %v5476_v1 = vpop.permute.xlu0 %5475 }
0x2255   :  { %7561 = vmatmul.mubr.msk.f32.vlgmr.msra.gmra.mrb[66].mxu1 %vm1203_vm10, %v4790_v16  ;;  %v8559_v16 = vpack.c.bf16 %v5502_v18, %v11475_v57  ;;  %v5588_v57 = vld [vmem:[#allocation8 + $0x10] sm:$0xff]  ;;  %v5477_v49 = vsel %vm1550_vm14, %v5474_v6, %v5476_v1  ;;  %v5998_v1 = vld [vmem:[#allocation14 + $0x20] sm:$0xff] }
0x2256   :  { %8493 = vmatpush3.bf16.msra.mxu1 %v11025_v27  ;;  %7579 = vmatprep.mubr.msk.f32.mxu1 %vm9318_vm8, %v12114_v61  ;;  %v8564_v63 = vpack.c.bf16 %v5588_v57, %v5586_v5  ;;  %v6000_v57 = vld [vmem:[#allocation14 + $0x30] sm:$0xff] }
0x2257   :  { %8494 = vmatprep.subr.bf16.mxu1 %v12122_v36 }
0x225a   :  { %8496 = vmatpush3.bf16.msra.mxu1 %v11028_v40  ;;  %v4339_v40 = vadd.f32 %v11556_v10, %v11325_v46  ;;  %v12157_v46 = vld [vmem:[#allocation34_spill] sm:$0xff] }
0x225b   :  { %8497 = vmatprep.subr.bf16.mxu1 %v12122_v36 }
0x225e   :  { %8499 = vmatpush3.bf16.msra.mxu1 %v11032_v58 }
0x225f   :  { %8500 = vmatprep.subr.bf16.mxu1 %v12122_v36 }
0x2262   :  { %8502 = vmatpush3.bf16.msra.mxu1 %v11037_v9  ;;  %v12155_v9 = vld [vmem:[#allocation26_spill] sm:$0xff] }
0x2263   :  { %8516 = vmatprep.subr.bf16.mxu1 %v11258_v39  ;;  %v12156_v39 = vld [vmem:[#allocation27_spill] sm:$0xff] }
0x2324   :  { %v11551_v8 = vpop.f32.mrb[64].mxu1 }
0x2325   :  { %v7557_v27 = vpop.f32.mrb[65].mxu1 }
0x2326   :  { %v8566_v27 = vpack.c.bf16 %v5593_v0, %v5591_v33  ;;  %v5705_v0 = vld [vmem:[%s12064_s6 + $0x8] sm:$0xff] }
0x2328   :  { %v5204_v24 = vpop.f32.mrb[66].mxu1 }
0x2329   :  { %v5208_v7 = vadd.f32 %v5204_v24, %v4339_v40  ;;  %5468 = vrot.lane.b32.xlu1 %v5204_v24, %s9315_s4  ;;  %v7562_v58 = vpop.f32.mrb[67].mxu1  ;;  %v5590_v40 = vld [vmem:[#allocation8 + $0x20] sm:$0xff]  ;;  %v5592_v24 = vld [vmem:[#allocation8 + $0x30] sm:$0xff] }
0x232a   :  { %v5597_v58 = vld [vmem:[#allocation8 + $0x58] sm:$0xff] }
0x232b   :  { %v5290_v19 = vmul.f32 %v5208_v7, %v5208_v7  ;;  %7580 = vmatmul.mubr.msk.f32.vlgmr.msra.gmra.mrb[68].mxu1 %vm609_vm7, %v5208_v7 }
0x232c   :  { %8518 = vmatpush1.bf16.msra.mxu1 %v11266_v17  ;;  %5458 = vmatprep.mubr.f32.mxu1 %v12114_v61  ;;  %v12159_v17 = vld [vmem:[#allocation36_spill] sm:$0xff] }
0x232d   :  { %7599 = vmatmul.mubr.msk.f32.vlgmr.msra.gmra.mrb[50].mxu0 %vm609_vm7, %v5290_v19  ;;  %8520 = vmatprep.subr.bf16.mxu1 %v12155_v9  ;;  %v8568_v19 = vpack.c.bf16 %v5592_v24, %v5590_v40  ;;  %v5708_v24 = vld [vmem:[%s12064_s6 + $0x20] sm:$0xff] }
0x232e   :  { %8533 = vmatpush1.bf16.msra.mxu0 %v11385_v20 }
0x232f   :  { %8534 = vmatprep.subr.bf16.mxu0 %v12122_v36 }
0x2330   :  { %8522 = vmatpush1.bf16.msra.mxu1 %v12156_v39  ;;  %v5594_v39 = vld [vmem:[#allocation8 + $0x40] sm:$0xff] }
0x2331   :  { %8524 = vmatprep.subr.bf16.mxu1 %v12157_v46  ;;  %v5596_v46 = vld [vmem:[#allocation8 + $0x50] sm:$0xff] }
0x2332   :  { %8536 = vmatpush1.bf16.msra.mxu0 %v11393_v43 }
0x2333   :  { %8537 = vmatprep.subr.bf16.mxu0 %v12122_v36 }
0x2334   :  { %8526 = vmatpush1.bf16.msra.mxu1 %v12158_v3  ;;  %v5599_v3 = vld [vmem:[#allocation8 + $0x68] sm:$0xff] }
0x2335   :  { %8528 = vmatprep.subr.bf16.mxu1 %v12159_v17  ;;  %v5601_v17 = vld [vmem:[#allocation8 + $0x78] sm:$0xff] }
0x2336   :  { %8539 = vmatpush1.bf16.msra.mxu0 %v11403_v4 }
0x2337   :  { %8540 = vmatprep.subr.bf16.mxu0 %v12122_v36 }
0x2338   :  { %8530 = vmatpush1.bf16.msra.mxu1 %v12160_v15  ;;  %v8572_v15 = vpack.c.bf16 %v5596_v46, %v5594_v39  ;;  %v5712_v46 = vld [vmem:[%s12064_s6 + $0x40] sm:$0xff] }
0x233a   :  { %8542 = vmatpush1.bf16.msra.mxu0 %v11413_v53 }
0x233b   :  { %8543 = vmatprep.subr.bf16.mxu0 %v12122_v36 }
0x233e   :  { %8545 = vmatpush1.bf16.msra.mxu0 %v11423_v31 }
0x233f   :  { %8546 = vmatprep.subr.bf16.mxu0 %v12122_v36 }
0x2342   :  { %8548 = vmatpush1.bf16.msra.mxu0 %v11433_v14 }
0x2343   :  { %8549 = vmatprep.subr.bf16.mxu0 %v12122_v36 }
0x2346   :  { %8551 = vmatpush1.bf16.msra.mxu0 %v11443_v34 }
0x2347   :  { %8552 = vmatprep.subr.bf16.mxu0 %v12122_v36 }
0x234a   :  { %8554 = vmatpush1.bf16.msra.mxu0 %v11453_v51 }
0x234b   :  { %8555 = vmatprep.subr.bf16.mxu0 %v12122_v36 }
0x234e   :  { %8557 = vmatpush1.bf16.msra.mxu0 %v11467_v62 }
0x234f   :  { %8558 = vmatprep.subr.bf16.mxu0 %v12122_v36 }
0x2352   :  { %8561 = vmatpush1.bf16.msk.msra.mxu0 %vm10197_vm13, %v8559_v16 }
0x239b   :  { %v5469_v56 = vpop.permute.xlu1 %5468 }
0x239c   :  { %v5480_v55 = vsel %vm1550_vm14, %v5469_v56, %v5474_v6  ;;  %v5999_v56 = vld [vmem:[#allocation14 + $0x28] sm:$0xff] }
0x239d   :  { %v11637_v5 = vpack.c.bf16 %v5999_v56, %v5998_v1  ;;  %v5735_v1 = vld [vmem:[%s12064_s6 + $0xf8] sm:$0xff] }
0x23fe   :  { %v5286_v20 = vpop.f32.mrb[68].mxu1 }
0x23ff   :  { %v5365_v43 = vmul.f32 %v5286_v20, %v5286_v20  ;;  %v7581_v4 = vpop.f32.mrb[69].mxu1  ;;  %v5364_v44 = vsub.f32 %v5208_v7, %v5286_v20  ;;  %v5595_v7 = vld [vmem:[#allocation8 + $0x48] sm:$0xff]  ;;  %v8574_v20 = vpack.c.bf16 %v5601_v17, %v5599_v3  ;;  %v5714_v3 = vld [vmem:[%s12064_s6 + $0x50] sm:$0xff]  ;;  %v5717_v17 = vld [vmem:[%s12064_s6 + $0x68] sm:$0xff] }
0x2400   :  { %v5360_v53 = vpop.f32.mrb[50].mxu0  ;;  %v8570_v9 = vpack.c.bf16 %v5597_v58, %v5595_v7  ;;  %v5600_v4 = vld [vmem:[#allocation8 + $0x70] sm:$0xff]  ;;  %v5710_v7 = vld [vmem:[%s12064_s6 + $0x30] sm:$0xff] }
0x2401   :  { %v5366_v31 = vsub.f32 %v5360_v53, %v5365_v43  ;;  %v7600_v14 = vpop.f32.mrb[51].mxu0  ;;  %v5598_v43 = vld [vmem:[#allocation8 + $0x60] sm:$0xff]  ;;  %v5713_v58 = vld [vmem:[%s12064_s6 + $0x48] sm:$0xff] }
0x2402   :  { %v8576_v53 = vpack.c.bf16 %v5600_v4, %v5598_v43  ;;  %v5716_v4 = vld [vmem:[%s12064_s6 + $0x60] sm:$0xff] }
0x2403   :  { %v5367_v50 = vadd.f32 1e-05, %v5366_v31  ;;  %v5916_v31 = vld [vmem:[#allocation12] sm:$0x7] }
0x2405   :  { %9018 = vrsqrt.f32 %v5367_v50 }
0x240f   :  { %v9019_v34 = vpop.eup %9018 }
0x2410   :  { %v5369_v21 = vmul.f32 %v9019_v34, %v5364_v44  ;;  %v12162_v34 = vld [vmem:[#allocation33_spill] sm:$0xff] }
0x2412   :  { %v5370_v23 = vmul.f32 %v11331_v26, %v5369_v21  ;;  %v5589_v26 = vld [vmem:[#allocation8 + $0x18] sm:$0xff]  ;;  %v354_v21 = vadd.f32 %v12162_v34, %v9613_v47  ;;  %v5994_v47 = vld [vmem:[#allocation14] sm:$0xff] }
0x2413   :  { %v8562_v52 = vpack.c.bf16 %v5589_v26, %v5587_v25  ;;  %v5722_v34 = vld [vmem:[%s12064_s6 + $0x90] sm:$0xff] }
0x2414   :  { %v5371_v51 = vadd.f32 %v11334_v59, %v5370_v23 }
0x2415   :  { %8563 = vmatprep.subr.bf16.mxu0 %v8562_v52 }
0x2416   :  { %vm5372_vm4 = vcmp.ge.f32.partialorder %v5371_v51, 0.0  ;;  %v5373_v37 = vmul.f32 0.01, %v5371_v51 }
0x2418   :  { %v5374_v62 = vsel %vm5372_vm4, %v5371_v51, %v5373_v37 }
0x2419   :  { %6952 = vmatmul.mubr.msk.f32.vlgmr.msra.gmra.mrb[70].mxu1 %vm609_vm7, %v5374_v62 }
0x241a   :  { %5800 = vmatprep.mubr.f32.mxu1 %v12114_v61 }
0x24ec   :  { %v5460_v59 = vpop.f32.mrb[70].mxu1 }
0x24ed   :  { %v5461_v32 = vadd.f32 %v5460_v59, %v10220_v29  ;;  %v5462_v12 = vpop.f32.mrb[71].mxu1  ;;  %v5995_v59 = vld [vmem:[#allocation14 + $0x8] sm:$0xff] }
0x24ee   :  { %v5463_v22 = vadd.f32 %v5462_v12, %v10223_v38  ;;  %v11630_v12 = vpack.c.bf16 %v5995_v59, %v5994_v47  ;;  %v5728_v59 = vld [vmem:[%s12064_s6 + $0xc0] sm:$0xff] }
0x24ef   :  { %9020 = vtanh.f32 %v5461_v32  ;;  %v5996_v32 = vld [vmem:[#allocation14 + $0x10] sm:$0xff] }
0x24f0   :  { %9022 = vtanh.f32 %v5463_v22  ;;  %v5997_v22 = vld [vmem:[#allocation14 + $0x18] sm:$0xff] }
0x24f1   :  { %v11633_v6 = vpack.c.bf16 %v5997_v22, %v5996_v32  ;;  %v5730_v32 = vld [vmem:[%s12064_s6 + $0xd0] sm:$0xff]  ;;  %v5733_v22 = vld [vmem:[%s12064_s6 + $0xe8] sm:$0xff] }
0x24f2   :  { %v8604_v56 = vpack.c.bf16 %v5730_v32, %v5728_v59 }
0x24f9   :  { %v9021_v35 = vpop.eup %9020 }
0x24fa   :  { %v9023_v54 = vpop.eup %9022  ;;  %v5481_v48 = vmul.f32 %v9021_v35, %v5480_v55  ;;  %v6001_v35 = vld [vmem:[#allocation14 + $0x38] sm:$0xff] }
0x24fb   :  { %v5482_v60 = vmul.f32 %v9023_v54, %v5477_v49  ;;  %v11642_v33 = vpack.c.bf16 %v6001_v35, %v6000_v57  ;;  %v5707_v54 = vld [vmem:[%s12064_s6 + $0x18] sm:$0xff]  ;;  %v5704_v49 = vld [vmem:[%s12064_s6] sm:$0xff]  ;;  %v8606_v57 = vpack.c.bf16 %v5735_v1, %v5733_v22 }
0x24fc   :  { %v8578_v55 = vpack.c.bf16 %v5707_v54, %v5705_v0  ;;  %v5732_v35 = vld [vmem:[%s12064_s6 + $0xe0] sm:$0xff]  ;;  %v5734_v0 = vld [vmem:[%s12064_s6 + $0xf0] sm:$0xff] }
0x24fd   :  { %6954 = vmatprep.mubr.msk.f32.mxu0 %vm1577_vm15, %v5482_v60  ;;  %v5706_v60 = vld [vmem:[%s12064_s6 + $0x10] sm:$0xff]  ;;  %v8608_v54 = vpack.c.bf16 %v5734_v0, %v5732_v35  ;;  %v5915_v35 = vld [vmem:[#allocation3 + $0x68] sm:$0xff] }
0x24fe   :  { %5574 = vmatmul.mubr.f32.vlgmr.msra.gmra.mrb[52].mxu0 %v5481_v48  ;;  %v5711_v48 = vld [vmem:[%s12064_s6 + $0x38] sm:$0xff]  ;;  %8579 = vmatprep.subr.bf16.mxu1 %v8578_v55  ;;  %v6368_v0 = vld [vmem:[#allocation3 + $0x70] sm:$0xff] }
0x24ff   :  { %8565 = vmatpush1.bf16.msra.mxu0 %v8564_v63  ;;  %5668 = vmatprep.mubr.f32.mxu0 %v12114_v61  ;;  %v5709_v63 = vld [vmem:[%s12064_s6 + $0x28] sm:$0xff] }
0x2500   :  { %8567 = vmatprep.subr.bf16.mxu0 %v8566_v27  ;;  %v8580_v27 = vpack.c.bf16 %v5706_v60, %v5704_v49  ;;  %v8582_v40 = vpack.c.bf16 %v5711_v48, %v5709_v63 }
0x2502   :  { %8581 = vmatpush1.bf16.msra.mxu1 %v8580_v27 }
0x2503   :  { %8569 = vmatpush1.bf16.msra.mxu0 %v8568_v19  ;;  %v5715_v19 = vld [vmem:[%s12064_s6 + $0x58] sm:$0xff]  ;;  %8583 = vmatprep.subr.bf16.mxu1 %v8582_v40 }
0x2504   :  { %8571 = vmatprep.subr.bf16.mxu0 %v8570_v9  ;;  %v8584_v9 = vpack.c.bf16 %v5710_v7, %v5708_v24  ;;  %v8586_v39 = vpack.c.bf16 %v5715_v19, %v5713_v58  ;;  %v5124_v58 = vadd.f32 %v11556_v10, %v11551_v8 }
0x2506   :  { %8585 = vmatpush1.bf16.msra.mxu1 %v8584_v9 }
0x2507   :  { %8573 = vmatpush1.bf16.msra.mxu0 %v8572_v15  ;;  %v5719_v15 = vld [vmem:[%s12064_s6 + $0x78] sm:$0xff]  ;;  %8587 = vmatprep.subr.bf16.mxu1 %v8586_v39 }
0x2508   :  { %8575 = vmatprep.subr.bf16.mxu0 %v8574_v20  ;;  %v8588_v20 = vpack.c.bf16 %v5714_v3, %v5712_v46  ;;  %v8590_v43 = vpack.c.bf16 %v5719_v15, %v5717_v17 }
0x250a   :  { %8589 = vmatpush1.bf16.msra.mxu1 %v8588_v20 }
0x250b   :  { %8577 = vmatpush1.bf16.msra.mxu0 %v8576_v53  ;;  %v5718_v53 = vld [vmem:[%s12064_s6 + $0x70] sm:$0xff]  ;;  %8591 = vmatprep.subr.bf16.mxu1 %v8590_v43 }
0x250c   :  { %7620 = vmatprep.subr.mxu0 %v12114_v61 }
0x250e   :  { %6956 = vmatmul.mubr.msk.f32.vlgmr.msra.gmra.mrb[54].mxu0 %vm609_vm7, %v11490_v30  ;;  %v12161_v30 = vld [vmem:[#allocation32_spill] sm:$0xff] }
0x250f   :  { %7622 = vmatprep.mubr.msk.f32.mxu0 %vm9318_vm8, %v12114_v61  ;;  %7621 = vmatpush3.msk.msra.mxu0 %vm1207_vm9, %v5916_v31  ;;  %v352_v44 = vadd.f32 %v12161_v30, %v9607_v41  ;;  %v5721_v31 = vld [vmem:[%s12064_s6 + $0x88] sm:$0xff] }
0x2510   :  { %8622 = vmatprep.subr.bf16.mxu0 %v12122_v36 }
0x25d1   :  { %v5575_v14 = vpop.f32.mrb[52].mxu0 }
0x25d2   :  { %6955 = vst.msk [vmem:[%s12076_s18 + $0x28] sm:$0xff] %vm1203_vm10, %v5575_v14  ;;  %v5577_v50 = vpop.f32.mrb[53].mxu0  ;;  %7623 = vmatmul.mubr.msk.f32.vlgmr.msra.gmra.mrb[56].mxu0 %vm1203_vm10, %v5575_v14  ;;  %v5723_v14 = vld [vmem:[%s12064_s6 + $0x98] sm:$0xff] }
0x25d3   :  { %7641 = vmatprep.mubr.msk.f32.mxu0 %vm9318_vm8, %v12114_v61  ;;  %8624 = vmatpush3.bf16.msra.mxu0 %v11630_v12  ;;  %v8592_v50 = vpack.c.bf16 %v5718_v53, %v5716_v4  ;;  %v8594_v30 = vpack.c.bf16 %v5723_v14, %v5721_v31  ;;  %v5914_v14 = vld [vmem:[#allocation3 + $0x60] sm:$0xff] }
0x25d4   :  { %8625 = vmatprep.subr.bf16.mxu0 %v12122_v36 }
0x25d5   :  { %8593 = vmatpush1.bf16.msra.mxu1 %v8592_v50  ;;  %v5830_v50 = vld [vmem:[#allocation11 + $0x8] sm:$0xff] }
0x25d6   :  { %8595 = vmatprep.subr.bf16.mxu1 %v8594_v30  ;;  %v5831_v30 = vld [vmem:[#allocation11 + $0x10] sm:$0xff] }
0x25d7   :  { %8627 = vmatpush3.bf16.msra.mxu0 %v11633_v6 }
0x25d8   :  { %8628 = vmatprep.subr.bf16.mxu0 %v12122_v36 }
0x25db   :  { %8630 = vmatpush3.bf16.msra.mxu0 %v11637_v5 }
0x25dc   :  { %8631 = vmatprep.subr.bf16.mxu0 %v12122_v36 }
0x25df   :  { %8633 = vmatpush3.bf16.msra.mxu0 %v11642_v33 }
0x25e1   :  { %v5670_v23 = vpop.f32.mrb[54].mxu0 }
0x25e2   :  { %v5675_v51 = vadd.f32 %v5670_v23, %v352_v44  ;;  %v5672_v37 = vpop.f32.mrb[55].mxu0  ;;  %v5720_v44 = vld [vmem:[%s12064_s6 + $0x80] sm:$0xff]  ;;  %v5727_v23 = vld [vmem:[%s12064_s6 + $0xb8] sm:$0xff] }
0x25e3   :  { %v11623_v62 = vadd.f32 %v5672_v37, %v354_v21  ;;  %v5725_v21 = vld [vmem:[%s12064_s6 + $0xa8] sm:$0xff] }
0x25e4   :  { %v6957_v18 = vmul.f32 -1.442695, %v5675_v51  ;;  %v8596_v51 = vpack.c.bf16 %v5722_v34, %v5720_v44  ;;  %v8598_v37 = vpack.c.bf16 %v5727_v23, %v5725_v21  ;;  %v6369_v44 = vld [vmem:[#allocation3 + $0x78] sm:$0xff] }
0x25e5   :  { %v6958_v49 = vmul.f32 -1.442695, %v11623_v62  ;;  %v5833_v23 = vld [vmem:[#allocation11 + $0x20] sm:$0xff] }
0x25e6   :  { %9024 = vpow2.f32 %v6957_v18  ;;  %v5724_v18 = vld [vmem:[%s12064_s6 + $0xa0] sm:$0xff]  ;;  %8597 = vmatpush1.bf16.msra.mxu1 %v8596_v51 }
0x25e7   :  { %9026 = vtanh.f32 %v11623_v62  ;;  %8599 = vmatprep.subr.bf16.mxu1 %v8598_v37  ;;  %v5834_v51 = vld [vmem:[#allocation11 + $0x28] sm:$0xff] }
0x25e8   :  { %v8617_v37 = vpack.c.bf16 %v5834_v51, %v5833_v23  ;;  %v6274_v23 = vld [vmem:[%s12075_s17 + $0x30] sm:$0xff]  ;;  %v6275_v51 = vld [vmem:[%s12075_s17 + $0x38] sm:$0xff] }
0x25f0   :  { %v9025_v16 = vpop.eup %9024 }
0x25f1   :  { %v5680_v25 = vadd.f32 1.0, %v9025_v16  ;;  %v9027_v26 = vpop.eup %9026  ;;  %v5726_v16 = vld [vmem:[%s12064_s6 + $0xb0] sm:$0xff] }
0x25f3   :  { %9028 = vrcp.f32 %v5680_v25  ;;  %v5729_v25 = vld [vmem:[%s12064_s6 + $0xc8] sm:$0xff] }
0x25f4   :  { %9030 = vpow2.f32 %v6958_v49  ;;  %v6161_v49 = vld [vmem:[%s12072_s14 + $0x8] sm:$0xff] }
0x25fd   :  { %v11626_v52 = vpop.eup %9028 }
0x25fe   :  { %v5691_v41 = vmul.f32 %v11626_v52, %v9027_v26  ;;  %v5731_v26 = vld [vmem:[%s12064_s6 + $0xd8] sm:$0xff]  ;;  %v9031_v55 = vpop.eup %9030  ;;  %v5690_v63 = vmul.f32 %v11626_v52, %v11459_v28 }
0x25ff   :  { %v8602_v47 = vpack.c.bf16 %v5731_v26, %v5729_v25  ;;  %v5687_v60 = vadd.f32 1.0, %v9031_v55  ;;  %v6163_v55 = vld [vmem:[%s12072_s14 + $0x18] sm:$0xff] }
0x2600   :  { %5693 = vrot.lane.b32.xlu0 %v5691_v41, %s9315_s4  ;;  %v8600_v41 = vpack.c.bf16 %v5726_v16, %v5724_v18  ;;  %v5835_v18 = vld [vmem:[#allocation11 + $0x30] sm:$0xff]  ;;  %v5836_v16 = vld [vmem:[#allocation11 + $0x38] sm:$0xff] }
0x2601   :  { %9032 = vrcp.f32 %v5687_v60  ;;  %v8620_v25 = vpack.c.bf16 %v5836_v16, %v5835_v18  ;;  %v11793_v60 = vpack.c.bf16 %v6163_v55, %v6161_v49  ;;  %v6276_v18 = vld [vmem:[%s12075_s17 + $0x40] sm:$0xff]  ;;  %v6277_v16 = vld [vmem:[%s12075_s17 + $0x48] sm:$0xff]  ;;  %v11926_v49 = vld [vmem:[#allocation15] ss:$0 sm:$0xff] }
0x2602   :  { %8601 = vmatpush1.bf16.msra.mxu1 %v8600_v41 }
0x2603   :  { %8603 = vmatprep.subr.bf16.mxu1 %v8602_v47  ;;  %8647 = vmatprep.subr.bf16.mxu0 %v11793_v60 }
0x2606   :  { %8605 = vmatpush1.bf16.msra.mxu1 %v8604_v56 }
0x2607   :  { %8607 = vmatprep.subr.bf16.mxu1 %v8606_v57 }
0x260a   :  { %8609 = vmatpush1.bf16.msra.mxu1 %v8608_v54 }
0x260b   :  { %8610 = vmatprep.subr.bf16.mxu1 %v12122_v36  ;;  %v9033_v40 = vpop.eup %9032 }
0x2672   :  { %v5694_v48 = vpop.permute.xlu0 %5693 }
0x2673   :  { %v5696_v27 = vadd.f32 %v5694_v48, %v5690_v63  ;;  %v6160_v63 = vld [vmem:[%s12072_s14] sm:$0xff]  ;;  %v6162_v48 = vld [vmem:[%s12072_s14 + $0x10] sm:$0xff] }
0x2675   :  { %9034 = vtanh.f32 %v5696_v27  ;;  %v11801_v27 = vpack.c.bf16 %v6162_v48, %v6160_v63  ;;  %v11929_v63 = vld [vmem:[#allocation17] ss:$0 sm:$0xff] }
0x267f   :  { %v9035_v24 = vpop.eup %9034 }
0x2680   :  { %v5698_v7 = vmul.f32 %v9035_v24, %v9033_v40  ;;  %v6165_v40 = vld [vmem:[%s12072_s14 + $0x28] sm:$0xff]  ;;  %v6167_v24 = vld [vmem:[%s12072_s14 + $0x38] sm:$0xff] }
0x2682   :  { %5700 = vrot.lane.b32.xlu1 %v5698_v7, %s9315_s4  ;;  %v11811_v7 = vpack.c.bf16 %v6167_v24, %v6165_v40 }
0x26a5   :  { %v5989_v19 = vpop.f32.mrb[56].mxu0 }
0x26a6   :  { %v11748_v62 = vadd.f32 %v5989_v19, %v5124_v58  ;;  %v7624_v9 = vpop.f32.mrb[57].mxu0  ;;  %v6164_v58 = vld [vmem:[%s12072_s14 + $0x20] sm:$0xff] }
0x26a8   :  { %7642 = vmatmul.mubr.msk.f32.vlgmr.msra.gmra.mrb[58].mxu0 %vm609_vm7, %v11748_v62 }
0x26a9   :  { %6243 = vmatprep.mubr.f32.mxu0 %v12114_v61  ;;  %8649 = vmatpush1.bf16.msra.mxu0 %v11801_v27 }
0x26aa   :  { %8651 = vmatprep.subr.bf16.mxu0 %v11811_v7 }
0x26f4   :  { %v5701_v28 = vpop.permute.xlu1 %5700 }
0x26f5   :  { %v5703_v52 = vsel %vm609_vm7, %v5701_v28, %v11530_v42  ;;  %v6169_v28 = vld [vmem:[%s12072_s14 + $0x48] sm:$0xff] }
0x26f6   :  { %5801 = vmatmul.mubr.f32.vlgmr.msra.gmra.mrb[72].mxu1 %v5703_v52  ;;  %v6171_v52 = vld [vmem:[%s12072_s14 + $0x58] sm:$0xff] }
0x26f7   :  { %7617 = vmatprep.mubr.msk.f32.mxu1 %vm9318_vm8, %v12114_v61 }
0x277b   :  { %v11757_v39 = vpop.f32.mrb[58].mxu0 }
0x277c   :  { %v7643_v8 = vpop.f32.mrb[59].mxu0 }
0x277d   :  { %v11829_v8 = vpack.c.bf16 %v6171_v52, %v6169_v28  ;;  %v6283_v28 = vld [vmem:[%s12075_s17 + $0x78] sm:$0xff]  ;;  %v6284_v52 = vld [vmem:[%s12075_s17 + $0x80] sm:$0xff] }
0x27c9   :  { %v5802_v46 = vpop.f32.mrb[72].mxu1 }
0x27ca   :  { %v5803_v3 = vadd.f32 %v5802_v46, %v9865_v11  ;;  %v5804_v17 = vpop.f32.mrb[73].mxu1  ;;  %v5829_v11 = vld [vmem:[#allocation11] sm:$0xff]  ;;  %v6168_v46 = vld [vmem:[%s12072_s14 + $0x40] sm:$0xff] }
0x27cb   :  { %v5805_v20 = vadd.f32 %v5804_v17, %v9870_v45  ;;  %v8611_v34 = vpack.c.bf16 %v5830_v50, %v5829_v11  ;;  %v5832_v45 = vld [vmem:[#allocation11 + $0x18] sm:$0xff] }
0x27cc   :  { %v6959_v15 = vmul.f32 -1.442695, %v5803_v3  ;;  %v8614_v21 = vpack.c.bf16 %v5832_v45, %v5831_v30  ;;  %v6170_v3 = vld [vmem:[%s12072_s14 + $0x50] sm:$0xff]  ;;  %v6271_v30 = vld [vmem:[%s12075_s17 + $0x18] sm:$0xff]  ;;  %v6273_v45 = vld [vmem:[%s12075_s17 + $0x28] sm:$0xff] }
0x27cd   :  { %8612 = vmatpush3.bf16.msra.mxu1 %v8611_v34  ;;  %v6960_v26 = vmul.f32 -1.442695, %v5805_v20  ;;  %v11837_v17 = vpack.c.bf16 %v6170_v3, %v6168_v46  ;;  %v6270_v11 = vld [vmem:[%s12075_s17 + $0x10] sm:$0xff]  ;;  %v6272_v34 = vld [vmem:[%s12075_s17 + $0x20] sm:$0xff]  ;;  %v6285_v3 = vld [vmem:[%s12075_s17 + $0x88] sm:$0xff] }
0x27ce   :  { %9036 = vpow2.f32 %v6959_v15  ;;  %8613 = vmatprep.subr.bf16.mxu1 %v12122_v36  ;;  %v6173_v15 = vld [vmem:[%s12072_s14 + $0x68] sm:$0xff] }
0x27cf   :  { %9038 = vtanh.f32 %v5805_v20  ;;  %v6175_v20 = vld [vmem:[%s12072_s14 + $0x78] sm:$0xff] }
0x27d1   :  { %8615 = vmatpush3.bf16.msra.mxu1 %v8614_v21  ;;  %v11885_v21 = vpack.c.bf16 %v6273_v45, %v6272_v34 }
0x27d2   :  { %8616 = vmatprep.subr.bf16.mxu1 %v12122_v36 }
0x27d5   :  { %8618 = vmatpush3.bf16.msra.mxu1 %v8617_v37  ;;  %v11895_v37 = vpack.c.bf16 %v6275_v51, %v6274_v23 }
0x27d6   :  { %8619 = vmatprep.subr.bf16.mxu1 %v12122_v36 }
0x27d8   :  { %v9037_v43 = vpop.eup %9036 }
0x27d9   :  { %v5810_v4 = vadd.f32 1.0, %v9037_v43  ;;  %v9039_v42 = vpop.eup %9038  ;;  %8621 = vmatpush3.bf16.msra.mxu1 %v8620_v25  ;;  %v6172_v43 = vld [vmem:[%s12072_s14 + $0x60] sm:$0xff]  ;;  %v11905_v25 = vpack.c.bf16 %v6277_v16, %v6276_v18 }
0x27da   :  { %8634 = vmatprep.subr.bf16.mxu1 %v12122_v36 }
0x27db   :  { %9040 = vrcp.f32 %v5810_v4  ;;  %v11849_v4 = vpack.c.bf16 %v6175_v20, %v6173_v15  ;;  %v11960_v15 = vpack.c.bf16 %v6285_v3, %v6284_v52  ;;  %v11966_v20 = vld [vmem:[%s12075_s17 + $0x90] sm:$0xff] }
0x27dc   :  { %9042 = vpow2.f32 %v6960_v26  ;;  %v6278_v26 = vld [vmem:[%s12075_s17 + $0x50] sm:$0xff] }
0x27e5   :  { %v9041_v53 = vpop.eup %9040 }
0x27e6   :  { %v5821_v31 = vmul.f32 %v9041_v53, %v9039_v42  ;;  %v9043_v41 = vpop.eup %9042  ;;  %v5820_v59 = vmul.f32 %v9041_v53, %v11527_v2  ;;  %v6075_v2 = vmul.f32 %v11748_v62, %v11748_v62  ;;  %v6174_v42 = vld [vmem:[%s12072_s14 + $0x70] sm:$0xff] }
0x27e7   :  { %v5817_v47 = vadd.f32 1.0, %v9043_v41  ;;  %v11855_v53 = vpack.c.bf16 %v6174_v42, %v6172_v43  ;;  %v6279_v41 = vld [vmem:[%s12075_s17 + $0x58] sm:$0xff] }
0x27e8   :  { %5823 = vrot.lane.b32.xlu0 %v5821_v31, %s9315_s4  ;;  %v6268_v31 = vld [vmem:[%s12075_s17] sm:$0xff]  ;;  %v6287_v43 = vld [vmem:[%s12075_s17 + $0x98] sm:$0x1] }
0x27e9   :  { %9044 = vrcp.f32 %v5817_v47  ;;  %v11915_v47 = vpack.c.bf16 %v6279_v41, %v6278_v26  ;;  %v8690_v42 = vpack.c.bf16 %v6287_v43, %v11966_v20 }
0x27ec   :  { %6258 = vrot.lane.b32.xlu0 %v5914_v14, %s9319_s21  ;;  %v6269_v14 = vld [vmem:[%s12075_s17 + $0x8] sm:$0xff] }
0x27ed   :  { %v11869_v50 = vpack.c.bf16 %v6269_v14, %v6268_v31  ;;  %v6370_v31 = vld [vmem:[#allocation12] sm:$0x7] }
0x27f0   :  { %6253 = vrot.lane.b32.xlu0 %v5989_v19, %s9315_s4  ;;  %v6166_v19 = vld [vmem:[%s12072_s14 + $0x30] sm:$0xff] }
0x27f1   :  { %v11819_v9 = vpack.c.bf16 %v6166_v19, %v6164_v58  ;;  %v6282_v19 = vld [vmem:[%s12075_s17 + $0x70] sm:$0xff] }
0x27f2   :  { %v11954_v46 = vpack.c.bf16 %v6283_v28, %v6282_v19 }
0x27f3   :  { %v9045_v1 = vpop.eup %9044  ;;  %8653 = vmatpush1.bf16.msra.mxu0 %v11819_v9 }
0x27f4   :  { %6714 = vrot.lane.b32.xlu0 %v6369_v44, %s9319_s21  ;;  %8655 = vmatprep.subr.bf16.mxu0 %v11829_v8  ;;  %v11875_v44 = vpack.c.bf16 %v6271_v30, %v6270_v11 }
0x27f7   :  { %8657 = vmatpush1.bf16.msra.mxu0 %v11837_v17 }
0x27f8   :  { %8659 = vmatprep.subr.bf16.mxu0 %v11849_v4 }
0x27fb   :  { %8661 = vmatpush1.bf16.msra.mxu0 %v11855_v53 }
0x27fc   :  { %7663 = vmatprep.subr.mxu0 %v12114_v61 }
0x285a   :  { %v5824_v32 = vpop.permute.xlu0 %5823 }
0x285b   :  { %v5826_v22 = vadd.f32 %v5824_v32, %v5820_v59 }
0x285d   :  { %9046 = vtanh.f32 %v5826_v22  ;;  %v6150_v22 = vmul.f32 %v11757_v39, %v11757_v39 }
0x285e   :  { %v6259_v45 = vpop.permute.xlu0 %6258 }
0x2862   :  { %v6254_v51 = vpop.permute.xlu0 %6253 }
0x2863   :  { %v6265_v26 = vsel %vm1550_vm14, %v6254_v51, %v6259_v45 }
0x2867   :  { %v9047_v56 = vpop.eup %9046 }
0x2868   :  { %v5828_v57 = vmul.f32 %v9047_v56, %v9045_v1 }
0x286a   :  { %5838 = vrot.lane.b32.xlu1 %v5828_v57, %s9315_s4 }
0x286e   :  { %6260 = vrot.lane.b32.xlu1 %v5915_v35, %s9319_s21 }
0x2872   :  { %6712 = vrot.lane.b32.xlu1 %v6368_v0, %s9319_s21  ;;  %v6149_v0 = vsub.f32 %v11748_v62, %v11757_v39  ;;  %v6280_v62 = vld [vmem:[%s12075_s17 + $0x60] sm:$0xff]  ;;  %v6281_v39 = vld [vmem:[%s12075_s17 + $0x68] sm:$0xff] }
0x2873   :  { %v11941_v58 = vpack.c.bf16 %v6281_v39, %v6280_v62 }
0x28dc   :  { %v5839_v54 = vpop.permute.xlu1 %5838 }
0x28dd   :  { %7618 = vmatmul.mubr.msk.f32.vlgmr.msra.gmra.mrb[74].mxu1 %vm609_vm7, %v5839_v54 }
0x28de   :  { %8636 = vmatpush3.bf16.msra.mxu1 %v11630_v12  ;;  %7660 = vmatprep.mubr.msk.f32.mxu1 %vm9318_vm8, %v12114_v61 }
0x28df   :  { %8637 = vmatprep.subr.bf16.mxu1 %v12122_v36 }
0x28e0   :  { %v6261_v23 = vpop.permute.xlu1 %6260 }
0x28e2   :  { %8639 = vmatpush3.bf16.msra.mxu1 %v11633_v6 }
0x28e3   :  { %8640 = vmatprep.subr.bf16.mxu1 %v12122_v36 }
0x28e6   :  { %8642 = vmatpush3.bf16.msra.mxu1 %v11637_v5 }
0x28e7   :  { %8643 = vmatprep.subr.bf16.mxu1 %v12122_v36 }
0x28ea   :  { %8645 = vmatpush3.bf16.msra.mxu1 %v11642_v33 }
0x28eb   :  { %8662 = vmatprep.subr.bf16.mxu1 %v12122_v36 }
0x28ed   :  { %7661 = vmatmul.mubr.msk.f32.vlgmr.msra.gmra.mrb[76].mxu1 %vm609_vm7, %v6075_v2 }
0x28ee   :  { %8664 = vmatpush1.bf16.msra.mxu1 %v11869_v50 }
0x28ef   :  { %8665 = vmatprep.subr.bf16.mxu1 %v12122_v36 }
0x28f2   :  { %8667 = vmatpush1.bf16.msra.mxu1 %v11875_v44 }
0x28f3   :  { %8668 = vmatprep.subr.bf16.mxu1 %v12122_v36 }
0x28f6   :  { %8670 = vmatpush1.bf16.msra.mxu1 %v11885_v21 }
0x28f7   :  { %8671 = vmatprep.subr.bf16.mxu1 %v12122_v36 }
0x28fa   :  { %8673 = vmatpush1.bf16.msra.mxu1 %v11895_v37 }
0x28fb   :  { %8674 = vmatprep.subr.bf16.mxu1 %v12122_v36 }
0x28fe   :  { %8676 = vmatpush1.bf16.msra.mxu1 %v11905_v25 }
0x28ff   :  { %8677 = vmatprep.subr.bf16.mxu1 %v12122_v36 }
0x2902   :  { %8679 = vmatpush1.bf16.msra.mxu1 %v11915_v47 }
0x2903   :  { %8680 = vmatprep.subr.bf16.mxu1 %v12122_v36 }
0x2906   :  { %8682 = vmatpush1.bf16.msra.mxu1 %v11941_v58 }
0x2907   :  { %8683 = vmatprep.subr.bf16.mxu1 %v12122_v36 }
0x290a   :  { %8685 = vmatpush1.bf16.msra.mxu1 %v11954_v46 }
0x290b   :  { %8686 = vmatprep.subr.bf16.mxu1 %v12122_v36 }
0x290e   :  { %8688 = vmatpush1.bf16.msra.mxu1 %v11960_v15 }
0x290f   :  { %8689 = vmatprep.subr.bf16.mxu1 %v12122_v36 }
0x2912   :  { %8692 = vmatpush1.bf16.msk.msra.mxu1 %vm10197_vm13, %v8690_v42 }
0x2913   :  { %8718 = vmatprep.subr.bf16.mxu1 %v11793_v60  ;;  %v6262_v60 = vsel %vm1550_vm14, %v6259_v45, %v6261_v23 }
0x29b0   :  { %v11920_v59 = vpop.f32.mrb[74].mxu1 }
0x29b1   :  { %v7619_v32 = vpop.f32.mrb[75].mxu1 }
0x29c0   :  { %v6145_v1 = vpop.f32.mrb[76].mxu1 }
0x29c1   :  { %v6151_v56 = vsub.f32 %v6145_v1, %v6150_v22  ;;  %v7662_v57 = vpop.f32.mrb[77].mxu1 }
0x29c3   :  { %v6152_v35 = vadd.f32 1e-05, %v6151_v56 }
0x29c5   :  { %9048 = vrsqrt.f32 %v6152_v35 }
0x29cf   :  { %v9049_v54 = vpop.eup %9048 }
0x29d0   :  { %v6154_v2 = vmul.f32 %v9049_v54, %v6149_v0  ;;  %v6713_v54 = vpop.permute.xlu1 %6712 }
0x29d2   :  { %v6155_v55 = vmul.f32 %v11926_v49, %v6154_v2 }
0x29d4   :  { %v6156_v48 = vadd.f32 %v11929_v63, %v6155_v55  ;;  %v6715_v55 = vpop.permute.xlu0 %6714 }
0x29d6   :  { %vm6157_vm5 = vcmp.ge.f32.partialorder %v6156_v48, 0.0  ;;  %v6158_v40 = vmul.f32 0.01, %v6156_v48 }
0x29d8   :  { %v6159_v24 = vsel %vm6157_vm5, %v6156_v48, %v6158_v40  ;;  %v6716_v48 = vsel %vm1550_vm14, %v6713_v54, %v6715_v55 }
0x29d9   :  { %6966 = vmatmul.mubr.msk.f32.vlgmr.msra.gmra.mrb[60].mxu0 %vm609_vm7, %v6159_v24 }
0x29da   :  { %7665 = vmatprep.mubr.msk.f32.mxu0 %vm9318_vm8, %v12114_v61  ;;  %7664 = vmatpush3.msk.msra.mxu0 %vm1207_vm9, %v6370_v31 }
0x29db   :  { %8693 = vmatprep.subr.bf16.mxu0 %v12122_v36 }
0x2aac   :  { %v6245_v14 = vpop.f32.mrb[60].mxu0 }
0x2aad   :  { %v6246_v11 = vadd.f32 %v6245_v14, %v10220_v29  ;;  %v6247_v30 = vpop.f32.mrb[61].mxu0 }
0x2aae   :  { %v6248_v34 = vadd.f32 %v6247_v30, %v10223_v38 }
0x2aaf   :  { %9050 = vtanh.f32 %v6246_v11 }
0x2ab0   :  { %9052 = vtanh.f32 %v6248_v34 }
0x2ab9   :  { %v9051_v18 = vpop.eup %9050 }
0x2aba   :  { %v9053_v16 = vpop.eup %9052  ;;  %v6266_v32 = vmul.f32 %v9051_v18, %v6265_v26 }
0x2abb   :  { %v6267_v41 = vmul.f32 %v9053_v16, %v6262_v60 }
0x2abd   :  { %6968 = vmatprep.mubr.msk.f32.mxu1 %vm1577_vm15, %v6267_v41 }
0x2abe   :  { %6359 = vmatmul.mubr.f32.vlgmr.msra.gmra.mrb[78].mxu1 %v6266_v32 }
0x2abf   :  { %8720 = vmatpush1.bf16.msra.mxu1 %v11801_v27  ;;  %6697 = vmatprep.mubr.f32.mxu1 %v12114_v61 }
0x2ac0   :  { %8722 = vmatprep.subr.bf16.mxu1 %v11811_v7  ;;  %v5909_v7 = vadd.f32 %v11556_v10, %v11920_v59 }
0x2ac3   :  { %8724 = vmatpush1.bf16.msra.mxu1 %v11819_v9 }
0x2ac4   :  { %8726 = vmatprep.subr.bf16.mxu1 %v11829_v8 }
0x2ac7   :  { %8728 = vmatpush1.bf16.msra.mxu1 %v11837_v17 }
0x2ac8   :  { %8730 = vmatprep.subr.bf16.mxu1 %v11849_v4 }
0x2acb   :  { %8732 = vmatpush1.bf16.msra.mxu1 %v11855_v53 }
0x2b91   :  { %v6360_v22 = vpop.f32.mrb[78].mxu1 }
0x2b92   :  { %6969 = vst.msk [vmem:[%s12076_s18 + $0x30] sm:$0xff] %vm1203_vm10, %v6360_v22  ;;  %v6362_v27 = vpop.f32.mrb[79].mxu1  ;;  %7666 = vmatmul.mubr.msk.f32.vlgmr.msra.gmra.mrb[62].mxu0 %vm1203_vm10, %v6360_v22 }
0x2b93   :  { %8695 = vmatpush3.bf16.msra.mxu0 %v11630_v12  ;;  %7684 = vmatprep.mubr.msk.f32.mxu0 %vm9318_vm8, %v12114_v61 }
0x2b94   :  { %8696 = vmatprep.subr.bf16.mxu0 %v12122_v36 }
0x2b97   :  { %8698 = vmatpush3.bf16.msra.mxu0 %v11633_v6 }
0x2b98   :  { %8699 = vmatprep.subr.bf16.mxu0 %v12122_v36 }
0x2b9b   :  { %8701 = vmatpush3.bf16.msra.mxu0 %v11637_v5 }
0x2b9c   :  { %8702 = vmatprep.subr.bf16.mxu0 %v12122_v36 }
0x2b9f   :  { %8704 = vmatpush3.bf16.msra.mxu0 %v11642_v33 }
0x2ba0   :  { %8705 = vmatprep.subr.bf16.mxu0 %v12122_v36 }
0x2c65   :  { %v6443_v9 = vpop.f32.mrb[62].mxu0 }
0x2c66   :  { %v6447_v8 = vadd.f32 %v6443_v9, %v5909_v7  ;;  %6707 = vrot.lane.b32.xlu1 %v6443_v9, %s9315_s4  ;;  %v7667_v17 = vpop.f32.mrb[63].mxu0 }
0x2c68   :  { %7685 = vmatmul.mubr.msk.f32.vlgmr.msra.gmra.mrb[64].mxu0 %vm609_vm7, %v6447_v8  ;;  %v6529_v10 = vmul.f32 %v6447_v8, %v6447_v8 }
0x2c69   :  { %8707 = vmatpush3.bf16.msra.mxu0 %v11630_v12  ;;  %7703 = vmatprep.mubr.msk.f32.mxu0 %vm9318_vm8, %v12114_v61 }
0x2c6a   :  { %8708 = vmatprep.subr.bf16.mxu0 %v12122_v36 }
0x2c6d   :  { %8710 = vmatpush3.bf16.msra.mxu0 %v11633_v6 }
0x2c6e   :  { %8711 = vmatprep.subr.bf16.mxu0 %v12122_v36 }
0x2c71   :  { %8713 = vmatpush3.bf16.msra.mxu0 %v11637_v5 }
0x2c72   :  { %8714 = vmatprep.subr.bf16.mxu0 %v12122_v36 }
0x2c75   :  { %8716 = vmatpush3.bf16.msra.mxu0 %v11642_v33 }
0x2c76   :  { %8733 = vmatprep.subr.bf16.mxu0 %v12122_v36 }
0x2c78   :  { %7704 = vmatmul.mubr.msk.f32.vlgmr.msra.gmra.mrb[66].mxu0 %vm609_vm7, %v6529_v10 }
0x2c79   :  { %8735 = vmatpush1.bf16.msra.mxu0 %v11869_v50 }
0x2c7a   :  { %8736 = vmatprep.subr.bf16.mxu0 %v12122_v36 }
0x2c7d   :  { %8738 = vmatpush1.bf16.msra.mxu0 %v11875_v44 }
0x2c7e   :  { %8739 = vmatprep.subr.bf16.mxu0 %v12122_v36 }
0x2c81   :  { %8741 = vmatpush1.bf16.msra.mxu0 %v11885_v21 }
0x2c82   :  { %8742 = vmatprep.subr.bf16.mxu0 %v12122_v36 }
0x2c85   :  { %8744 = vmatpush1.bf16.msra.mxu0 %v11895_v37 }
0x2c86   :  { %8745 = vmatprep.subr.bf16.mxu0 %v12122_v36 }
0x2c89   :  { %8747 = vmatpush1.bf16.msra.mxu0 %v11905_v25 }
0x2c8a   :  { %8748 = vmatprep.subr.bf16.mxu0 %v12122_v36 }
0x2c8d   :  { %8750 = vmatpush1.bf16.msra.mxu0 %v11915_v47 }
0x2c8e   :  { %8751 = vmatprep.subr.bf16.mxu0 %v12122_v36 }
0x2c91   :  { %8753 = vmatpush1.bf16.msra.mxu0 %v11941_v58 }
0x2c92   :  { %8754 = vmatprep.subr.bf16.mxu0 %v12122_v36 }
0x2c95   :  { %8756 = vmatpush1.bf16.msra.mxu0 %v11954_v46 }
0x2c96   :  { %8757 = vmatprep.subr.bf16.mxu0 %v12122_v36 }
0x2c99   :  { %8759 = vmatpush1.bf16.msra.mxu0 %v11960_v15 }
0x2c9a   :  { %8760 = vmatprep.subr.bf16.mxu0 %v12122_v36  ;;  %v6741_v36 = vld [vmem:[%s12075_s17 + $0x98] sm:$0x1] }
0x2c9b   :  { %v8761_v1 = vpack.c.bf16 %v6741_v36, %v11966_v20 }
0x2c9d   :  { %8763 = vmatpush1.bf16.msk.msra.mxu0 %vm10197_vm13, %v8761_v1 }
0x2cd8   :  { %v6708_v2 = vpop.permute.xlu1 %6707 }
0x2cd9   :  { %v6719_v40 = vsel %vm1550_vm14, %v6708_v2, %v6713_v54 }
0x2d3b   :  { %v6525_v61 = vpop.f32.mrb[64].mxu0 }
0x2d3c   :  { %v7686_v12 = vpop.f32.mrb[65].mxu0  ;;  %v6604_v6 = vmul.f32 %v6525_v61, %v6525_v61  ;;  %v6603_v50 = vsub.f32 %v6447_v8, %v6525_v61 }
0x2d4b   :  { %v6599_v5 = vpop.f32.mrb[66].mxu0 }
0x2d4c   :  { %v6605_v33 = vsub.f32 %v6599_v5, %v6604_v6  ;;  %v7705_v4 = vpop.f32.mrb[67].mxu0 }
0x2d4e   :  { %v6606_v53 = vadd.f32 1e-05, %v6605_v33 }
0x2d50   :  { %9054 = vrsqrt.f32 %v6606_v53 }
0x2d5a   :  { %v9055_v44 = vpop.eup %9054 }
0x2d5b   :  { %v6608_v21 = vmul.f32 %v9055_v44, %v6603_v50 }
0x2d5d   :  { %v6609_v37 = vmul.f32 %v11926_v49, %v6608_v21 }
0x2d5f   :  { %v6610_v25 = vadd.f32 %v11929_v63, %v6609_v37 }
0x2d61   :  { %vm6611_vm6 = vcmp.ge.f32.partialorder %v6610_v25, 0.0  ;;  %v6612_v47 = vmul.f32 0.01, %v6610_v25 }
0x2d63   :  { %v6613_v59 = vsel %vm6611_vm6, %v6610_v25, %v6612_v47 }
0x2d64   :  { %6974 = vmatmul.mubr.msk.f32.vlgmr.msra.gmra.mrb[80].mxu1 %vm609_vm7, %v6613_v59 }
0x2e37   :  { %v6699_v56 = vpop.f32.mrb[80].mxu1 }
0x2e38   :  { %v6700_v57 = vadd.f32 %v6699_v56, %v10220_v29  ;;  %v6701_v35 = vpop.f32.mrb[81].mxu1 }
0x2e39   :  { %v6702_v0 = vadd.f32 %v6701_v35, %v10223_v38 }
0x2e3a   :  { %9056 = vtanh.f32 %v6700_v57 }
0x2e3b   :  { %9058 = vtanh.f32 %v6702_v0 }
0x2e44   :  { %v9057_v49 = vpop.eup %9056 }
0x2e45   :  { %v9059_v63 = vpop.eup %9058  ;;  %v6720_v13 = vmul.f32 %v9057_v49, %v6719_v40 }
0x2e46   :  { %v6721_v24 = vmul.f32 %v9059_v63, %v6716_v48 }
0x2e48   :  { %6976 = vmatprep.mubr.msk.f32.mxu0 %vm1577_vm15, %v6721_v24 }
0x2e49   :  { %6813 = vmatmul.mubr.f32.vlgmr.msra.gmra.mrb[68].mxu0 %v6720_v13 }
0x2f1c   :  { %v6814_v29 = vpop.f32.mrb[68].mxu0 }
0x2f1d   :  { %6977 = vst.msk [vmem:[%s12076_s18 + $0x38] sm:$0xff] %vm1203_vm10, %v6814_v29  ;;  %v6816_v38 = vpop.f32.mrb[69].mxu0 }
0x2f1e   :  { %6824 = vsyncpa [#allocation5], 1 }
0x2f1f   :  { %6825 = vsyncpa [#allocation7], 1 }
0x2f20   :  { %6826 = vsyncpa [#allocation10], 1 }
0x2f21   :  { %6827 = vsyncpa [#allocation13], 1 }
0x2f22   :  { %6828 = vsyncpa [#allocation16], 1 }
0x2f23   :  { %6829 = vsyncpa [#allocation19], 1 }

</bundles_post_ra>
